<compile_context>
chip_gen: v6e
topology: v6e:2x2x1
jax: 0.10.0
libtpu: 0.0.40
codegen_flags: <defaults>
</compile_context>

<pallas_src>
import math

import jax
import jax.numpy as jnp
from jax.experimental import pallas as pl
from jax.experimental.pallas import tpu as pltpu

# ----------------------------------------------------------------------------
# Small, module-consistent hyperparameters
# ----------------------------------------------------------------------------
NUM_FEATURES = 8
LOOKBACK = 4
D_MODEL = 32
NHEAD = 4
NUM_LAYERS = 2
DIM_FF = 64
G = 2
BATCH = 2
NUM_ASSETS = 8

HEAD_DIM = D_MODEL // NHEAD          # 8
CAAN_DIM = D_MODEL * LOOKBACK        # 128
ROWS = LOOKBACK * NUM_ASSETS         # 32 rows per batch (lookback-major)
LN_EPS = 1e-5
NEG_INF = -1e30


# ----------------------------------------------------------------------------
# Helpers used inside the kernel
# ----------------------------------------------------------------------------
def _layer_norm(x, gamma, beta):
    mu = jnp.mean(x, axis=-1, keepdims=True)
    var = jnp.mean((x - mu) ** 2, axis=-1, keepdims=True)
    return (x - mu) * jax.lax.rsqrt(var + LN_EPS) * gamma + beta


def _softmax_lastdim(x):
    m = jnp.max(x, axis=-1, keepdims=True)
    e = jnp.exp(x - m)
    return e * pl.reciprocal(jnp.sum(e, axis=-1, keepdims=True), approx=True)


# ----------------------------------------------------------------------------
# Fused SREM + CAAN kernel: one batch row per grid step
# ----------------------------------------------------------------------------
def alpha_portfolio_kernel(x_ref, mask_ref, wemb_ref, bemb_ref, pe_ref,
                           wqkv_ref, bqkv_ref, wo_ref, bo_ref,
                           g1_ref, be1_ref, w1_ref, b1_ref, w2_ref, b2_ref,
                           g2_ref, be2_ref,
                           wc_ref, ws_ref, bs_ref,
                           score_ref):
    # ---- SREM: feature embedding + positional encoding ----------------------
    x = x_ref[0]                                                   # (ROWS, F)
    src = jnp.dot(x, wemb_ref[...],
                  preferred_element_type=jnp.float32) + bemb_ref[...]
    src = src + pe_ref[...]                                        # (ROWS, D)

    neg_mask = mask_ref[...]                                       # (ROWS, ROWS)
    inv_sqrt_dh = 1.0 / math.sqrt(HEAD_DIM)

    # ---- TransformerEncoder (post-LN, relu FFN, dropout = identity) ---------
    for l in range(NUM_LAYERS):
        qkv = jnp.dot(src, wqkv_ref[l],
                      preferred_element_type=jnp.float32) + bqkv_ref[l]
        q = qkv[:, 0:D_MODEL] * inv_sqrt_dh
        k = qkv[:, D_MODEL:2 * D_MODEL]
        v = qkv[:, 2 * D_MODEL:3 * D_MODEL]

        wo = wo_ref[l]                                             # (D, D)
        attn = None
        for h in range(NHEAD):
            lo = h * HEAD_DIM
            qh = q[:, lo:lo + HEAD_DIM]
            kh = k[:, lo:lo + HEAD_DIM]
            vh = v[:, lo:lo + HEAD_DIM]
            # one (32,32) score matrix per head; block-diagonal additive mask
            # restricts attention to rows of the same asset (same sequence).
            s = jnp.einsum('qd,kd->qk', qh, kh,
                           preferred_element_type=jnp.float32) + neg_mask
            p = _softmax_lastdim(s)
            head = jnp.dot(p, vh, preferred_element_type=jnp.float32)
            # fold the head output directly into the output projection
            contrib = jnp.dot(head, wo[lo:lo + HEAD_DIM, :],
                              preferred_element_type=jnp.float32)
            attn = contrib if attn is None else attn + contrib
        attn = attn + bo_ref[l]
        src = _layer_norm(src + attn, g1_ref[l], be1_ref[l])

        hid = jnp.maximum(
            jnp.dot(src, w1_ref[l], preferred_element_type=jnp.float32)
            + b1_ref[l], 0.0)
        ff = jnp.dot(hid, w2_ref[l],
                     preferred_element_type=jnp.float32) + b2_ref[l]
        src = _layer_norm(src + ff, g2_ref[l], be2_ref[l])

    # ---- CAAN ---------------------------------------------------------------
    # r[a, t*D + d] == src[t*A + a, d]; instead of materialising r (A, L*D)
    # (which needs a cross-tile relayout), decompose the fused QKV projection:
    #   r @ Wc == sum_t src[t*A:(t+1)*A, :] @ Wc[t*D:(t+1)*D, :]
    wc = wc_ref[...]                                               # (L*D, 3*L*D)
    qkv_c = None
    for t in range(LOOKBACK):
        s_t = src[t * NUM_ASSETS:(t + 1) * NUM_ASSETS, :]          # (A, D)
        contrib = jnp.dot(s_t, wc[t * D_MODEL:(t + 1) * D_MODEL, :],
                          preferred_element_type=jnp.float32)
        qkv_c = contrib if qkv_c is None else qkv_c + contrib      # (A, 3M)

    q_c = qkv_c[:, 0:CAAN_DIM] * (1.0 / math.sqrt(CAAN_DIM))
    k_c = qkv_c[:, CAAN_DIM:2 * CAAN_DIM]
    v_c = qkv_c[:, 2 * CAAN_DIM:3 * CAAN_DIM]

    s = jnp.einsum('qm,km->qk', q_c, k_c, preferred_element_type=jnp.float32)
    p = _softmax_lastdim(s)
    attn_out = jnp.dot(p, v_c, preferred_element_type=jnp.float32)  # (A, M)

    score = jnp.dot(attn_out, ws_ref[...],
                    preferred_element_type=jnp.float32) + bs_ref[...]  # (A, 1)
    score_ref[0] = jnp.tanh(score)


def alpha_portfolio_scores(params, states):
    """states: [B, A, L, F] -> winner scores [B, A] via one fused Pallas call."""
    B, A, L, F = states.shape
    # Lookback-major row layout: row index = t*A + a.
    xs = jnp.transpose(states, (0, 2, 1, 3)).reshape(B, L * A, F)
    pe_rows = jnp.repeat(params['pe'], A, axis=0)                  # (L*A, D)
    idx = jnp.arange(L * A)
    same_asset = (idx[:, None] % A) == (idx[None, :] % A)
    attn_mask = jnp.where(same_asset, 0.0, NEG_INF).astype(jnp.float32)

    def const(shape):
        return pl.BlockSpec(shape, lambda b, _n=len(shape): (0,) * _n)

    scores = pl.pallas_call(
        alpha_portfolio_kernel,
        out_shape=jax.ShapeDtypeStruct((B, A, 1), jnp.float32),
        grid_spec=pltpu.PrefetchScalarGridSpec(
            num_scalar_prefetch=0,
            grid=(B,),
            in_specs=[
                pl.BlockSpec((1, L * A, F), lambda b: (b, 0, 0)),
                const((L * A, L * A)),
                const((F, D_MODEL)),
                const((1, D_MODEL)),
                const((L * A, D_MODEL)),
                const((NUM_LAYERS, D_MODEL, 3 * D_MODEL)),
                const((NUM_LAYERS, 3 * D_MODEL)),
                const((NUM_LAYERS, D_MODEL, D_MODEL)),
                const((NUM_LAYERS, D_MODEL)),
                const((NUM_LAYERS, D_MODEL)),
                const((NUM_LAYERS, D_MODEL)),
                const((NUM_LAYERS, D_MODEL, DIM_FF)),
                const((NUM_LAYERS, DIM_FF)),
                const((NUM_LAYERS, DIM_FF, D_MODEL)),
                const((NUM_LAYERS, D_MODEL)),
                const((NUM_LAYERS, D_MODEL)),
                const((NUM_LAYERS, D_MODEL)),
                const((CAAN_DIM, 3 * CAAN_DIM)),
                const((CAAN_DIM, 1)),
                const((1, 1)),
            ],
            out_specs=pl.BlockSpec((1, A, 1), lambda b: (b, 0, 0)),
        ),
        compiler_params=pltpu.CompilerParams(
            dimension_semantics=("parallel",)),
    )(xs, attn_mask, params['W_emb'], params['b_emb'], pe_rows,
      params['Wqkv'], params['bqkv'], params['Wo'], params['bo'],
      params['ln1_g'], params['ln1_b'], params['W1'], params['b1'],
      params['W2'], params['b2'], params['ln2_g'], params['ln2_b'],
      params['caan_Wqkv'], params['caan_Ws'], params['caan_bs'])
    return scores[..., 0]


# ----------------------------------------------------------------------------
# Portfolio generator (sort/scatter): plain JAX glue
# TODO(synk): torch.sort + index scatter have no clean Pallas TPU equivalent;
#             implemented with jnp.argsort / .at[].set outside the kernel.
# ----------------------------------------------------------------------------
def portfolio_generator(winner_scores, g=G):
    B, A = winner_scores.shape
    sorted_indices = jnp.argsort(-winner_scores, axis=1)           # descending
    g_adj = min(g, A // 2)
    top_idx = sorted_indices[:, :g_adj]
    bot_idx = sorted_indices[:, A - g_adj:]

    top_scores = jnp.take_along_axis(winner_scores, top_idx, axis=1)
    bot_scores = -jnp.take_along_axis(winner_scores, bot_idx, axis=1)

    top_w = jnp.exp(top_scores)
    top_w = top_w / jnp.sum(top_w, axis=1, keepdims=True)
    bot_w = jnp.exp(bot_scores)
    bot_w = bot_w / jnp.sum(bot_w, axis=1, keepdims=True)

    rows = jnp.arange(B)[:, None]
    pw = jnp.zeros_like(winner_scores)
    pw = pw.at[rows, top_idx].set(top_w)
    pw = pw.at[rows, bot_idx].set(-bot_w)
    return pw, sorted_indices


# ----------------------------------------------------------------------------
# Full AlphaPortfolio forward (4D-states path, masks=None)
# ----------------------------------------------------------------------------
def alpha_portfolio_forward(params, states):
    winner_scores = alpha_portfolio_scores(params, states)         # [B, A]
    portfolio_weights, sorted_indices = portfolio_generator(winner_scores)
    return portfolio_weights, winner_scores, sorted_indices


# ----------------------------------------------------------------------------
# Deterministic synthetic parameter initialization
# ----------------------------------------------------------------------------
def make_positional_encoding(max_len, d_model):
    position = jnp.arange(max_len, dtype=jnp.float32)[:, None]
    div_term = jnp.exp(jnp.arange(0, d_model, 2, dtype=jnp.float32)
                       * (-math.log(10000.0) / d_model))
    pe = jnp.zeros((max_len, d_model), dtype=jnp.float32)
    pe = pe.at[:, 0::2].set(jnp.sin(position * div_term))
    pe = pe.at[:, 1::2].set(jnp.cos(position * div_term))
    return pe


def init_params(key):
    ks = list(jax.random.split(key, 16))
    s = 0.05

    def rnd(k, shape):
        return s * jax.random.normal(k, shape, dtype=jnp.float32)

    params = {
        'W_emb': rnd(ks[0], (NUM_FEATURES, D_MODEL)),
        'b_emb': jnp.zeros((1, D_MODEL), jnp.float32),
        'pe': make_positional_encoding(LOOKBACK, D_MODEL),
        'Wqkv': rnd(ks[1], (NUM_LAYERS, D_MODEL, 3 * D_MODEL)),
        'bqkv': jnp.zeros((NUM_LAYERS, 3 * D_MODEL), jnp.float32),
        'Wo': rnd(ks[2], (NUM_LAYERS, D_MODEL, D_MODEL)),
        'bo': jnp.zeros((NUM_LAYERS, D_MODEL), jnp.float32),
        'ln1_g': jnp.ones((NUM_LAYERS, D_MODEL), jnp.float32),
        'ln1_b': jnp.zeros((NUM_LAYERS, D_MODEL), jnp.float32),
        'W1': rnd(ks[3], (NUM_LAYERS, D_MODEL, DIM_FF)),
        'b1': jnp.zeros((NUM_LAYERS, DIM_FF), jnp.float32),
        'W2': rnd(ks[4], (NUM_LAYERS, DIM_FF, D_MODEL)),
        'b2': jnp.zeros((NUM_LAYERS, D_MODEL), jnp.float32),
        'ln2_g': jnp.ones((NUM_LAYERS, D_MODEL), jnp.float32),
        'ln2_b': jnp.zeros((NUM_LAYERS, D_MODEL), jnp.float32),
        # CAAN W_Q | W_K | W_V concatenated into one (M, 3M) weight
        'caan_Wqkv': rnd(ks[5], (CAAN_DIM, 3 * CAAN_DIM)),
        'caan_Ws': rnd(ks[6], (CAAN_DIM, 1)),
        'caan_bs': jnp.zeros((1, 1), jnp.float32),
    }
    return params


if __name__ == "__main__":
    key = jax.random.PRNGKey(0)
    pkey, xkey = jax.random.split(key)
    params = init_params(pkey)

    states = jax.random.normal(
        xkey, (BATCH, NUM_ASSETS, LOOKBACK, NUM_FEATURES), dtype=jnp.float32)

    pw, ws, idx = jax.jit(alpha_portfolio_forward)(params, states)
    jax.block_until_ready((pw, ws, idx))

    assert pw.shape == (BATCH, NUM_ASSETS)
    assert ws.shape == (BATCH, NUM_ASSETS)
    assert idx.shape == (BATCH, NUM_ASSETS)
    print("KERNEL_OK")
</pallas_src>

<mosaic_0001>
module attributes {stable_mosaic.version = 11 : i64} {
  func.func @alpha_portfolio_kernel(%arg0: i32, %arg1: memref<1x32x8xf32, #tpu.memory_space<vmem>>, %arg2: memref<32x32xf32, #tpu.memory_space<vmem>>, %arg3: memref<8x32xf32, #tpu.memory_space<vmem>>, %arg4: memref<1x32xf32, #tpu.memory_space<vmem>>, %arg5: memref<32x32xf32, #tpu.memory_space<vmem>>, %arg6: memref<2x32x96xf32, #tpu.memory_space<vmem>>, %arg7: memref<2x96xf32, #tpu.memory_space<vmem>>, %arg8: memref<2x32x32xf32, #tpu.memory_space<vmem>>, %arg9: memref<2x32xf32, #tpu.memory_space<vmem>>, %arg10: memref<2x32xf32, #tpu.memory_space<vmem>>, %arg11: memref<2x32xf32, #tpu.memory_space<vmem>>, %arg12: memref<2x32x64xf32, #tpu.memory_space<vmem>>, %arg13: memref<2x64xf32, #tpu.memory_space<vmem>>, %arg14: memref<2x64x32xf32, #tpu.memory_space<vmem>>, %arg15: memref<2x32xf32, #tpu.memory_space<vmem>>, %arg16: memref<2x32xf32, #tpu.memory_space<vmem>>, %arg17: memref<2x32xf32, #tpu.memory_space<vmem>>, %arg18: memref<128x384xf32, #tpu.memory_space<vmem>>, %arg19: memref<128x1xf32, #tpu.memory_space<vmem>>, %arg20: memref<1x1xf32, #tpu.memory_space<vmem>>, %arg21: memref<1x8x1xf32, #tpu.memory_space<vmem>>) attributes {dimension_semantics = [#tpu.dimension_semantics<parallel>], iteration_bounds = array<i64: 2>, scalar_prefetch = 0 : i64, scratch_operands = 0 : i64, tpu.core_type = #tpu.core_type<tc>, window_params = [{transform_indices = @transform_0, window_bounds = array<i64: 1, 32, 8>}, {pipeline_mode = #tpu.pipeline_mode<synchronous>, transform_indices = @transform_1, window_bounds = array<i64: 32, 32>}, {pipeline_mode = #tpu.pipeline_mode<synchronous>, transform_indices = @transform_2, window_bounds = array<i64: 8, 32>}, {pipeline_mode = #tpu.pipeline_mode<synchronous>, transform_indices = @transform_3, window_bounds = array<i64: 1, 32>}, {pipeline_mode = #tpu.pipeline_mode<synchronous>, transform_indices = @transform_4, window_bounds = array<i64: 32, 32>}, {pipeline_mode = #tpu.pipeline_mode<synchronous>, transform_indices = @transform_5, window_bounds = array<i64: 2, 32, 96>}, {pipeline_mode = #tpu.pipeline_mode<synchronous>, transform_indices = @transform_6, window_bounds = array<i64: 2, 96>}, {pipeline_mode = #tpu.pipeline_mode<synchronous>, transform_indices = @transform_7, window_bounds = array<i64: 2, 32, 32>}, {pipeline_mode = #tpu.pipeline_mode<synchronous>, transform_indices = @transform_8, window_bounds = array<i64: 2, 32>}, {pipeline_mode = #tpu.pipeline_mode<synchronous>, transform_indices = @transform_9, window_bounds = array<i64: 2, 32>}, {pipeline_mode = #tpu.pipeline_mode<synchronous>, transform_indices = @transform_10, window_bounds = array<i64: 2, 32>}, {pipeline_mode = #tpu.pipeline_mode<synchronous>, transform_indices = @transform_11, window_bounds = array<i64: 2, 32, 64>}, {pipeline_mode = #tpu.pipeline_mode<synchronous>, transform_indices = @transform_12, window_bounds = array<i64: 2, 64>}, {pipeline_mode = #tpu.pipeline_mode<synchronous>, transform_indices = @transform_13, window_bounds = array<i64: 2, 64, 32>}, {pipeline_mode = #tpu.pipeline_mode<synchronous>, transform_indices = @transform_14, window_bounds = array<i64: 2, 32>}, {pipeline_mode = #tpu.pipeline_mode<synchronous>, transform_indices = @transform_15, window_bounds = array<i64: 2, 32>}, {pipeline_mode = #tpu.pipeline_mode<synchronous>, transform_indices = @transform_16, window_bounds = array<i64: 2, 32>}, {pipeline_mode = #tpu.pipeline_mode<synchronous>, transform_indices = @transform_17, window_bounds = array<i64: 128, 384>}, {pipeline_mode = #tpu.pipeline_mode<synchronous>, transform_indices = @transform_18, window_bounds = array<i64: 128, 1>}, {pipeline_mode = #tpu.pipeline_mode<synchronous>, transform_indices = @transform_19, window_bounds = array<i64: 1, 1>}, {transform_indices = @transform_20, window_bounds = array<i64: 1, 8, 1>}]} {
    %c0 = arith.constant 0 : index
    %c0_0 = arith.constant 0 : index
    %c0_1 = arith.constant 0 : index
    %0 = vector.load %arg1[%c0, %c0_0, %c0_1] : memref<1x32x8xf32, #tpu.memory_space<vmem>>, vector<1x32x8xf32>
    %1 = vector.shape_cast %0 : vector<1x32x8xf32> to vector<32x8xf32>
    %c0_2 = arith.constant 0 : index
    %c0_3 = arith.constant 0 : index
    %2 = vector.load %arg3[%c0_2, %c0_3] : memref<8x32xf32, #tpu.memory_space<vmem>>, vector<8x32xf32>
    %cst = arith.constant dense<0.000000e+00> : vector<32x32xf32>
    %3 = tpu.matmul %1, %2, %cst {dimension_numbers = #tpu.dot_dimension_numbers<[1], [0], [0], [1], [0, 0, 1, 1], [], []>} : vector<32x8xf32>, vector<8x32xf32>, vector<32x32xf32> -> vector<32x32xf32>
    %c0_4 = arith.constant 0 : index
    %c0_5 = arith.constant 0 : index
    %4 = vector.load %arg4[%c0_4, %c0_5] : memref<1x32xf32, #tpu.memory_space<vmem>>, vector<1x32xf32>
    %5 = vector.broadcast %4 : vector<1x32xf32> to vector<32x32xf32>
    %6 = arith.addf %3, %5 : vector<32x32xf32>
    %c0_6 = arith.constant 0 : index
    %c0_7 = arith.constant 0 : index
    %7 = vector.load %arg5[%c0_6, %c0_7] : memref<32x32xf32, #tpu.memory_space<vmem>>, vector<32x32xf32>
    %8 = arith.addf %6, %7 : vector<32x32xf32>
    %c0_8 = arith.constant 0 : index
    %c0_9 = arith.constant 0 : index
    %9 = vector.load %arg2[%c0_8, %c0_9] : memref<32x32xf32, #tpu.memory_space<vmem>>, vector<32x32xf32>
    %c0_10 = arith.constant 0 : index
    %c0_11 = arith.constant 0 : index
    %c0_12 = arith.constant 0 : index
    %10 = vector.load %arg6[%c0_10, %c0_11, %c0_12] : memref<2x32x96xf32, #tpu.memory_space<vmem>>, vector<1x32x96xf32>
    %11 = vector.shape_cast %10 : vector<1x32x96xf32> to vector<32x96xf32>
    %cst_13 = arith.constant dense<0.000000e+00> : vector<32x96xf32>
    %12 = tpu.matmul %8, %11, %cst_13 {dimension_numbers = #tpu.dot_dimension_numbers<[1], [0], [0], [1], [0, 0, 1, 1], [], []>} : vector<32x32xf32>, vector<32x96xf32>, vector<32x96xf32> -> vector<32x96xf32>
    %c0_14 = arith.constant 0 : index
    %c0_15 = arith.constant 0 : index
    %13 = vector.load %arg7[%c0_14, %c0_15] : memref<2x96xf32, #tpu.memory_space<vmem>>, vector<1x96xf32>
    %14 = vector.shape_cast %13 : vector<1x96xf32> to vector<96xf32>
    %15 = vector.shape_cast %14 : vector<96xf32> to vector<1x96xf32>
    %16 = vector.broadcast %15 : vector<1x96xf32> to vector<32x96xf32>
    %17 = arith.addf %12, %16 : vector<32x96xf32>
    %18 = vector.extract_strided_slice %17 {offsets = [0, 0], sizes = [32, 32], strides = [1, 1]} : vector<32x96xf32> to vector<32x32xf32>
    %cst_16 = arith.constant 0.353553385 : f32
    %19 = vector.broadcast %cst_16 : f32 to vector<32x32xf32>
    %20 = arith.mulf %18, %19 : vector<32x32xf32>
    %21 = vector.extract_strided_slice %17 {offsets = [0, 32], sizes = [32, 32], strides = [1, 1]} : vector<32x96xf32> to vector<32x32xf32>
    %22 = vector.extract_strided_slice %17 {offsets = [0, 64], sizes = [32, 32], strides = [1, 1]} : vector<32x96xf32> to vector<32x32xf32>
    %c0_17 = arith.constant 0 : index
    %c0_18 = arith.constant 0 : index
    %c0_19 = arith.constant 0 : index
    %23 = vector.load %arg8[%c0_17, %c0_18, %c0_19] : memref<2x32x32xf32, #tpu.memory_space<vmem>>, vector<1x32x32xf32>
    %24 = vector.shape_cast %23 : vector<1x32x32xf32> to vector<32x32xf32>
    %25 = vector.extract_strided_slice %20 {offsets = [0, 0], sizes = [32, 8], strides = [1, 1]} : vector<32x32xf32> to vector<32x8xf32>
    %26 = vector.extract_strided_slice %21 {offsets = [0, 0], sizes = [32, 8], strides = [1, 1]} : vector<32x32xf32> to vector<32x8xf32>
    %27 = vector.extract_strided_slice %22 {offsets = [0, 0], sizes = [32, 8], strides = [1, 1]} : vector<32x32xf32> to vector<32x8xf32>
    "tpu.trace_start"() <{level = 10 : i32, message = "qd,kd->qk"}> : () -> ()
    %cst_20 = arith.constant dense<0.000000e+00> : vector<32x32xf32>
    %28 = tpu.matmul %25, %26, %cst_20 {dimension_numbers = #tpu.dot_dimension_numbers<[1], [1], [0], [0], [0, 0, 1, 0], [], []>} : vector<32x8xf32>, vector<32x8xf32>, vector<32x32xf32> -> vector<32x32xf32>
    "tpu.trace_stop"() : () -> ()
    %29 = arith.addf %28, %9 : vector<32x32xf32>
    %cst_21 = arith.constant dense<0xFF800000> : vector<32xf32>
    %30 = vector.multi_reduction <maximumf>, %29, %cst_21 [1] : vector<32x32xf32> to vector<32xf32>
    %31 = vector.shape_cast %30 : vector<32xf32> to vector<32x1xf32>
    %32 = vector.broadcast %31 : vector<32x1xf32> to vector<32x32xf32>
    %33 = arith.subf %29, %32 : vector<32x32xf32>
    %34 = math.exp %33 : vector<32x32xf32>
    %cst_22 = arith.constant dense<0.000000e+00> : vector<32xf32>
    %35 = vector.multi_reduction <add>, %34, %cst_22 [1] : vector<32x32xf32> to vector<32xf32>
    %36 = vector.shape_cast %35 : vector<32xf32> to vector<32x1xf32>
    %37 = tpu.reciprocal %36 {approx = true} : vector<32x1xf32> -> vector<32x1xf32>
    %38 = vector.broadcast %37 : vector<32x1xf32> to vector<32x32xf32>
    %39 = arith.mulf %34, %38 : vector<32x32xf32>
    %cst_23 = arith.constant dense<0.000000e+00> : vector<32x8xf32>
    %40 = tpu.matmul %39, %27, %cst_23 {dimension_numbers = #tpu.dot_dimension_numbers<[1], [0], [0], [1], [0, 0, 1, 1], [], []>} : vector<32x32xf32>, vector<32x8xf32>, vector<32x8xf32> -> vector<32x8xf32>
    %41 = vector.extract_strided_slice %24 {offsets = [0, 0], sizes = [8, 32], strides = [1, 1]} : vector<32x32xf32> to vector<8x32xf32>
    %cst_24 = arith.constant dense<0.000000e+00> : vector<32x32xf32>
    %42 = tpu.matmul %40, %41, %cst_24 {dimension_numbers = #tpu.dot_dimension_numbers<[1], [0], [0], [1], [0, 0, 1, 1], [], []>} : vector<32x8xf32>, vector<8x32xf32>, vector<32x32xf32> -> vector<32x32xf32>
    %43 = vector.extract_strided_slice %20 {offsets = [0, 8], sizes = [32, 8], strides = [1, 1]} : vector<32x32xf32> to vector<32x8xf32>
    %44 = vector.extract_strided_slice %21 {offsets = [0, 8], sizes = [32, 8], strides = [1, 1]} : vector<32x32xf32> to vector<32x8xf32>
    %45 = vector.extract_strided_slice %22 {offsets = [0, 8], sizes = [32, 8], strides = [1, 1]} : vector<32x32xf32> to vector<32x8xf32>
    "tpu.trace_start"() <{level = 10 : i32, message = "qd,kd->qk"}> : () -> ()
    %cst_25 = arith.constant dense<0.000000e+00> : vector<32x32xf32>
    %46 = tpu.matmul %43, %44, %cst_25 {dimension_numbers = #tpu.dot_dimension_numbers<[1], [1], [0], [0], [0, 0, 1, 0], [], []>} : vector<32x8xf32>, vector<32x8xf32>, vector<32x32xf32> -> vector<32x32xf32>
    "tpu.trace_stop"() : () -> ()
    %47 = arith.addf %46, %9 : vector<32x32xf32>
    %cst_26 = arith.constant dense<0xFF800000> : vector<32xf32>
    %48 = vector.multi_reduction <maximumf>, %47, %cst_26 [1] : vector<32x32xf32> to vector<32xf32>
    %49 = vector.shape_cast %48 : vector<32xf32> to vector<32x1xf32>
    %50 = vector.broadcast %49 : vector<32x1xf32> to vector<32x32xf32>
    %51 = arith.subf %47, %50 : vector<32x32xf32>
    %52 = math.exp %51 : vector<32x32xf32>
    %cst_27 = arith.constant dense<0.000000e+00> : vector<32xf32>
    %53 = vector.multi_reduction <add>, %52, %cst_27 [1] : vector<32x32xf32> to vector<32xf32>
    %54 = vector.shape_cast %53 : vector<32xf32> to vector<32x1xf32>
    %55 = tpu.reciprocal %54 {approx = true} : vector<32x1xf32> -> vector<32x1xf32>
    %56 = vector.broadcast %55 : vector<32x1xf32> to vector<32x32xf32>
    %57 = arith.mulf %52, %56 : vector<32x32xf32>
    %cst_28 = arith.constant dense<0.000000e+00> : vector<32x8xf32>
    %58 = tpu.matmul %57, %45, %cst_28 {dimension_numbers = #tpu.dot_dimension_numbers<[1], [0], [0], [1], [0, 0, 1, 1], [], []>} : vector<32x32xf32>, vector<32x8xf32>, vector<32x8xf32> -> vector<32x8xf32>
    %59 = vector.extract_strided_slice %24 {offsets = [8, 0], sizes = [8, 32], strides = [1, 1]} : vector<32x32xf32> to vector<8x32xf32>
    %cst_29 = arith.constant dense<0.000000e+00> : vector<32x32xf32>
    %60 = tpu.matmul %58, %59, %cst_29 {dimension_numbers = #tpu.dot_dimension_numbers<[1], [0], [0], [1], [0, 0, 1, 1], [], []>} : vector<32x8xf32>, vector<8x32xf32>, vector<32x32xf32> -> vector<32x32xf32>
    %61 = arith.addf %42, %60 : vector<32x32xf32>
    %62 = vector.extract_strided_slice %20 {offsets = [0, 16], sizes = [32, 8], strides = [1, 1]} : vector<32x32xf32> to vector<32x8xf32>
    %63 = vector.extract_strided_slice %21 {offsets = [0, 16], sizes = [32, 8], strides = [1, 1]} : vector<32x32xf32> to vector<32x8xf32>
    %64 = vector.extract_strided_slice %22 {offsets = [0, 16], sizes = [32, 8], strides = [1, 1]} : vector<32x32xf32> to vector<32x8xf32>
    "tpu.trace_start"() <{level = 10 : i32, message = "qd,kd->qk"}> : () -> ()
    %cst_30 = arith.constant dense<0.000000e+00> : vector<32x32xf32>
    %65 = tpu.matmul %62, %63, %cst_30 {dimension_numbers = #tpu.dot_dimension_numbers<[1], [1], [0], [0], [0, 0, 1, 0], [], []>} : vector<32x8xf32>, vector<32x8xf32>, vector<32x32xf32> -> vector<32x32xf32>
    "tpu.trace_stop"() : () -> ()
    %66 = arith.addf %65, %9 : vector<32x32xf32>
    %cst_31 = arith.constant dense<0xFF800000> : vector<32xf32>
    %67 = vector.multi_reduction <maximumf>, %66, %cst_31 [1] : vector<32x32xf32> to vector<32xf32>
    %68 = vector.shape_cast %67 : vector<32xf32> to vector<32x1xf32>
    %69 = vector.broadcast %68 : vector<32x1xf32> to vector<32x32xf32>
    %70 = arith.subf %66, %69 : vector<32x32xf32>
    %71 = math.exp %70 : vector<32x32xf32>
    %cst_32 = arith.constant dense<0.000000e+00> : vector<32xf32>
    %72 = vector.multi_reduction <add>, %71, %cst_32 [1] : vector<32x32xf32> to vector<32xf32>
    %73 = vector.shape_cast %72 : vector<32xf32> to vector<32x1xf32>
    %74 = tpu.reciprocal %73 {approx = true} : vector<32x1xf32> -> vector<32x1xf32>
    %75 = vector.broadcast %74 : vector<32x1xf32> to vector<32x32xf32>
    %76 = arith.mulf %71, %75 : vector<32x32xf32>
    %cst_33 = arith.constant dense<0.000000e+00> : vector<32x8xf32>
    %77 = tpu.matmul %76, %64, %cst_33 {dimension_numbers = #tpu.dot_dimension_numbers<[1], [0], [0], [1], [0, 0, 1, 1], [], []>} : vector<32x32xf32>, vector<32x8xf32>, vector<32x8xf32> -> vector<32x8xf32>
    %78 = vector.extract_strided_slice %24 {offsets = [16, 0], sizes = [8, 32], strides = [1, 1]} : vector<32x32xf32> to vector<8x32xf32>
    %cst_34 = arith.constant dense<0.000000e+00> : vector<32x32xf32>
    %79 = tpu.matmul %77, %78, %cst_34 {dimension_numbers = #tpu.dot_dimension_numbers<[1], [0], [0], [1], [0, 0, 1, 1], [], []>} : vector<32x8xf32>, vector<8x32xf32>, vector<32x32xf32> -> vector<32x32xf32>
    %80 = arith.addf %61, %79 : vector<32x32xf32>
    %81 = vector.extract_strided_slice %20 {offsets = [0, 24], sizes = [32, 8], strides = [1, 1]} : vector<32x32xf32> to vector<32x8xf32>
    %82 = vector.extract_strided_slice %21 {offsets = [0, 24], sizes = [32, 8], strides = [1, 1]} : vector<32x32xf32> to vector<32x8xf32>
    %83 = vector.extract_strided_slice %22 {offsets = [0, 24], sizes = [32, 8], strides = [1, 1]} : vector<32x32xf32> to vector<32x8xf32>
    "tpu.trace_start"() <{level = 10 : i32, message = "qd,kd->qk"}> : () -> ()
    %cst_35 = arith.constant dense<0.000000e+00> : vector<32x32xf32>
    %84 = tpu.matmul %81, %82, %cst_35 {dimension_numbers = #tpu.dot_dimension_numbers<[1], [1], [0], [0], [0, 0, 1, 0], [], []>} : vector<32x8xf32>, vector<32x8xf32>, vector<32x32xf32> -> vector<32x32xf32>
    "tpu.trace_stop"() : () -> ()
    %85 = arith.addf %84, %9 : vector<32x32xf32>
    %cst_36 = arith.constant dense<0xFF800000> : vector<32xf32>
    %86 = vector.multi_reduction <maximumf>, %85, %cst_36 [1] : vector<32x32xf32> to vector<32xf32>
    %87 = vector.shape_cast %86 : vector<32xf32> to vector<32x1xf32>
    %88 = vector.broadcast %87 : vector<32x1xf32> to vector<32x32xf32>
    %89 = arith.subf %85, %88 : vector<32x32xf32>
    %90 = math.exp %89 : vector<32x32xf32>
    %cst_37 = arith.constant dense<0.000000e+00> : vector<32xf32>
    %91 = vector.multi_reduction <add>, %90, %cst_37 [1] : vector<32x32xf32> to vector<32xf32>
    %92 = vector.shape_cast %91 : vector<32xf32> to vector<32x1xf32>
    %93 = tpu.reciprocal %92 {approx = true} : vector<32x1xf32> -> vector<32x1xf32>
    %94 = vector.broadcast %93 : vector<32x1xf32> to vector<32x32xf32>
    %95 = arith.mulf %90, %94 : vector<32x32xf32>
    %cst_38 = arith.constant dense<0.000000e+00> : vector<32x8xf32>
    %96 = tpu.matmul %95, %83, %cst_38 {dimension_numbers = #tpu.dot_dimension_numbers<[1], [0], [0], [1], [0, 0, 1, 1], [], []>} : vector<32x32xf32>, vector<32x8xf32>, vector<32x8xf32> -> vector<32x8xf32>
    %97 = vector.extract_strided_slice %24 {offsets = [24, 0], sizes = [8, 32], strides = [1, 1]} : vector<32x32xf32> to vector<8x32xf32>
    %cst_39 = arith.constant dense<0.000000e+00> : vector<32x32xf32>
    %98 = tpu.matmul %96, %97, %cst_39 {dimension_numbers = #tpu.dot_dimension_numbers<[1], [0], [0], [1], [0, 0, 1, 1], [], []>} : vector<32x8xf32>, vector<8x32xf32>, vector<32x32xf32> -> vector<32x32xf32>
    %99 = arith.addf %80, %98 : vector<32x32xf32>
    %c0_40 = arith.constant 0 : index
    %c0_41 = arith.constant 0 : index
    %100 = vector.load %arg9[%c0_40, %c0_41] : memref<2x32xf32, #tpu.memory_space<vmem>>, vector<1x32xf32>
    %101 = vector.shape_cast %100 : vector<1x32xf32> to vector<32xf32>
    %102 = vector.shape_cast %101 : vector<32xf32> to vector<1x32xf32>
    %103 = vector.broadcast %102 : vector<1x32xf32> to vector<32x32xf32>
    %104 = arith.addf %99, %103 : vector<32x32xf32>
    %105 = arith.addf %8, %104 : vector<32x32xf32>
    %c0_42 = arith.constant 0 : index
    %c0_43 = arith.constant 0 : index
    %106 = vector.load %arg10[%c0_42, %c0_43] : memref<2x32xf32, #tpu.memory_space<vmem>>, vector<1x32xf32>
    %107 = vector.shape_cast %106 : vector<1x32xf32> to vector<32xf32>
    %c0_44 = arith.constant 0 : index
    %c0_45 = arith.constant 0 : index
    %108 = vector.load %arg11[%c0_44, %c0_45] : memref<2x32xf32, #tpu.memory_space<vmem>>, vector<1x32xf32>
    %109 = vector.shape_cast %108 : vector<1x32xf32> to vector<32xf32>
    %cst_46 = arith.constant dense<0.000000e+00> : vector<32xf32>
    %110 = vector.multi_reduction <add>, %105, %cst_46 [1] : vector<32x32xf32> to vector<32xf32>
    %111 = vector.shape_cast %110 : vector<32xf32> to vector<32x1xf32>
    %cst_47 = arith.constant 3.200000e+01 : f32
    %112 = vector.broadcast %cst_47 : f32 to vector<32x1xf32>
    %113 = arith.divf %111, %112 : vector<32x1xf32>
    %114 = vector.broadcast %113 : vector<32x1xf32> to vector<32x32xf32>
    %115 = arith.subf %105, %114 : vector<32x32xf32>
    %116 = arith.mulf %115, %115 : vector<32x32xf32>
    %cst_48 = arith.constant dense<0.000000e+00> : vector<32xf32>
    %117 = vector.multi_reduction <add>, %116, %cst_48 [1] : vector<32x32xf32> to vector<32xf32>
    %118 = vector.shape_cast %117 : vector<32xf32> to vector<32x1xf32>
    %cst_49 = arith.constant 3.200000e+01 : f32
    %119 = vector.broadcast %cst_49 : f32 to vector<32x1xf32>
    %120 = arith.divf %118, %119 : vector<32x1xf32>
    %121 = vector.broadcast %113 : vector<32x1xf32> to vector<32x32xf32>
    %122 = arith.subf %105, %121 : vector<32x32xf32>
    %cst_50 = arith.constant 9.99999974E-6 : f32
    %123 = vector.broadcast %cst_50 : f32 to vector<32x1xf32>
    %124 = arith.addf %120, %123 : vector<32x1xf32>
    %125 = math.rsqrt %124 : vector<32x1xf32>
    %126 = vector.broadcast %125 : vector<32x1xf32> to vector<32x32xf32>
    %127 = arith.mulf %122, %126 : vector<32x32xf32>
    %128 = vector.shape_cast %107 : vector<32xf32> to vector<1x32xf32>
    %129 = vector.broadcast %128 : vector<1x32xf32> to vector<32x32xf32>
    %130 = arith.mulf %127, %129 : vector<32x32xf32>
    %131 = vector.shape_cast %109 : vector<32xf32> to vector<1x32xf32>
    %132 = vector.broadcast %131 : vector<1x32xf32> to vector<32x32xf32>
    %133 = arith.addf %130, %132 : vector<32x32xf32>
    %c0_51 = arith.constant 0 : index
    %c0_52 = arith.constant 0 : index
    %c0_53 = arith.constant 0 : index
    %134 = vector.load %arg12[%c0_51, %c0_52, %c0_53] : memref<2x32x64xf32, #tpu.memory_space<vmem>>, vector<1x32x64xf32>
    %135 = vector.shape_cast %134 : vector<1x32x64xf32> to vector<32x64xf32>
    %cst_54 = arith.constant dense<0.000000e+00> : vector<32x64xf32>
    %136 = tpu.matmul %133, %135, %cst_54 {dimension_numbers = #tpu.dot_dimension_numbers<[1], [0], [0], [1], [0, 0, 1, 1], [], []>} : vector<32x32xf32>, vector<32x64xf32>, vector<32x64xf32> -> vector<32x64xf32>
    %c0_55 = arith.constant 0 : index
    %c0_56 = arith.constant 0 : index
    %137 = vector.load %arg13[%c0_55, %c0_56] : memref<2x64xf32, #tpu.memory_space<vmem>>, vector<1x64xf32>
    %138 = vector.shape_cast %137 : vector<1x64xf32> to vector<64xf32>
    %139 = vector.shape_cast %138 : vector<64xf32> to vector<1x64xf32>
    %140 = vector.broadcast %139 : vector<1x64xf32> to vector<32x64xf32>
    %141 = arith.addf %136, %140 : vector<32x64xf32>
    %cst_57 = arith.constant 0.000000e+00 : f32
    %142 = vector.broadcast %cst_57 : f32 to vector<32x64xf32>
    %143 = arith.maximumf %141, %142 : vector<32x64xf32>
    %c0_58 = arith.constant 0 : index
    %c0_59 = arith.constant 0 : index
    %c0_60 = arith.constant 0 : index
    %144 = vector.load %arg14[%c0_58, %c0_59, %c0_60] : memref<2x64x32xf32, #tpu.memory_space<vmem>>, vector<1x64x32xf32>
    %145 = vector.shape_cast %144 : vector<1x64x32xf32> to vector<64x32xf32>
    %cst_61 = arith.constant dense<0.000000e+00> : vector<32x32xf32>
    %146 = tpu.matmul %143, %145, %cst_61 {dimension_numbers = #tpu.dot_dimension_numbers<[1], [0], [0], [1], [0, 0, 1, 1], [], []>} : vector<32x64xf32>, vector<64x32xf32>, vector<32x32xf32> -> vector<32x32xf32>
    %c0_62 = arith.constant 0 : index
    %c0_63 = arith.constant 0 : index
    %147 = vector.load %arg15[%c0_62, %c0_63] : memref<2x32xf32, #tpu.memory_space<vmem>>, vector<1x32xf32>
    %148 = vector.shape_cast %147 : vector<1x32xf32> to vector<32xf32>
    %149 = vector.shape_cast %148 : vector<32xf32> to vector<1x32xf32>
    %150 = vector.broadcast %149 : vector<1x32xf32> to vector<32x32xf32>
    %151 = arith.addf %146, %150 : vector<32x32xf32>
    %152 = arith.addf %133, %151 : vector<32x32xf32>
    %c0_64 = arith.constant 0 : index
    %c0_65 = arith.constant 0 : index
    %153 = vector.load %arg16[%c0_64, %c0_65] : memref<2x32xf32, #tpu.memory_space<vmem>>, vector<1x32xf32>
    %154 = vector.shape_cast %153 : vector<1x32xf32> to vector<32xf32>
    %c0_66 = arith.constant 0 : index
    %c0_67 = arith.constant 0 : index
    %155 = vector.load %arg17[%c0_66, %c0_67] : memref<2x32xf32, #tpu.memory_space<vmem>>, vector<1x32xf32>
    %156 = vector.shape_cast %155 : vector<1x32xf32> to vector<32xf32>
    %cst_68 = arith.constant dense<0.000000e+00> : vector<32xf32>
    %157 = vector.multi_reduction <add>, %152, %cst_68 [1] : vector<32x32xf32> to vector<32xf32>
    %158 = vector.shape_cast %157 : vector<32xf32> to vector<32x1xf32>
    %cst_69 = arith.constant 3.200000e+01 : f32
    %159 = vector.broadcast %cst_69 : f32 to vector<32x1xf32>
    %160 = arith.divf %158, %159 : vector<32x1xf32>
    %161 = vector.broadcast %160 : vector<32x1xf32> to vector<32x32xf32>
    %162 = arith.subf %152, %161 : vector<32x32xf32>
    %163 = arith.mulf %162, %162 : vector<32x32xf32>
    %cst_70 = arith.constant dense<0.000000e+00> : vector<32xf32>
    %164 = vector.multi_reduction <add>, %163, %cst_70 [1] : vector<32x32xf32> to vector<32xf32>
    %165 = vector.shape_cast %164 : vector<32xf32> to vector<32x1xf32>
    %cst_71 = arith.constant 3.200000e+01 : f32
    %166 = vector.broadcast %cst_71 : f32 to vector<32x1xf32>
    %167 = arith.divf %165, %166 : vector<32x1xf32>
    %168 = vector.broadcast %160 : vector<32x1xf32> to vector<32x32xf32>
    %169 = arith.subf %152, %168 : vector<32x32xf32>
    %cst_72 = arith.constant 9.99999974E-6 : f32
    %170 = vector.broadcast %cst_72 : f32 to vector<32x1xf32>
    %171 = arith.addf %167, %170 : vector<32x1xf32>
    %172 = math.rsqrt %171 : vector<32x1xf32>
    %173 = vector.broadcast %172 : vector<32x1xf32> to vector<32x32xf32>
    %174 = arith.mulf %169, %173 : vector<32x32xf32>
    %175 = vector.shape_cast %154 : vector<32xf32> to vector<1x32xf32>
    %176 = vector.broadcast %175 : vector<1x32xf32> to vector<32x32xf32>
    %177 = arith.mulf %174, %176 : vector<32x32xf32>
    %178 = vector.shape_cast %156 : vector<32xf32> to vector<1x32xf32>
    %179 = vector.broadcast %178 : vector<1x32xf32> to vector<32x32xf32>
    %180 = arith.addf %177, %179 : vector<32x32xf32>
    %c1 = arith.constant 1 : index
    %c0_73 = arith.constant 0 : index
    %c0_74 = arith.constant 0 : index
    %181 = vector.load %arg6[%c1, %c0_73, %c0_74] : memref<2x32x96xf32, #tpu.memory_space<vmem>>, vector<1x32x96xf32>
    %182 = vector.shape_cast %181 : vector<1x32x96xf32> to vector<32x96xf32>
    %cst_75 = arith.constant dense<0.000000e+00> : vector<32x96xf32>
    %183 = tpu.matmul %180, %182, %cst_75 {dimension_numbers = #tpu.dot_dimension_numbers<[1], [0], [0], [1], [0, 0, 1, 1], [], []>} : vector<32x32xf32>, vector<32x96xf32>, vector<32x96xf32> -> vector<32x96xf32>
    %c1_76 = arith.constant 1 : index
    %c0_77 = arith.constant 0 : index
    %184 = vector.load %arg7[%c1_76, %c0_77] : memref<2x96xf32, #tpu.memory_space<vmem>>, vector<1x96xf32>
    %185 = vector.shape_cast %184 : vector<1x96xf32> to vector<96xf32>
    %186 = vector.shape_cast %185 : vector<96xf32> to vector<1x96xf32>
    %187 = vector.broadcast %186 : vector<1x96xf32> to vector<32x96xf32>
    %188 = arith.addf %183, %187 : vector<32x96xf32>
    %189 = vector.extract_strided_slice %188 {offsets = [0, 0], sizes = [32, 32], strides = [1, 1]} : vector<32x96xf32> to vector<32x32xf32>
    %cst_78 = arith.constant 0.353553385 : f32
    %190 = vector.broadcast %cst_78 : f32 to vector<32x32xf32>
    %191 = arith.mulf %189, %190 : vector<32x32xf32>
    %192 = vector.extract_strided_slice %188 {offsets = [0, 32], sizes = [32, 32], strides = [1, 1]} : vector<32x96xf32> to vector<32x32xf32>
    %193 = vector.extract_strided_slice %188 {offsets = [0, 64], sizes = [32, 32], strides = [1, 1]} : vector<32x96xf32> to vector<32x32xf32>
    %c1_79 = arith.constant 1 : index
    %c0_80 = arith.constant 0 : index
    %c0_81 = arith.constant 0 : index
    %194 = vector.load %arg8[%c1_79, %c0_80, %c0_81] : memref<2x32x32xf32, #tpu.memory_space<vmem>>, vector<1x32x32xf32>
    %195 = vector.shape_cast %194 : vector<1x32x32xf32> to vector<32x32xf32>
    %196 = vector.extract_strided_slice %191 {offsets = [0, 0], sizes = [32, 8], strides = [1, 1]} : vector<32x32xf32> to vector<32x8xf32>
    %197 = vector.extract_strided_slice %192 {offsets = [0, 0], sizes = [32, 8], strides = [1, 1]} : vector<32x32xf32> to vector<32x8xf32>
    %198 = vector.extract_strided_slice %193 {offsets = [0, 0], sizes = [32, 8], strides = [1, 1]} : vector<32x32xf32> to vector<32x8xf32>
    "tpu.trace_start"() <{level = 10 : i32, message = "qd,kd->qk"}> : () -> ()
    %cst_82 = arith.constant dense<0.000000e+00> : vector<32x32xf32>
    %199 = tpu.matmul %196, %197, %cst_82 {dimension_numbers = #tpu.dot_dimension_numbers<[1], [1], [0], [0], [0, 0, 1, 0], [], []>} : vector<32x8xf32>, vector<32x8xf32>, vector<32x32xf32> -> vector<32x32xf32>
    "tpu.trace_stop"() : () -> ()
    %200 = arith.addf %199, %9 : vector<32x32xf32>
    %cst_83 = arith.constant dense<0xFF800000> : vector<32xf32>
    %201 = vector.multi_reduction <maximumf>, %200, %cst_83 [1] : vector<32x32xf32> to vector<32xf32>
    %202 = vector.shape_cast %201 : vector<32xf32> to vector<32x1xf32>
    %203 = vector.broadcast %202 : vector<32x1xf32> to vector<32x32xf32>
    %204 = arith.subf %200, %203 : vector<32x32xf32>
    %205 = math.exp %204 : vector<32x32xf32>
    %cst_84 = arith.constant dense<0.000000e+00> : vector<32xf32>
    %206 = vector.multi_reduction <add>, %205, %cst_84 [1] : vector<32x32xf32> to vector<32xf32>
    %207 = vector.shape_cast %206 : vector<32xf32> to vector<32x1xf32>
    %208 = tpu.reciprocal %207 {approx = true} : vector<32x1xf32> -> vector<32x1xf32>
    %209 = vector.broadcast %208 : vector<32x1xf32> to vector<32x32xf32>
    %210 = arith.mulf %205, %209 : vector<32x32xf32>
    %cst_85 = arith.constant dense<0.000000e+00> : vector<32x8xf32>
    %211 = tpu.matmul %210, %198, %cst_85 {dimension_numbers = #tpu.dot_dimension_numbers<[1], [0], [0], [1], [0, 0, 1, 1], [], []>} : vector<32x32xf32>, vector<32x8xf32>, vector<32x8xf32> -> vector<32x8xf32>
    %212 = vector.extract_strided_slice %195 {offsets = [0, 0], sizes = [8, 32], strides = [1, 1]} : vector<32x32xf32> to vector<8x32xf32>
    %cst_86 = arith.constant dense<0.000000e+00> : vector<32x32xf32>
    %213 = tpu.matmul %211, %212, %cst_86 {dimension_numbers = #tpu.dot_dimension_numbers<[1], [0], [0], [1], [0, 0, 1, 1], [], []>} : vector<32x8xf32>, vector<8x32xf32>, vector<32x32xf32> -> vector<32x32xf32>
    %214 = vector.extract_strided_slice %191 {offsets = [0, 8], sizes = [32, 8], strides = [1, 1]} : vector<32x32xf32> to vector<32x8xf32>
    %215 = vector.extract_strided_slice %192 {offsets = [0, 8], sizes = [32, 8], strides = [1, 1]} : vector<32x32xf32> to vector<32x8xf32>
    %216 = vector.extract_strided_slice %193 {offsets = [0, 8], sizes = [32, 8], strides = [1, 1]} : vector<32x32xf32> to vector<32x8xf32>
    "tpu.trace_start"() <{level = 10 : i32, message = "qd,kd->qk"}> : () -> ()
    %cst_87 = arith.constant dense<0.000000e+00> : vector<32x32xf32>
    %217 = tpu.matmul %214, %215, %cst_87 {dimension_numbers = #tpu.dot_dimension_numbers<[1], [1], [0], [0], [0, 0, 1, 0], [], []>} : vector<32x8xf32>, vector<32x8xf32>, vector<32x32xf32> -> vector<32x32xf32>
    "tpu.trace_stop"() : () -> ()
    %218 = arith.addf %217, %9 : vector<32x32xf32>
    %cst_88 = arith.constant dense<0xFF800000> : vector<32xf32>
    %219 = vector.multi_reduction <maximumf>, %218, %cst_88 [1] : vector<32x32xf32> to vector<32xf32>
    %220 = vector.shape_cast %219 : vector<32xf32> to vector<32x1xf32>
    %221 = vector.broadcast %220 : vector<32x1xf32> to vector<32x32xf32>
    %222 = arith.subf %218, %221 : vector<32x32xf32>
    %223 = math.exp %222 : vector<32x32xf32>
    %cst_89 = arith.constant dense<0.000000e+00> : vector<32xf32>
    %224 = vector.multi_reduction <add>, %223, %cst_89 [1] : vector<32x32xf32> to vector<32xf32>
    %225 = vector.shape_cast %224 : vector<32xf32> to vector<32x1xf32>
    %226 = tpu.reciprocal %225 {approx = true} : vector<32x1xf32> -> vector<32x1xf32>
    %227 = vector.broadcast %226 : vector<32x1xf32> to vector<32x32xf32>
    %228 = arith.mulf %223, %227 : vector<32x32xf32>
    %cst_90 = arith.constant dense<0.000000e+00> : vector<32x8xf32>
    %229 = tpu.matmul %228, %216, %cst_90 {dimension_numbers = #tpu.dot_dimension_numbers<[1], [0], [0], [1], [0, 0, 1, 1], [], []>} : vector<32x32xf32>, vector<32x8xf32>, vector<32x8xf32> -> vector<32x8xf32>
    %230 = vector.extract_strided_slice %195 {offsets = [8, 0], sizes = [8, 32], strides = [1, 1]} : vector<32x32xf32> to vector<8x32xf32>
    %cst_91 = arith.constant dense<0.000000e+00> : vector<32x32xf32>
    %231 = tpu.matmul %229, %230, %cst_91 {dimension_numbers = #tpu.dot_dimension_numbers<[1], [0], [0], [1], [0, 0, 1, 1], [], []>} : vector<32x8xf32>, vector<8x32xf32>, vector<32x32xf32> -> vector<32x32xf32>
    %232 = arith.addf %213, %231 : vector<32x32xf32>
    %233 = vector.extract_strided_slice %191 {offsets = [0, 16], sizes = [32, 8], strides = [1, 1]} : vector<32x32xf32> to vector<32x8xf32>
    %234 = vector.extract_strided_slice %192 {offsets = [0, 16], sizes = [32, 8], strides = [1, 1]} : vector<32x32xf32> to vector<32x8xf32>
    %235 = vector.extract_strided_slice %193 {offsets = [0, 16], sizes = [32, 8], strides = [1, 1]} : vector<32x32xf32> to vector<32x8xf32>
    "tpu.trace_start"() <{level = 10 : i32, message = "qd,kd->qk"}> : () -> ()
    %cst_92 = arith.constant dense<0.000000e+00> : vector<32x32xf32>
    %236 = tpu.matmul %233, %234, %cst_92 {dimension_numbers = #tpu.dot_dimension_numbers<[1], [1], [0], [0], [0, 0, 1, 0], [], []>} : vector<32x8xf32>, vector<32x8xf32>, vector<32x32xf32> -> vector<32x32xf32>
    "tpu.trace_stop"() : () -> ()
    %237 = arith.addf %236, %9 : vector<32x32xf32>
    %cst_93 = arith.constant dense<0xFF800000> : vector<32xf32>
    %238 = vector.multi_reduction <maximumf>, %237, %cst_93 [1] : vector<32x32xf32> to vector<32xf32>
    %239 = vector.shape_cast %238 : vector<32xf32> to vector<32x1xf32>
    %240 = vector.broadcast %239 : vector<32x1xf32> to vector<32x32xf32>
    %241 = arith.subf %237, %240 : vector<32x32xf32>
    %242 = math.exp %241 : vector<32x32xf32>
    %cst_94 = arith.constant dense<0.000000e+00> : vector<32xf32>
    %243 = vector.multi_reduction <add>, %242, %cst_94 [1] : vector<32x32xf32> to vector<32xf32>
    %244 = vector.shape_cast %243 : vector<32xf32> to vector<32x1xf32>
    %245 = tpu.reciprocal %244 {approx = true} : vector<32x1xf32> -> vector<32x1xf32>
    %246 = vector.broadcast %245 : vector<32x1xf32> to vector<32x32xf32>
    %247 = arith.mulf %242, %246 : vector<32x32xf32>
    %cst_95 = arith.constant dense<0.000000e+00> : vector<32x8xf32>
    %248 = tpu.matmul %247, %235, %cst_95 {dimension_numbers = #tpu.dot_dimension_numbers<[1], [0], [0], [1], [0, 0, 1, 1], [], []>} : vector<32x32xf32>, vector<32x8xf32>, vector<32x8xf32> -> vector<32x8xf32>
    %249 = vector.extract_strided_slice %195 {offsets = [16, 0], sizes = [8, 32], strides = [1, 1]} : vector<32x32xf32> to vector<8x32xf32>
    %cst_96 = arith.constant dense<0.000000e+00> : vector<32x32xf32>
    %250 = tpu.matmul %248, %249, %cst_96 {dimension_numbers = #tpu.dot_dimension_numbers<[1], [0], [0], [1], [0, 0, 1, 1], [], []>} : vector<32x8xf32>, vector<8x32xf32>, vector<32x32xf32> -> vector<32x32xf32>
    %251 = arith.addf %232, %250 : vector<32x32xf32>
    %252 = vector.extract_strided_slice %191 {offsets = [0, 24], sizes = [32, 8], strides = [1, 1]} : vector<32x32xf32> to vector<32x8xf32>
    %253 = vector.extract_strided_slice %192 {offsets = [0, 24], sizes = [32, 8], strides = [1, 1]} : vector<32x32xf32> to vector<32x8xf32>
    %254 = vector.extract_strided_slice %193 {offsets = [0, 24], sizes = [32, 8], strides = [1, 1]} : vector<32x32xf32> to vector<32x8xf32>
    "tpu.trace_start"() <{level = 10 : i32, message = "qd,kd->qk"}> : () -> ()
    %cst_97 = arith.constant dense<0.000000e+00> : vector<32x32xf32>
    %255 = tpu.matmul %252, %253, %cst_97 {dimension_numbers = #tpu.dot_dimension_numbers<[1], [1], [0], [0], [0, 0, 1, 0], [], []>} : vector<32x8xf32>, vector<32x8xf32>, vector<32x32xf32> -> vector<32x32xf32>
    "tpu.trace_stop"() : () -> ()
    %256 = arith.addf %255, %9 : vector<32x32xf32>
    %cst_98 = arith.constant dense<0xFF800000> : vector<32xf32>
    %257 = vector.multi_reduction <maximumf>, %256, %cst_98 [1] : vector<32x32xf32> to vector<32xf32>
    %258 = vector.shape_cast %257 : vector<32xf32> to vector<32x1xf32>
    %259 = vector.broadcast %258 : vector<32x1xf32> to vector<32x32xf32>
    %260 = arith.subf %256, %259 : vector<32x32xf32>
    %261 = math.exp %260 : vector<32x32xf32>
    %cst_99 = arith.constant dense<0.000000e+00> : vector<32xf32>
    %262 = vector.multi_reduction <add>, %261, %cst_99 [1] : vector<32x32xf32> to vector<32xf32>
    %263 = vector.shape_cast %262 : vector<32xf32> to vector<32x1xf32>
    %264 = tpu.reciprocal %263 {approx = true} : vector<32x1xf32> -> vector<32x1xf32>
    %265 = vector.broadcast %264 : vector<32x1xf32> to vector<32x32xf32>
    %266 = arith.mulf %261, %265 : vector<32x32xf32>
    %cst_100 = arith.constant dense<0.000000e+00> : vector<32x8xf32>
    %267 = tpu.matmul %266, %254, %cst_100 {dimension_numbers = #tpu.dot_dimension_numbers<[1], [0], [0], [1], [0, 0, 1, 1], [], []>} : vector<32x32xf32>, vector<32x8xf32>, vector<32x8xf32> -> vector<32x8xf32>
    %268 = vector.extract_strided_slice %195 {offsets = [24, 0], sizes = [8, 32], strides = [1, 1]} : vector<32x32xf32> to vector<8x32xf32>
    %cst_101 = arith.constant dense<0.000000e+00> : vector<32x32xf32>
    %269 = tpu.matmul %267, %268, %cst_101 {dimension_numbers = #tpu.dot_dimension_numbers<[1], [0], [0], [1], [0, 0, 1, 1], [], []>} : vector<32x8xf32>, vector<8x32xf32>, vector<32x32xf32> -> vector<32x32xf32>
    %270 = arith.addf %251, %269 : vector<32x32xf32>
    %c1_102 = arith.constant 1 : index
    %c0_103 = arith.constant 0 : index
    %271 = vector.load %arg9[%c1_102, %c0_103] : memref<2x32xf32, #tpu.memory_space<vmem>>, vector<1x32xf32>
    %272 = vector.shape_cast %271 : vector<1x32xf32> to vector<32xf32>
    %273 = vector.shape_cast %272 : vector<32xf32> to vector<1x32xf32>
    %274 = vector.broadcast %273 : vector<1x32xf32> to vector<32x32xf32>
    %275 = arith.addf %270, %274 : vector<32x32xf32>
    %276 = arith.addf %180, %275 : vector<32x32xf32>
    %c1_104 = arith.constant 1 : index
    %c0_105 = arith.constant 0 : index
    %277 = vector.load %arg10[%c1_104, %c0_105] : memref<2x32xf32, #tpu.memory_space<vmem>>, vector<1x32xf32>
    %278 = vector.shape_cast %277 : vector<1x32xf32> to vector<32xf32>
    %c1_106 = arith.constant 1 : index
    %c0_107 = arith.constant 0 : index
    %279 = vector.load %arg11[%c1_106, %c0_107] : memref<2x32xf32, #tpu.memory_space<vmem>>, vector<1x32xf32>
    %280 = vector.shape_cast %279 : vector<1x32xf32> to vector<32xf32>
    %cst_108 = arith.constant dense<0.000000e+00> : vector<32xf32>
    %281 = vector.multi_reduction <add>, %276, %cst_108 [1] : vector<32x32xf32> to vector<32xf32>
    %282 = vector.shape_cast %281 : vector<32xf32> to vector<32x1xf32>
    %cst_109 = arith.constant 3.200000e+01 : f32
    %283 = vector.broadcast %cst_109 : f32 to vector<32x1xf32>
    %284 = arith.divf %282, %283 : vector<32x1xf32>
    %285 = vector.broadcast %284 : vector<32x1xf32> to vector<32x32xf32>
    %286 = arith.subf %276, %285 : vector<32x32xf32>
    %287 = arith.mulf %286, %286 : vector<32x32xf32>
    %cst_110 = arith.constant dense<0.000000e+00> : vector<32xf32>
    %288 = vector.multi_reduction <add>, %287, %cst_110 [1] : vector<32x32xf32> to vector<32xf32>
    %289 = vector.shape_cast %288 : vector<32xf32> to vector<32x1xf32>
    %cst_111 = arith.constant 3.200000e+01 : f32
    %290 = vector.broadcast %cst_111 : f32 to vector<32x1xf32>
    %291 = arith.divf %289, %290 : vector<32x1xf32>
    %292 = vector.broadcast %284 : vector<32x1xf32> to vector<32x32xf32>
    %293 = arith.subf %276, %292 : vector<32x32xf32>
    %cst_112 = arith.constant 9.99999974E-6 : f32
    %294 = vector.broadcast %cst_112 : f32 to vector<32x1xf32>
    %295 = arith.addf %291, %294 : vector<32x1xf32>
    %296 = math.rsqrt %295 : vector<32x1xf32>
    %297 = vector.broadcast %296 : vector<32x1xf32> to vector<32x32xf32>
    %298 = arith.mulf %293, %297 : vector<32x32xf32>
    %299 = vector.shape_cast %278 : vector<32xf32> to vector<1x32xf32>
    %300 = vector.broadcast %299 : vector<1x32xf32> to vector<32x32xf32>
    %301 = arith.mulf %298, %300 : vector<32x32xf32>
    %302 = vector.shape_cast %280 : vector<32xf32> to vector<1x32xf32>
    %303 = vector.broadcast %302 : vector<1x32xf32> to vector<32x32xf32>
    %304 = arith.addf %301, %303 : vector<32x32xf32>
    %c1_113 = arith.constant 1 : index
    %c0_114 = arith.constant 0 : index
    %c0_115 = arith.constant 0 : index
    %305 = vector.load %arg12[%c1_113, %c0_114, %c0_115] : memref<2x32x64xf32, #tpu.memory_space<vmem>>, vector<1x32x64xf32>
    %306 = vector.shape_cast %305 : vector<1x32x64xf32> to vector<32x64xf32>
    %cst_116 = arith.constant dense<0.000000e+00> : vector<32x64xf32>
    %307 = tpu.matmul %304, %306, %cst_116 {dimension_numbers = #tpu.dot_dimension_numbers<[1], [0], [0], [1], [0, 0, 1, 1], [], []>} : vector<32x32xf32>, vector<32x64xf32>, vector<32x64xf32> -> vector<32x64xf32>
    %c1_117 = arith.constant 1 : index
    %c0_118 = arith.constant 0 : index
    %308 = vector.load %arg13[%c1_117, %c0_118] : memref<2x64xf32, #tpu.memory_space<vmem>>, vector<1x64xf32>
    %309 = vector.shape_cast %308 : vector<1x64xf32> to vector<64xf32>
    %310 = vector.shape_cast %309 : vector<64xf32> to vector<1x64xf32>
    %311 = vector.broadcast %310 : vector<1x64xf32> to vector<32x64xf32>
    %312 = arith.addf %307, %311 : vector<32x64xf32>
    %cst_119 = arith.constant 0.000000e+00 : f32
    %313 = vector.broadcast %cst_119 : f32 to vector<32x64xf32>
    %314 = arith.maximumf %312, %313 : vector<32x64xf32>
    %c1_120 = arith.constant 1 : index
    %c0_121 = arith.constant 0 : index
    %c0_122 = arith.constant 0 : index
    %315 = vector.load %arg14[%c1_120, %c0_121, %c0_122] : memref<2x64x32xf32, #tpu.memory_space<vmem>>, vector<1x64x32xf32>
    %316 = vector.shape_cast %315 : vector<1x64x32xf32> to vector<64x32xf32>
    %cst_123 = arith.constant dense<0.000000e+00> : vector<32x32xf32>
    %317 = tpu.matmul %314, %316, %cst_123 {dimension_numbers = #tpu.dot_dimension_numbers<[1], [0], [0], [1], [0, 0, 1, 1], [], []>} : vector<32x64xf32>, vector<64x32xf32>, vector<32x32xf32> -> vector<32x32xf32>
    %c1_124 = arith.constant 1 : index
    %c0_125 = arith.constant 0 : index
    %318 = vector.load %arg15[%c1_124, %c0_125] : memref<2x32xf32, #tpu.memory_space<vmem>>, vector<1x32xf32>
    %319 = vector.shape_cast %318 : vector<1x32xf32> to vector<32xf32>
    %320 = vector.shape_cast %319 : vector<32xf32> to vector<1x32xf32>
    %321 = vector.broadcast %320 : vector<1x32xf32> to vector<32x32xf32>
    %322 = arith.addf %317, %321 : vector<32x32xf32>
    %323 = arith.addf %304, %322 : vector<32x32xf32>
    %c1_126 = arith.constant 1 : index
    %c0_127 = arith.constant 0 : index
    %324 = vector.load %arg16[%c1_126, %c0_127] : memref<2x32xf32, #tpu.memory_space<vmem>>, vector<1x32xf32>
    %325 = vector.shape_cast %324 : vector<1x32xf32> to vector<32xf32>
    %c1_128 = arith.constant 1 : index
    %c0_129 = arith.constant 0 : index
    %326 = vector.load %arg17[%c1_128, %c0_129] : memref<2x32xf32, #tpu.memory_space<vmem>>, vector<1x32xf32>
    %327 = vector.shape_cast %326 : vector<1x32xf32> to vector<32xf32>
    %cst_130 = arith.constant dense<0.000000e+00> : vector<32xf32>
    %328 = vector.multi_reduction <add>, %323, %cst_130 [1] : vector<32x32xf32> to vector<32xf32>
    %329 = vector.shape_cast %328 : vector<32xf32> to vector<32x1xf32>
    %cst_131 = arith.constant 3.200000e+01 : f32
    %330 = vector.broadcast %cst_131 : f32 to vector<32x1xf32>
    %331 = arith.divf %329, %330 : vector<32x1xf32>
    %332 = vector.broadcast %331 : vector<32x1xf32> to vector<32x32xf32>
    %333 = arith.subf %323, %332 : vector<32x32xf32>
    %334 = arith.mulf %333, %333 : vector<32x32xf32>
    %cst_132 = arith.constant dense<0.000000e+00> : vector<32xf32>
    %335 = vector.multi_reduction <add>, %334, %cst_132 [1] : vector<32x32xf32> to vector<32xf32>
    %336 = vector.shape_cast %335 : vector<32xf32> to vector<32x1xf32>
    %cst_133 = arith.constant 3.200000e+01 : f32
    %337 = vector.broadcast %cst_133 : f32 to vector<32x1xf32>
    %338 = arith.divf %336, %337 : vector<32x1xf32>
    %339 = vector.broadcast %331 : vector<32x1xf32> to vector<32x32xf32>
    %340 = arith.subf %323, %339 : vector<32x32xf32>
    %cst_134 = arith.constant 9.99999974E-6 : f32
    %341 = vector.broadcast %cst_134 : f32 to vector<32x1xf32>
    %342 = arith.addf %338, %341 : vector<32x1xf32>
    %343 = math.rsqrt %342 : vector<32x1xf32>
    %344 = vector.broadcast %343 : vector<32x1xf32> to vector<32x32xf32>
    %345 = arith.mulf %340, %344 : vector<32x32xf32>
    %346 = vector.shape_cast %325 : vector<32xf32> to vector<1x32xf32>
    %347 = vector.broadcast %346 : vector<1x32xf32> to vector<32x32xf32>
    %348 = arith.mulf %345, %347 : vector<32x32xf32>
    %349 = vector.shape_cast %327 : vector<32xf32> to vector<1x32xf32>
    %350 = vector.broadcast %349 : vector<1x32xf32> to vector<32x32xf32>
    %351 = arith.addf %348, %350 : vector<32x32xf32>
    %c0_135 = arith.constant 0 : index
    %c0_136 = arith.constant 0 : index
    %352 = vector.load %arg18[%c0_135, %c0_136] : memref<128x384xf32, #tpu.memory_space<vmem>>, vector<128x384xf32>
    %353 = vector.extract_strided_slice %351 {offsets = [0, 0], sizes = [8, 32], strides = [1, 1]} : vector<32x32xf32> to vector<8x32xf32>
    %354 = vector.extract_strided_slice %352 {offsets = [0, 0], sizes = [32, 384], strides = [1, 1]} : vector<128x384xf32> to vector<32x384xf32>
    %cst_137 = arith.constant dense<0.000000e+00> : vector<8x384xf32>
    %355 = tpu.matmul %353, %354, %cst_137 {dimension_numbers = #tpu.dot_dimension_numbers<[1], [0], [0], [1], [0, 0, 1, 1], [], []>} : vector<8x32xf32>, vector<32x384xf32>, vector<8x384xf32> -> vector<8x384xf32>
    %356 = vector.extract_strided_slice %351 {offsets = [8, 0], sizes = [8, 32], strides = [1, 1]} : vector<32x32xf32> to vector<8x32xf32>
    %357 = vector.extract_strided_slice %352 {offsets = [32, 0], sizes = [32, 384], strides = [1, 1]} : vector<128x384xf32> to vector<32x384xf32>
    %cst_138 = arith.constant dense<0.000000e+00> : vector<8x384xf32>
    %358 = tpu.matmul %356, %357, %cst_138 {dimension_numbers = #tpu.dot_dimension_numbers<[1], [0], [0], [1], [0, 0, 1, 1], [], []>} : vector<8x32xf32>, vector<32x384xf32>, vector<8x384xf32> -> vector<8x384xf32>
    %359 = arith.addf %355, %358 : vector<8x384xf32>
    %360 = vector.extract_strided_slice %351 {offsets = [16, 0], sizes = [8, 32], strides = [1, 1]} : vector<32x32xf32> to vector<8x32xf32>
    %361 = vector.extract_strided_slice %352 {offsets = [64, 0], sizes = [32, 384], strides = [1, 1]} : vector<128x384xf32> to vector<32x384xf32>
    %cst_139 = arith.constant dense<0.000000e+00> : vector<8x384xf32>
    %362 = tpu.matmul %360, %361, %cst_139 {dimension_numbers = #tpu.dot_dimension_numbers<[1], [0], [0], [1], [0, 0, 1, 1], [], []>} : vector<8x32xf32>, vector<32x384xf32>, vector<8x384xf32> -> vector<8x384xf32>
    %363 = arith.addf %359, %362 : vector<8x384xf32>
    %364 = vector.extract_strided_slice %351 {offsets = [24, 0], sizes = [8, 32], strides = [1, 1]} : vector<32x32xf32> to vector<8x32xf32>
    %365 = vector.extract_strided_slice %352 {offsets = [96, 0], sizes = [32, 384], strides = [1, 1]} : vector<128x384xf32> to vector<32x384xf32>
    %cst_140 = arith.constant dense<0.000000e+00> : vector<8x384xf32>
    %366 = tpu.matmul %364, %365, %cst_140 {dimension_numbers = #tpu.dot_dimension_numbers<[1], [0], [0], [1], [0, 0, 1, 1], [], []>} : vector<8x32xf32>, vector<32x384xf32>, vector<8x384xf32> -> vector<8x384xf32>
    %367 = arith.addf %363, %366 : vector<8x384xf32>
    %368 = vector.extract_strided_slice %367 {offsets = [0, 0], sizes = [8, 128], strides = [1, 1]} : vector<8x384xf32> to vector<8x128xf32>
    %cst_141 = arith.constant 0.0883883461 : f32
    %369 = vector.broadcast %cst_141 : f32 to vector<8x128xf32>
    %370 = arith.mulf %368, %369 : vector<8x128xf32>
    %371 = vector.extract_strided_slice %367 {offsets = [0, 128], sizes = [8, 128], strides = [1, 1]} : vector<8x384xf32> to vector<8x128xf32>
    %372 = vector.extract_strided_slice %367 {offsets = [0, 256], sizes = [8, 128], strides = [1, 1]} : vector<8x384xf32> to vector<8x128xf32>
    "tpu.trace_start"() <{level = 10 : i32, message = "qm,km->qk"}> : () -> ()
    %cst_142 = arith.constant dense<0.000000e+00> : vector<8x8xf32>
    %373 = tpu.matmul %370, %371, %cst_142 {dimension_numbers = #tpu.dot_dimension_numbers<[1], [1], [0], [0], [0, 0, 1, 0], [], []>} : vector<8x128xf32>, vector<8x128xf32>, vector<8x8xf32> -> vector<8x8xf32>
    "tpu.trace_stop"() : () -> ()
    %cst_143 = arith.constant dense<0xFF800000> : vector<8xf32>
    %374 = vector.multi_reduction <maximumf>, %373, %cst_143 [1] : vector<8x8xf32> to vector<8xf32>
    %375 = vector.shape_cast %374 : vector<8xf32> to vector<8x1xf32>
    %376 = vector.broadcast %375 : vector<8x1xf32> to vector<8x8xf32>
    %377 = arith.subf %373, %376 : vector<8x8xf32>
    %378 = math.exp %377 : vector<8x8xf32>
    %cst_144 = arith.constant dense<0.000000e+00> : vector<8xf32>
    %379 = vector.multi_reduction <add>, %378, %cst_144 [1] : vector<8x8xf32> to vector<8xf32>
    %380 = vector.shape_cast %379 : vector<8xf32> to vector<8x1xf32>
    %381 = tpu.reciprocal %380 {approx = true} : vector<8x1xf32> -> vector<8x1xf32>
    %382 = vector.broadcast %381 : vector<8x1xf32> to vector<8x8xf32>
    %383 = arith.mulf %378, %382 : vector<8x8xf32>
    %cst_145 = arith.constant dense<0.000000e+00> : vector<8x128xf32>
    %384 = tpu.matmul %383, %372, %cst_145 {dimension_numbers = #tpu.dot_dimension_numbers<[1], [0], [0], [1], [0, 0, 1, 1], [], []>} : vector<8x8xf32>, vector<8x128xf32>, vector<8x128xf32> -> vector<8x128xf32>
    %c0_146 = arith.constant 0 : index
    %c0_147 = arith.constant 0 : index
    %385 = vector.load %arg19[%c0_146, %c0_147] : memref<128x1xf32, #tpu.memory_space<vmem>>, vector<128x1xf32>
    %cst_148 = arith.constant dense<0.000000e+00> : vector<8x1xf32>
    %386 = tpu.matmul %384, %385, %cst_148 {dimension_numbers = #tpu.dot_dimension_numbers<[1], [0], [0], [1], [0, 0, 1, 1], [], []>} : vector<8x128xf32>, vector<128x1xf32>, vector<8x1xf32> -> vector<8x1xf32>
    %c0_149 = arith.constant 0 : index
    %c0_150 = arith.constant 0 : index
    %387 = vector.load %arg20[%c0_149, %c0_150] : memref<1x1xf32, #tpu.memory_space<vmem>>, vector<1x1xf32>
    %388 = vector.broadcast %387 : vector<1x1xf32> to vector<8x1xf32>
    %389 = arith.addf %386, %388 : vector<8x1xf32>
    %390 = math.tanh %389 : vector<8x1xf32>
    %c0_151 = arith.constant 0 : index
    %c0_152 = arith.constant 0 : index
    %c0_153 = arith.constant 0 : index
    %391 = vector.load %arg21[%c0_151, %c0_152, %c0_153] : memref<1x8x1xf32, #tpu.memory_space<vmem>>, vector<1x8x1xf32>
    %392 = vector.shape_cast %391 : vector<1x8x1xf32> to vector<8x1xf32>
    %393 = vector.shape_cast %390 : vector<8x1xf32> to vector<1x8x1xf32>
    tpu.vector_store %arg21[%c0_151, %c0_152, %c0_153], %393 {strides = array<i32>} : memref<1x8x1xf32, #tpu.memory_space<vmem>>, vector<1x8x1xf32>,
    return
  }
  func.func @transform_0(%arg0: i32) -> (i32, i32, i32) {
    %c0_i32 = arith.constant 0 : i32
    %c0_i32_0 = arith.constant 0 : i32
    %c0_i32_1 = arith.constant 0 : i32
    return %arg0, %c0_i32, %c0_i32_0 : i32, i32, i32
  }
  func.func @transform_1(%arg0: i32) -> (i32, i32) {
    %c0_i32 = arith.constant 0 : i32
    %c0_i32_0 = arith.constant 0 : i32
    %c0_i32_1 = arith.constant 0 : i32
    return %c0_i32, %c0_i32_0 : i32, i32
  }
  func.func @transform_2(%arg0: i32) -> (i32, i32) {
    %c0_i32 = arith.constant 0 : i32
    %c0_i32_0 = arith.constant 0 : i32
    %c0_i32_1 = arith.constant 0 : i32
    return %c0_i32, %c0_i32_0 : i32, i32
  }
  func.func @transform_3(%arg0: i32) -> (i32, i32) {
    %c0_i32 = arith.constant 0 : i32
    %c0_i32_0 = arith.constant 0 : i32
    %c0_i32_1 = arith.constant 0 : i32
    return %c0_i32, %c0_i32_0 : i32, i32
  }
  func.func @transform_4(%arg0: i32) -> (i32, i32) {
    %c0_i32 = arith.constant 0 : i32
    %c0_i32_0 = arith.constant 0 : i32
    %c0_i32_1 = arith.constant 0 : i32
    return %c0_i32, %c0_i32_0 : i32, i32
  }
  func.func @transform_5(%arg0: i32) -> (i32, i32, i32) {
    %c0_i32 = arith.constant 0 : i32
    %c0_i32_0 = arith.constant 0 : i32
    %c0_i32_1 = arith.constant 0 : i32
    %c0_i32_2 = arith.constant 0 : i32
    return %c0_i32, %c0_i32_0, %c0_i32_1 : i32, i32, i32
  }
  func.func @transform_6(%arg0: i32) -> (i32, i32) {
    %c0_i32 = arith.constant 0 : i32
    %c0_i32_0 = arith.constant 0 : i32
    %c0_i32_1 = arith.constant 0 : i32
    return %c0_i32, %c0_i32_0 : i32, i32
  }
  func.func @transform_7(%arg0: i32) -> (i32, i32, i32) {
    %c0_i32 = arith.constant 0 : i32
    %c0_i32_0 = arith.constant 0 : i32
    %c0_i32_1 = arith.constant 0 : i32
    %c0_i32_2 = arith.constant 0 : i32
    return %c0_i32, %c0_i32_0, %c0_i32_1 : i32, i32, i32
  }
  func.func @transform_8(%arg0: i32) -> (i32, i32) {
    %c0_i32 = arith.constant 0 : i32
    %c0_i32_0 = arith.constant 0 : i32
    %c0_i32_1 = arith.constant 0 : i32
    return %c0_i32, %c0_i32_0 : i32, i32
  }
  func.func @transform_9(%arg0: i32) -> (i32, i32) {
    %c0_i32 = arith.constant 0 : i32
    %c0_i32_0 = arith.constant 0 : i32
    %c0_i32_1 = arith.constant 0 : i32
    return %c0_i32, %c0_i32_0 : i32, i32
  }
  func.func @transform_10(%arg0: i32) -> (i32, i32) {
    %c0_i32 = arith.constant 0 : i32
    %c0_i32_0 = arith.constant 0 : i32
    %c0_i32_1 = arith.constant 0 : i32
    return %c0_i32, %c0_i32_0 : i32, i32
  }
  func.func @transform_11(%arg0: i32) -> (i32, i32, i32) {
    %c0_i32 = arith.constant 0 : i32
    %c0_i32_0 = arith.constant 0 : i32
    %c0_i32_1 = arith.constant 0 : i32
    %c0_i32_2 = arith.constant 0 : i32
    return %c0_i32, %c0_i32_0, %c0_i32_1 : i32, i32, i32
  }
  func.func @transform_12(%arg0: i32) -> (i32, i32) {
    %c0_i32 = arith.constant 0 : i32
    %c0_i32_0 = arith.constant 0 : i32
    %c0_i32_1 = arith.constant 0 : i32
    return %c0_i32, %c0_i32_0 : i32, i32
  }
  func.func @transform_13(%arg0: i32) -> (i32, i32, i32) {
    %c0_i32 = arith.constant 0 : i32
    %c0_i32_0 = arith.constant 0 : i32
    %c0_i32_1 = arith.constant 0 : i32
    %c0_i32_2 = arith.constant 0 : i32
    return %c0_i32, %c0_i32_0, %c0_i32_1 : i32, i32, i32
  }
  func.func @transform_14(%arg0: i32) -> (i32, i32) {
    %c0_i32 = arith.constant 0 : i32
    %c0_i32_0 = arith.constant 0 : i32
    %c0_i32_1 = arith.constant 0 : i32
    return %c0_i32, %c0_i32_0 : i32, i32
  }
  func.func @transform_15(%arg0: i32) -> (i32, i32) {
    %c0_i32 = arith.constant 0 : i32
    %c0_i32_0 = arith.constant 0 : i32
    %c0_i32_1 = arith.constant 0 : i32
    return %c0_i32, %c0_i32_0 : i32, i32
  }
  func.func @transform_16(%arg0: i32) -> (i32, i32) {
    %c0_i32 = arith.constant 0 : i32
    %c0_i32_0 = arith.constant 0 : i32
    %c0_i32_1 = arith.constant 0 : i32
    return %c0_i32, %c0_i32_0 : i32, i32
  }
  func.func @transform_17(%arg0: i32) -> (i32, i32) {
    %c0_i32 = arith.constant 0 : i32
    %c0_i32_0 = arith.constant 0 : i32
    %c0_i32_1 = arith.constant 0 : i32
    return %c0_i32, %c0_i32_0 : i32, i32
  }
  func.func @transform_18(%arg0: i32) -> (i32, i32) {
    %c0_i32 = arith.constant 0 : i32
    %c0_i32_0 = arith.constant 0 : i32
    %c0_i32_1 = arith.constant 0 : i32
    return %c0_i32, %c0_i32_0 : i32, i32
  }
  func.func @transform_19(%arg0: i32) -> (i32, i32) {
    %c0_i32 = arith.constant 0 : i32
    %c0_i32_0 = arith.constant 0 : i32
    %c0_i32_1 = arith.constant 0 : i32
    return %c0_i32, %c0_i32_0 : i32, i32
  }
  func.func @transform_20(%arg0: i32) -> (i32, i32, i32) {
    %c0_i32 = arith.constant 0 : i32
    %c0_i32_0 = arith.constant 0 : i32
    %c0_i32_1 = arith.constant 0 : i32
    return %arg0, %c0_i32, %c0_i32_0 : i32, i32, i32
  }
}

</mosaic_0001>

<bundles_post_ra>
// kernel: neg.3
= control target key start
LH: loop header
LB: loop body
LE: loop exit
PB: predicated region body
PF: predicated region fallthrough
CT: control target
= control target key end

     0   :  { %s24_s0 = inlined_call_operand.vmem [shape: f32[2,8], index: 0, kind: input, shape index: {}]   ;;  %s25_s1 = inlined_call_operand.vmem [shape: f32[2,8], index: 1, kind: output, shape index: {}]  }
   0x1   :  { %v2_v0 = vld [vmem:[%s24_s0] sm:$0xff] }
   0x2   :  { %v5_v1 = vxor.u32 2147483648, %v2_v0 }
   0x4   :  { %7 = vst [vmem:[%s25_s1] sm:$0xff] %v5_v1 }

// kernel: alpha_portfolio_forward.1
= control target key start
LH: loop header
LB: loop body
LE: loop exit
PB: predicated region body
PF: predicated region fallthrough
CT: control target
= control target key end

     0   :  { %s8342_s0 = inlined_call_operand.vmem [shape: f32[2,32,8], index: 0, kind: input, shape index: {}]   ;;  %s8343_s1 = inlined_call_operand.vmem [shape: f32[32,32], index: 1, kind: input, shape index: {}]   ;;  %s8344_s2 = inlined_call_operand.vmem [shape: f32[8,32], index: 2, kind: input, shape index: {}]   ;;  %s8345_s3 = inlined_call_operand.vmem [shape: f32[1,32], index: 3, kind: input, shape index: {}]   ;;  %s8346_s4 = inlined_call_operand.vmem [shape: f32[32,32], index: 4, kind: input, shape index: {}]   ;;  %s8347_s5 = inlined_call_operand.vmem [shape: f32[2,32,96], index: 5, kind: input, shape index: {}]   ;;  %s8348_s6 = inlined_call_operand.vmem [shape: f32[2,96], index: 6, kind: input, shape index: {}]   ;;  %s8349_s7 = inlined_call_operand.hbm [shape: f32[2,32,32], index: 7, kind: input, shape index: {}]   ;;  %s8350_s8 = inlined_call_operand.vmem [shape: f32[2,32], index: 8, kind: input, shape index: {}]   ;;  %s8351_s9 = inlined_call_operand.vmem [shape: f32[2,32], index: 9, kind: input, shape index: {}]   ;;  %s8352_s10 = inlined_call_operand.vmem [shape: f32[2,32], index: 10, kind: input, shape index: {}]   ;;  %s8353_s11 = inlined_call_operand.hbm [shape: f32[2,32,64], index: 11, kind: input, shape index: {}]   ;;  %s8354_s12 = inlined_call_operand.vmem [shape: f32[2,64], index: 12, kind: input, shape index: {}]   ;;  %s8355_s13 = inlined_call_operand.vmem [shape: f32[2,64,32], index: 13, kind: input, shape index: {}]   ;;  %s8356_s14 = inlined_call_operand.vmem [shape: f32[2,32], index: 14, kind: input, shape index: {}]   ;;  %s8357_s15 = inlined_call_operand.vmem [shape: f32[2,32], index: 15, kind: input, shape index: {}]   ;;  %s8358_s16 = inlined_call_operand.hbm [shape: f32[2,32], index: 16, kind: input, shape index: {}]   ;;  %s8359_s17 = inlined_call_operand.vmem [shape: f32[128,384], index: 17, kind: input, shape index: {}]   ;;  %s8360_s18 = inlined_call_operand.vmem [shape: f32[128,1], index: 18, kind: input, shape index: {}]   ;;  %s8361_s19 = inlined_call_operand.<no memory space> [shape: f32[1,1], index: 19, kind: input, shape index: {}]   ;;  %s8362_s20 = inlined_call_operand.vmem [shape: f32[2,8,1], index: 20, kind: output, shape index: {}]  }
   0x1   :  { %8379 = sst [smem:[#allocation10_spill]] %s8342_s0  ;;  %v25_v0 = vstv %s8361_s19 }
   0x2   :  { %8380 = sst [smem:[#allocation11_spill]] %s8343_s1  ;;  %26 = vst [vmem:[#allocation2] sm:$0x1] %v25_v0 }
   0x3   :  { %8381 = sst [smem:[#allocation12_spill]] %s8344_s2 }
   0x4   :  { %8382 = sst [smem:[#allocation13_spill]] %s8345_s3 }
   0x5   :  { %8383 = sst [smem:[#allocation14_spill]] %s8346_s4 }
   0x6   :  { %27 = vsyncpa [#allocation4], 0 }
   0x7   :  { %28 = vsyncpa [#allocation6], 0  ;;  %s7111_s23 = smov 0  }
   0x8 LB: > { %s7117_s24 = sadd.s32 4294967295, %s6983_s23   ;;  %p5702_p0 = scmp.ge.s32.totalorder %s6983_s23, 1  ;;  %s6983_s23 = sphi %s7111_s23, %s34_s23  }
   0x9   : > { %p490_p1 = scmp.lt.s32.totalorder %s6983_s23, 3  ;;  %p6689_p2 = scmp.eq.s32.totalorder %s7117_s24, 0 }
   0xa   : > { %s6985_s2 = smov [#allocation5]   ;;  %s6986_s3 = smov [#allocation3]  }
   0xb   : > { %p7122_p3 = pnand %p5702_p0, %p490_p1  ;;  %s542_s25 = sshll.u32 %s6985_s2, 4  ;;  %s543_s25 = int_to_ptr.vmem [resolvable:$true] %s542_s25 }
   0xc   : > { %s520_s26 = sshll.u32 %s6986_s3, 4  ;;  %s6987_s28 = smov [#allocation7]   ;;  %s521_s26 = int_to_ptr.vmem [resolvable:$true] %s520_s26 }
   0xd   : > { %p6679_p4 = pneg %p7122_p3  ;;  %s568_s4 = sshll.u32 %s6987_s28, 4  ;;  %s7134_s4 = int_to_ptr.vmem [resolvable:$true] %s568_s4 }
   0xe   : > { %s6902_s29 = scalar_lea.vmem %s543_s25, 1024  ;;  %p6910_p10 = scmp.lt.s32.totalorder %s543_s25, %s543_s25 }
   0xf   : > { %p7130_p5 = pnand %p6689_p2, %p6679_p4  ;;  %p6903_p7 = scmp.ne.s32.totalorder %s543_s25, %s6902_s29 }
  0x10   : > { %p6911_p11 = scmp.lt.s32.totalorder %s6902_s29, %s6902_s29 }
  0x11   : > { %p6893_p6 = pneg %p7130_p5 }
  0x12   : > { %p6912_p12 = por %p6911_p11, %p6910_p10 }
  0x13   : > { %p6905_p8 = pnand %p6903_p7, %p6893_p6 }
  0x15   : > { %p6906_p9 = pneg %p6905_p8 }
  0x17   : > { %p6913_p13 = pnand %p6912_p12, %p6906_p9 }
  0x19   : > { %6916 = shalt.err (!%p6913_p13)
}
  0x1a   : > { %s6988_s30 = smov 128   ;;  %s6989_s0 = smov 8  }
  0x1b   : > { %6685 = dma.hbm_to_vmem [thread:$0]  (!%p7130_p5), %s8353_s11, 1024, %s543_s25, [#allocation6], %s6988_s30, %s6988_s30, %s6989_s0  }
  0x1c   : > { %s6928_s22 = scalar_lea.vmem %s521_s26, 1024  ;;  %p6936_p7 = scmp.lt.s32.totalorder %s521_s26, %s521_s26 }
  0x1d   : > { %p6929_p0 = scmp.ne.s32.totalorder %s521_s26, %s6928_s22  ;;  %p6937_p8 = scmp.lt.s32.totalorder %s6928_s22, %s6928_s22 }
  0x1f   : > { %p6931_p1 = pnand %p6929_p0, %p6893_p6  ;;  %p6938_p10 = por %p6937_p8, %p6936_p7 }
  0x21   : > { %p6932_p4 = pneg %p6931_p1 }
  0x23   : > { %p6939_p9 = pnand %p6938_p10, %p6932_p4 }
  0x25   : > { %6942 = shalt.err (!%p6939_p9)
}
  0x26   : > { %6682 = dma.hbm_to_vmem [thread:$0]  (!%p7130_p5), %s8349_s7, 1024, %s521_s26, [#allocation4], %s6988_s30, %s6988_s30, %s6989_s0  }
  0x27   : > { %s6954_s25 = scalar_lea.vmem %s7134_s4, 32  ;;  %p6962_p0 = scmp.lt.s32.totalorder %s7134_s4, %s7134_s4 }
  0x28   : > { %p6955_p11 = scmp.ne.s32.totalorder %s7134_s4, %s6954_s25  ;;  %p6963_p1 = scmp.lt.s32.totalorder %s6954_s25, %s6954_s25 }
  0x2a   : > { %p6957_p12 = pnand %p6955_p11, %p6893_p6  ;;  %p6964_p4 = por %p6963_p1, %p6962_p0 }
  0x2c   : > { %p6958_p13 = pneg %p6957_p12 }
  0x2e   : > { %p6965_p7 = pnand %p6964_p4, %p6958_p13 }
  0x30   : > { %6968 = shalt.err (!%p6965_p7)
}
  0x31   : > { %6688 = dma.hbm_to_vmem [thread:$0]  (!%p7130_p5), %s8358_s16, 32, %s7134_s4, [#allocation6]  }
  0x32   : > { %598 = sbr.rel (%p7122_p3) target bundleno = 8548 (0x2164), region = 100 }
  0x37   : > { %6974 = dma.done.wait (%p6689_p2), [#allocation4], 1024  }
  0x38   : > { %6976 = vsyncadd (%p6689_p2), [#allocation4], 4294966272 }
  0x39   : > { %6978 = dma.done.wait (%p6689_p2), [#allocation6], 1056  }
  0x3a   : > { %6980 = vsyncadd (%p6689_p2), [#allocation6], 4294966240  ;;  %p663_p6 = scmp.lt.s32.totalorder %s7117_s24, 1  ;;  %s8386_s4 = sld [smem:[#allocation10_spill]]  ;;  %vm684_vm0 = vcmask 64512   ;;  %v797_v6 = vld [vmem:[%s8347_s5 + $0x18] sm:$0xff] }
  0x3b   : > { %s8387_s1 = sld [smem:[#allocation12_spill]]  ;;  %6190 = vmatprep.subr.mxu1 %v797_v6  ;;  %v796_v7 = vld [vmem:[%s8347_s5 + $0x10] sm:$0xff]  ;;  %v795_v8 = vld [vmem:[%s8347_s5 + $0x8] sm:$0xff]  ;;  %v794_v9 = vld [vmem:[%s8347_s5] sm:$0xff]  ;;  %vm803_vm1 = vcmask 261120   ;;  %s6990_s27 = smov 96  }
  0x3c   : > { %s8399_s24 = smov (!%p663_p6, %s7117_s24), 1  ;;  %6191 = vmatpush3.msra.mxu1 %v797_v6  ;;  %v5719_v27 = vld [vmem:[%s8348_s6] ss:$0 sm:$0xff]  ;;  %s8390_s22 = sld [smem:[#allocation11_spill]]  ;;  %vm2592_vm2 = vcmask 523264   ;;  %vm7002_vm3 = vmmov 0  }
  0x3d   : > { %s5911_s19 = sshll.u32 %s8399_s24, 5  ;;  %6192 = vmatprep.subr.mxu1 %v796_v7  ;;  %s8377_s26 = smov 56   ;;  %vm5614_vm4 = vcmask 7168  }
  0x3e   : > { %6193 = vmatpush3.msra.mxu1 %v796_v7  ;;  %s8375_s0 = smov 80   ;;  %s8373_s21 = smov 112  }
  0x3f   : > { %6194 = vmatprep.subr.mxu1 %v795_v8  ;;  %s6996_s2 = smov 64   ;;  %s8371_s3 = smov 72  }
  0x40   : > { %s667_s30 = scalar_lea.vmem %s8386_s4, %s5911_s19  ;;  %6195 = vmatpush3.msra.mxu1 %v795_v8  ;;  %s6991_s4 = smov 88  }
  0x41   : > { %v676_v1 = vld [vmem:[%s8387_s1] sm:$0xff]  ;;  %v673_v3 = vld [vmem:[%s667_s30 + $0x8] sm:$0xff]  ;;  %v674_v4 = vld [vmem:[%s667_s30 + $0x10] sm:$0xff]  ;;  %6196 = vmatprep.subr.mxu1 %v794_v9  ;;  %s8389_s1 = sld [smem:[#allocation14_spill]]  ;;  %s8369_s25 = smov 104  }
  0x42   : > { %v672_v2 = vld [vmem:[%s667_s30] sm:$0xff]  ;;  %6182 = vmatprep.subr.mxu0 %v676_v1  ;;  %v675_v5 = vld [vmem:[%s667_s30 + $0x18] sm:$0xff]  ;;  %6197 = vmatpush3.msra.mxu1 %v794_v9  ;;  %s8388_s30 = sld [smem:[#allocation13_spill]]  ;;  %v7321_v56 = vld [vmem:[%s8390_s22 + $0x8] sm:$0xff]  ;;  %s8367_s28 = smov 48  }
  0x43   : > { %6184 = vmatprep.mubr.msk.f32.mxu0 %vm684_vm0, %v672_v2  ;;  %6183 = vmatpush3.msra.mxu0 %v676_v1  ;;  %v7327_v59 = vld [vmem:[%s8390_s22] sm:$0xff]  ;;  %v7335_v1 = vld [vmem:[%s8390_s22 + $0x10] sm:$0xff]  ;;  %s8365_s29 = smov 40  }
  0x44   : > { %6185 = vmatmul.mubr.msk.f32.vlgmr.msra.gmra.mxu0 %vm684_vm0, %v673_v3 }
  0x45   : > { %6187 = vmatprep.mubr.msk.f32.mxu0 %vm684_vm0, %v674_v4  ;;  %v7341_v4 = vld [vmem:[%s8390_s22 + $0x18] sm:$0xff] }
  0x47   : > { %v782_v14 = vld [vmem:[%s8389_s1] sm:$0xff]  ;;  %v783_v15 = vld [vmem:[%s8389_s1 + $0x8] sm:$0xff]  ;;  %v784_v22 = vld [vmem:[%s8389_s1 + $0x10] sm:$0xff] }
  0x48   : > { %6188 = vmatmul.mubr.msk.f32.gmra.mxu0 %vm684_vm0, %v675_v5  ;;  %v5714_v10 = vld [vmem:[%s8388_s30] ss:$0 sm:$0xff]  ;;  %v785_v23 = vld [vmem:[%s8389_s1 + $0x18] sm:$0xff]  ;;  %s6992_s30 = smov 120  }
 0x104   : > { %v6186_v11 = vpop.f32.mrf.mxu0 }
 0x105   : > { %v769_v12 = vadd.f32 %v6186_v11, %v5714_v10 }
 0x106   : > { %v763_v13 = vpop.f32.mrf.mxu0 }
 0x107   : > { %v764_v16 = vadd.f32 %v5714_v10, %v763_v13  ;;  %v7215_v19 = vadd.f32 %v783_v15, %v769_v12 }
 0x108   : > { %v6189_v17 = vpop.f32.mrf.mxu0 }
 0x109   : > { %v7213_v18 = vadd.f32 %v782_v14, %v764_v16  ;;  %v779_v20 = vadd.f32 %v6189_v17, %v5714_v10 }
 0x10a   : > { %v773_v21 = vpop.f32.mrf.mxu0 }
 0x10b   : > { %v774_v24 = vadd.f32 %v5714_v10, %v773_v21  ;;  %6198 = vmatprep.mubr.msk.f32.mxu1 %vm803_vm1, %v7213_v18  ;;  %v7229_v26 = vadd.f32 %v785_v23, %v779_v20 }
 0x10c   : > { %6199 = vmatmul.mubr.msk.f32.vlgmr.msra.gmra.mxu1 %vm803_vm1, %v7215_v19 }
 0x10d   : > { %v7227_v25 = vadd.f32 %v784_v22, %v774_v24 }
 0x10f   : > { %6201 = vmatprep.mubr.msk.f32.mxu1 %vm803_vm1, %v7227_v25 }
 0x110   : > { %6202 = vmatmul.mubr.msk.f32.gmra.mxu1 %vm803_vm1, %v7229_v26 }
 0x1cc   : > { %v6200_v28 = vpop.f32.mrf.mxu1 }
 0x1cd   : > { %v7238_v29 = vadd.f32 %v6200_v28, %v5719_v27 }
 0x1ce   : > { %v882_v30 = vpop.f32.mrf.mxu1 }
 0x1cf   : > { %v7240_v31 = vadd.f32 %v5719_v27, %v882_v30  ;;  %915 = vrot.lane.b32.xlu1 %v7238_v29, %s6990_s27  ;;  %v7266_v37 = vmul.f32 0.35355338, %v7238_v29 }
 0x1d0   : > { %v6203_v32 = vpop.f32.mrf.mxu1 }
 0x1d1   : > { %v7244_v33 = vadd.f32 %v6203_v32, %v5719_v27  ;;  %v7247_v34 = vmul.f32 0.35355338, %v7240_v31 }
 0x1d2   : > { %v892_v35 = vpop.f32.mrf.mxu1 }
 0x1d3   : > { %919 = vrot.lane.b32.xlu0 %v7244_v33, %s6990_s27  ;;  %913 = vrot.lane.b32.xlu1 %v7240_v31, %s6990_s27  ;;  %v7255_v36 = vadd.f32 %v5719_v27, %v892_v35  ;;  %v7273_v38 = vmul.f32 0.35355338, %v7244_v33 }
 0x1d4   : > { %6212 = vmatprep.mubr.msk.f32.mxu0 %vm684_vm0, %v7247_v34 }
 0x1d5   : > { %v7280_v39 = vmul.f32 0.35355338, %v7255_v36 }
 0x1d7   : > { %917 = vrot.lane.b32.xlu0 %v7255_v36, %s6990_s27  ;;  %1191 = vrot.lane.b32.xlu1 %v7255_v36, %s6991_s4 }
 0x1db   : > { %1193 = vrot.lane.b32.xlu0 %v7244_v33, %s6991_s4  ;;  %1187 = vrot.lane.b32.xlu1 %v7240_v31, %s6991_s4 }
 0x1df   : > { %1189 = vrot.lane.b32.xlu0 %v7238_v29, %s6991_s4  ;;  %1181 = vrot.lane.b32.xlu1 %v7266_v37, %s6992_s30 }
 0x1e3   : > { %1185 = vrot.lane.b32.xlu1 %v7273_v38, %s6992_s30  ;;  %1179 = vrot.lane.b32.xlu0 %v7247_v34, %s6992_s30 }
 0x1e7   : > { %1183 = vrot.lane.b32.xlu0 %v7280_v39, %s6992_s30 }
 0x241   : > { %v916_v41 = vpop.permute.xlu1 %915 }
 0x245   : > { %v920_v40 = vpop.permute.xlu0 %919  ;;  %v914_v44 = vpop.permute.xlu1 %913 }
 0x246   : > { %6204 = vmatprep.subr.msk.mxu0 %vm684_vm0, %v920_v40 }
 0x247   : > { %6205 = vmatpush3.xpose.msk.msra.mxu0 %vm684_vm0, %v920_v40 }
 0x249   : > { %v918_v42 = vpop.permute.xlu0 %917  ;;  %v1192_v46 = vpop.permute.xlu1 %1191 }
 0x24a   : > { %6206 = vmatprep.subr.msk.mxu0 %vm684_vm0, %v918_v42 }
 0x24b   : > { %6207 = vmatpush3.xpose.msk.msra.mxu0 %vm684_vm0, %v918_v42 }
 0x24c   : > { %6208 = vmatprep.subr.msk.mxu0 %vm684_vm0, %v916_v41 }
 0x24d   : > { %v1194_v43 = vpop.permute.xlu0 %1193  ;;  %v1188_v48 = vpop.permute.xlu1 %1187 }
 0x24f   : > { %6209 = vmatpush3.xpose.msk.msra.mxu0 %vm684_vm0, %v916_v41 }
 0x250   : > { %6210 = vmatprep.subr.msk.mxu0 %vm684_vm0, %v914_v44 }
 0x251   : > { %v1190_v45 = vpop.permute.xlu0 %1189  ;;  %v1182_v49 = vpop.permute.xlu1 %1181 }
 0x253   : > { %6211 = vmatpush3.xpose.msk.msra.mxu0 %vm684_vm0, %v914_v44 }
 0x254   : > { %6232 = vmatprep.subr.msk.mxu0 %vm684_vm0, %v1194_v43 }
 0x255   : > { %v1180_v47 = vpop.permute.xlu0 %1179  ;;  %v1186_v51 = vpop.permute.xlu1 %1185 }
 0x256   : > { %6213 = vmatmul.mubr.msk.f32.vlgmr.msra.gmra.mxu0 %vm684_vm0, %v7266_v37 }
 0x257   : > { %6215 = vmatprep.mubr.msk.f32.mxu0 %vm684_vm0, %v7280_v39  ;;  %6233 = vmatpush3.xpose.msk.msra.mxu0 %vm684_vm0, %v1194_v43 }
 0x258   : > { %6234 = vmatprep.subr.msk.mxu0 %vm684_vm0, %v1192_v46 }
 0x259   : > { %v1184_v50 = vpop.permute.xlu0 %1183 }
 0x25a   : > { %6216 = vmatmul.mubr.msk.f32.gmra.mxu0 %vm684_vm0, %v7273_v38 }
 0x25b   : > { %6235 = vmatpush3.xpose.msk.msra.mxu0 %vm684_vm0, %v1192_v46  ;;  %6240 = vmatprep.mubr.msk.f32.mxu0 %vm684_vm0, %v1180_v47 }
 0x25c   : > { %6236 = vmatprep.subr.msk.mxu0 %vm684_vm0, %v1190_v45 }
 0x25f   : > { %6237 = vmatpush3.xpose.msk.msra.mxu0 %vm684_vm0, %v1190_v45 }
 0x260   : > { %6238 = vmatprep.subr.msk.mxu0 %vm684_vm0, %v1188_v48 }
 0x263   : > { %6239 = vmatpush3.xpose.msk.msra.mxu0 %vm684_vm0, %v1188_v48 }
 0x266   : > { %6241 = vmatmul.mubr.msk.f32.vlgmr.msra.gmra.mxu0 %vm684_vm0, %v1182_v49 }
 0x267   : > { %6243 = vmatprep.mubr.msk.f32.mxu0 %vm684_vm0, %v1184_v50 }
 0x26a   : > { %6244 = vmatmul.mubr.msk.f32.gmra.mxu0 %vm684_vm0, %v1186_v51 }
 0x316   : > { %v7310_v52 = vpop.f32.mrf.mxu0 }
 0x317   : > { %v7391_v47 = vadd.f32 %v7310_v52, %v7321_v56 }
 0x318   : > { %v7312_v53 = vpop.f32.mrf.mxu0 }
 0x319   : > { %v1008_v41 = vadd.f32 %v7312_v53, %v7327_v59  ;;  %v1029_v48 = vsel %vm803_vm1, %v7391_v47, -inf }
 0x31a   : > { %v7314_v54 = vpop.f32.mrf.mxu0 }
 0x31b   : > { %v1026_v43 = vsel %vm803_vm1, %v1008_v41, -inf  ;;  %v7380_v44 = vadd.f32 %v7314_v54, %v7341_v4 }
 0x31c   : > { %v7316_v55 = vpop.f32.mrf.mxu0 }
 0x31d   : > { %v1018_v42 = vadd.f32 %v7316_v55, %v7335_v1  ;;  %v1035_v46 = vsel %vm803_vm1, %v7380_v44, -inf }
 0x31f   : > { %v1032_v45 = vsel %vm803_vm1, %v1018_v42, -inf }
 0x326   : > { %v6242_v57 = vpop.f32.mrf.mxu0 }
 0x327   : > { %v1283_v58 = vadd.f32 %v6242_v57, %v7321_v56 }
 0x328   : > { %v1277_v60 = vpop.f32.mrf.mxu0 }
 0x329   : > { %v1278_v61 = vadd.f32 %v1277_v60, %v7327_v59  ;;  %v1299_v62 = vsel %vm803_vm1, %v1283_v58, -inf }
 0x32a   : > { %1300 = vmax.xlane.f32.xlu1 %v1299_v62  ;;  %v6245_v63 = vpop.f32.mrf.mxu0  ;;  %v906_v62 = vld [vmem:[#allocation3 + $0x8] sm:$0xff] }
 0x32b   : > { %v1296_v0 = vsel %vm803_vm1, %v1278_v61, -inf  ;;  %v1293_v5 = vadd.f32 %v6245_v63, %v7341_v4 }
 0x32c   : > { %v1287_v2 = vpop.f32.mrf.mxu0  ;;  %1297 = vmax.xlane.f32.xlu0 %v1296_v0 }
 0x32d   : > { %v1288_v3 = vadd.f32 %v1287_v2, %v7335_v1  ;;  %v1305_v7 = vsel %vm803_vm1, %v1293_v5, -inf }
 0x32f   : > { %v1302_v6 = vsel %vm803_vm1, %v1288_v3, -inf }
 0x330   : > { %1303 = vmax.xlane.f32.xlu0 %v1302_v6 }
 0x334   : > { %1306 = vmax.xlane.f32.xlu0 %v1305_v7 }
 0x33b   : > { %1346 = vrot.lane.b32.xlu1 %v7244_v33, %s8377_s26 }
 0x3b3   : > { %v1301_v8 = vpop.xlane.xlu1 %1300 }
 0x3b4   : > { %v1309_v9 = vsub.f32 %v1283_v58, %v1301_v8 }
 0x3b5   : > { %v1298_v10 = vpop.xlane.xlu0 %1297 }
 0x3b6   : > { %v1314_v11 = vmul.f32 1.442695, %v1309_v9  ;;  %v1308_v12 = vsub.f32 %v1278_v61, %v1298_v10 }
 0x3b7   : > { %v1347_v13 = vpop.permute.xlu1 %1346 }
 0x3b8   : > { %6721 = vpow2.f32 %v1314_v11  ;;  %v1312_v14 = vmul.f32 1.442695, %v1308_v12  ;;  %6246 = vmatprep.subr.mxu0 %v1347_v13 }
 0x3b9   : > { %6247 = vmatpush3.msra.mxu0 %v1347_v13  ;;  %v1304_v15 = vpop.xlane.xlu0 %1303 }
 0x3ba   : > { %6723 = vpow2.f32 %v1312_v14  ;;  %v1310_v30 = vsub.f32 %v1288_v3, %v1304_v15 }
 0x3bc   : > { %v1316_v32 = vmul.f32 1.442695, %v1310_v30 }
 0x3bd   : > { %v1307_v16 = vpop.xlane.xlu0 %1306 }
 0x3be   : > { %v1311_v17 = vsub.f32 %v1293_v5, %v1307_v16 }
 0x3c0   : > { %v1318_v20 = vmul.f32 1.442695, %v1311_v17 }
 0x3c2   : > { %6725 = vpow2.f32 %v1318_v20 }
 0x3c3   : > { %6727 = vpow2.f32 %v1316_v32 }
 0x3c5   : > { %v6722_v21 = vpop.eup %6721 }
 0x3c6   : > { %v1323_v22 = vsel %vm803_vm1, %v6722_v21, 0.0 }
 0x3c7   : > { %v6724_v23 = vpop.eup %6723  ;;  %1324 = vadd.xlane.f32.xlu0 %v1323_v22 }
 0x3c8   : > { %v1320_v24 = vsel %vm803_vm1, %v6724_v23, 0.0 }
 0x3c9   : > { %1321 = vadd.xlane.f32.xlu1 %v1320_v24 }
 0x3cf   : > { %v7350_v27 = vpop.eup %6725 }
 0x3d0   : > { %v1329_v28 = vsel %vm803_vm1, %v7350_v27, 0.0  ;;  %v6728_v35 = vpop.eup %6727 }
 0x3d1   : > { %1330 = vadd.xlane.f32.xlu0 %v1329_v28  ;;  %v1326_v40 = vsel %vm803_vm1, %v6728_v35, 0.0 }
 0x3da   : > { %1342 = vrot.lane.b32.xlu1 %v7238_v29, %s8377_s26 }
 0x3e7   : > { %1344 = vrot.lane.b32.xlu0 %v7255_v36, %s8377_s26 }
 0x3eb   : > { %1657 = vrot.lane.b32.xlu0 %v7244_v33, %s8375_s0 }
 0x3ef   : > { %1653 = vrot.lane.b32.xlu0 %v7238_v29, %s8375_s0 }
 0x3f3   : > { %1643 = vrot.lane.b32.xlu0 %v7247_v34, %s8373_s21 }
 0x3f7   : > { %1647 = vrot.lane.b32.xlu0 %v7280_v39, %s8373_s21 }
 0x3fe   : > { %1327 = vadd.xlane.f32.xlu1 %v1326_v40 }
 0x40f   : > { %1340 = vrot.lane.b32.xlu1 %v7240_v31, %s8377_s26 }
 0x413   : > { %1655 = vrot.lane.b32.xlu1 %v7255_v36, %s8375_s0 }
 0x416   : > { %1027 = vmax.xlane.f32.xlu0 %v1026_v43 }
 0x417   : > { %1651 = vrot.lane.b32.xlu1 %v7240_v31, %s8375_s0 }
 0x41a   : > { %1033 = vmax.xlane.f32.xlu0 %v1032_v45 }
 0x41b   : > { %1645 = vrot.lane.b32.xlu1 %v7266_v37, %s8373_s21 }
 0x41e   : > { %1036 = vmax.xlane.f32.xlu0 %v1035_v46 }
 0x41f   : > { %1649 = vrot.lane.b32.xlu1 %v7273_v38, %s8373_s21  ;;  %s8393_s21 = smov 112  }
 0x443   : > { %1030 = vmax.xlane.f32.xlu1 %v1029_v48 }
 0x450   : > { %v1325_v50 = vpop.xlane.xlu0 %1324 }
 0x452   : > { %v1322_v49 = vpop.xlane.xlu1 %1321 }
 0x453   : > { %6729 = vrcp.f32 %v1322_v49 }
 0x454   : > { %6731 = vrcp.f32 %v1325_v50 }
 0x456   : > { %v1343_v55 = vpop.permute.xlu1 %1342 }
 0x45a   : > { %v1331_v51 = vpop.xlane.xlu0 %1330 }
 0x45b   : > { %6733 = vrcp.f32 %v1331_v51 }
 0x45e   : > { %v1345_v53 = vpop.permute.xlu0 %1344 }
 0x45f   : > { %6248 = vmatprep.subr.mxu0 %v1345_v53 }
 0x460   : > { %v6730_v54 = vpop.eup %6729  ;;  %6249 = vmatpush3.msra.mxu0 %v1345_v53 }
 0x461   : > { %6250 = vmatprep.subr.mxu0 %v1343_v55  ;;  %v1336_v57 = vmul.f32 %v6730_v54, %v6724_v23  ;;  %v6732_v58 = vpop.eup %6731 }
 0x462   : > { %6251 = vmatpush3.msra.mxu0 %v1343_v55  ;;  %v7396_v60 = vpop.permute.xlu0 %1657  ;;  %v1337_v63 = vmul.f32 %v6732_v58, %v6722_v21 }
 0x463   : > { %6254 = vmatprep.mubr.msk.f32.mxu0 %vm803_vm1, %v1336_v57 }
 0x466   : > { %v7399_v0 = vpop.permute.xlu0 %1653 }
 0x468   : > { %v6734_v2 = vpop.eup %6733 }
 0x469   : > { %v1339_v7 = vmul.f32 %v6734_v2, %v7350_v27 }
 0x46a   : > { %v7403_v5 = vpop.permute.xlu0 %1643 }
 0x46e   : > { %v7408_v8 = vpop.permute.xlu0 %1647 }
 0x487   : > { %v1328_v52 = vpop.xlane.xlu1 %1327 }
 0x488   : > { %6735 = vrcp.f32 %v1328_v52 }
 0x48b   : > { %v1341_v61 = vpop.permute.xlu1 %1340 }
 0x48c   : > { %6252 = vmatprep.subr.mxu0 %v1341_v61 }
 0x48d   : > { %6253 = vmatpush3.msra.mxu0 %v1341_v61 }
 0x48e   : > { %6255 = vmatmul.mubr.msk.f32.vlgmr.msra.gmra.mxu0 %vm803_vm1, %v1337_v63  ;;  %6260 = vmatprep.subr.mxu0 %v906_v62 }
 0x48f   : > { %6261 = vmatpush3.msra.mxu0 %v906_v62  ;;  %v1656_v20 = vpop.permute.xlu1 %1655 }
 0x490   : > { %6276 = vmatprep.subr.msk.mxu0 %vm684_vm0, %v7396_v60 }
 0x493   : > { %v1652_v22 = vpop.permute.xlu1 %1651 }
 0x495   : > { %v6736_v3 = vpop.eup %6735 }
 0x496   : > { %v1338_v6 = vmul.f32 %v6736_v3, %v6728_v35 }
 0x497   : > { %v1646_v23 = vpop.permute.xlu1 %1645 }
 0x498   : > { %6257 = vmatprep.mubr.msk.f32.mxu0 %vm803_vm1, %v1338_v6 }
 0x499   : > { %6258 = vmatmul.mubr.msk.f32.gmra.mxu0 %vm803_vm1, %v1339_v7 }
 0x49b   : > { %v1650_v24 = vpop.permute.xlu1 %1649 }
 0x49f   : > { %v1028_v9 = vpop.xlane.xlu0 %1027 }
 0x4a0   : > { %v1038_v10 = vsub.f32 %v1008_v41, %v1028_v9  ;;  %v905_v9 = vld [vmem:[#allocation3] sm:$0xff] }
 0x4a2   : > { %v1042_v11 = vmul.f32 1.442695, %v1038_v10 }
 0x4a3   : > { %v1034_v12 = vpop.xlane.xlu0 %1033 }
 0x4a4   : > { %6737 = vpow2.f32 %v1042_v11  ;;  %v1040_v13 = vsub.f32 %v1018_v42, %v1034_v12 }
 0x4a6   : > { %v1046_v14 = vmul.f32 1.442695, %v1040_v13 }
 0x4a7   : > { %v1037_v27 = vpop.xlane.xlu0 %1036 }
 0x4a8   : > { %6739 = vpow2.f32 %v1046_v14  ;;  %v1041_v28 = vsub.f32 %v7380_v44, %v1037_v27 }
 0x4aa   : > { %v1048_v35 = vmul.f32 1.442695, %v1041_v28 }
 0x4b1   : > { %v6738_v15 = vpop.eup %6737 }
 0x4b2   : > { %v1050_v16 = vsel %vm803_vm1, %v6738_v15, 0.0 }
 0x4b3   : > { %1051 = vadd.xlane.f32.xlu1 %v1050_v16 }
 0x4b5   : > { %v7411_v17 = vpop.eup %6739 }
 0x4b6   : > { %v1056_v21 = vsel %vm803_vm1, %v7411_v17, 0.0 }
 0x4b7   : > { %1057 = vadd.xlane.f32.xlu1 %v1056_v21 }
 0x4c8   : > { %1076 = vrot.lane.b32.xlu1 %v7244_v33, %s6996_s2 }
 0x4cc   : > { %v1031_v30 = vpop.xlane.xlu1 %1030  ;;  %1072 = vrot.lane.b32.xlu1 %v7238_v29, %s6996_s2 }
 0x4cd   : > { %v1039_v32 = vsub.f32 %v7391_v47, %v1031_v30 }
 0x4cf   : > { %v1044_v40 = vmul.f32 1.442695, %v1039_v32 }
 0x4d0   : > { %1070 = vrot.lane.b32.xlu1 %v7240_v31, %s6996_s2 }
 0x4d1   : > { %6741 = vpow2.f32 %v1044_v40 }
 0x4d2   : > { %6743 = vpow2.f32 %v1048_v35 }
 0x4d4   : > { %2026 = vrot.lane.b32.xlu1 %v7255_v36, %s8371_s3 }
 0x4d8   : > { %2022 = vrot.lane.b32.xlu1 %v7240_v31, %s8371_s3 }
 0x4dc   : > { %2016 = vrot.lane.b32.xlu1 %v7266_v37, %s8369_s25 }
 0x4de   : > { %v6742_v41 = vpop.eup %6741 }
 0x4df   : > { %v1053_v42 = vsel %vm803_vm1, %v6742_v41, 0.0  ;;  %v7430_v43 = vpop.eup %6743 }
 0x4e0   : > { %1054 = vadd.xlane.f32.xlu0 %v1053_v42  ;;  %2020 = vrot.lane.b32.xlu1 %v7273_v38, %s8369_s25  ;;  %v1059_v44 = vsel %vm803_vm1, %v7430_v43, 0.0 }
 0x4e4   : > { %1060 = vadd.xlane.f32.xlu0 %v1059_v44 }
 0x4fa   : > { %1074 = vrot.lane.b32.xlu0 %v7255_v36, %s6996_s2 }
 0x4fe   : > { %2028 = vrot.lane.b32.xlu0 %v7244_v33, %s8371_s3 }
 0x502   : > { %2024 = vrot.lane.b32.xlu0 %v7238_v29, %s8371_s3  ;;  %s8394_s3 = smov 72  }
 0x506   : > { %2014 = vrot.lane.b32.xlu0 %v7247_v34, %s8369_s25 }
 0x50a   : > { %2018 = vrot.lane.b32.xlu0 %v7280_v39, %s8369_s25  ;;  %s8397_s25 = smov 40  }
 0x53c   : > { %v1052_v37 = vpop.xlane.xlu1 %1051 }
 0x53d   : > { %6745 = vrcp.f32 %v1052_v37 }
 0x540   : > { %v1058_v38 = vpop.xlane.xlu1 %1057 }
 0x541   : > { %6747 = vrcp.f32 %v1058_v38 }
 0x544   : > { %v1077_v45 = vpop.permute.xlu1 %1076 }
 0x545   : > { %6218 = vmatprep.subr.mxu1 %v1077_v45 }
 0x546   : > { %6219 = vmatpush3.msra.mxu1 %v1077_v45 }
 0x548   : > { %v1073_v51 = vpop.permute.xlu1 %1072 }
 0x54a   : > { %v6746_v46 = vpop.eup %6745 }
 0x54b   : > { %v1066_v47 = vmul.f32 %v6746_v46, %v6738_v15 }
 0x54c   : > { %v1071_v54 = vpop.permute.xlu1 %1070 }
 0x54d   : > { %6226 = vmatprep.mubr.msk.f32.mxu1 %vm803_vm1, %v1066_v47 }
 0x54e   : > { %v6256_v48 = vpop.f32.mrf.mxu0  ;;  %v6748_v52 = vpop.eup %6747 }
 0x54f   : > { %v1068_v63 = vmul.f32 %v6748_v52, %v7411_v17 }
 0x550   : > { %v1430_v49 = vpop.f32.mrf.mxu0 }
 0x551   : > { %6262 = vmatprep.mubr.msk.f32.mxu0 %vm684_vm0, %v1430_v49 }
 0x552   : > { %6263 = vmatmul.mubr.msk.f32.vlgmr.msra.gmra.mxu0 %vm684_vm0, %v6256_v48 }
 0x553   : > { %6277 = vmatpush3.xpose.msk.msra.mxu0 %vm684_vm0, %v7396_v60  ;;  %v2027_v60 = vpop.permute.xlu1 %2026 }
 0x554   : > { %6278 = vmatprep.subr.msk.mxu0 %vm684_vm0, %v1656_v20 }
 0x557   : > { %6279 = vmatpush3.xpose.msk.msra.mxu0 %vm684_vm0, %v1656_v20  ;;  %v2023_v3 = vpop.permute.xlu1 %2022 }
 0x558   : > { %6280 = vmatprep.subr.msk.mxu0 %vm684_vm0, %v7399_v0 }
 0x559   : > { %v6259_v34 = vpop.f32.mrf.mxu0 }
 0x55b   : > { %6281 = vmatpush3.xpose.msk.msra.mxu0 %vm684_vm0, %v7399_v0  ;;  %v1440_v39 = vpop.f32.mrf.mxu0  ;;  %v2017_v6 = vpop.permute.xlu1 %2016 }
 0x55c   : > { %6282 = vmatprep.subr.msk.mxu0 %vm684_vm0, %v1652_v22  ;;  %6265 = vmatprep.mubr.msk.f32.mxu0 %vm684_vm0, %v1440_v39 }
 0x55d   : > { %6266 = vmatmul.mubr.msk.f32.gmra.mxu0 %vm684_vm0, %v6259_v34 }
 0x55e   : > { %6284 = vmatprep.mubr.msk.f32.mxu0 %vm684_vm0, %v7403_v5 }
 0x55f   : > { %6283 = vmatpush3.xpose.msk.msra.mxu0 %vm684_vm0, %v1652_v22 }
 0x562   : > { %6285 = vmatmul.mubr.msk.f32.vlgmr.msra.gmra.mxu0 %vm684_vm0, %v1646_v23 }
 0x563   : > { %6287 = vmatprep.mubr.msk.f32.mxu0 %vm684_vm0, %v7408_v8  ;;  %v2021_v8 = vpop.permute.xlu1 %2020 }
 0x566   : > { %6288 = vmatmul.mubr.msk.f32.gmra.mxu0 %vm684_vm0, %v1650_v24 }
 0x569   : > { %v1055_v50 = vpop.xlane.xlu0 %1054 }
 0x56a   : > { %6749 = vrcp.f32 %v1055_v50 }
 0x56d   : > { %v1061_v53 = vpop.xlane.xlu0 %1060 }
 0x56e   : > { %6751 = vrcp.f32 %v1061_v53 }
 0x571   : > { %v1075_v55 = vpop.permute.xlu0 %1074 }
 0x572   : > { %6220 = vmatprep.subr.mxu1 %v1075_v55 }
 0x573   : > { %6221 = vmatpush3.msra.mxu1 %v1075_v55 }
 0x574   : > { %6222 = vmatprep.subr.mxu1 %v1073_v51 }
 0x575   : > { %6223 = vmatpush3.msra.mxu1 %v1073_v51  ;;  %v2029_v57 = vpop.permute.xlu0 %2028 }
 0x576   : > { %6224 = vmatprep.subr.mxu1 %v1071_v54  ;;  %6312 = vmatprep.subr.msk.mxu0 %vm684_vm0, %v2029_v57 }
 0x577   : > { %v6750_v58 = vpop.eup %6749  ;;  %6225 = vmatpush3.msra.mxu1 %v1071_v54  ;;  %6313 = vmatpush3.xpose.msk.msra.mxu0 %vm684_vm0, %v2029_v57 }
 0x578   : > { %v1067_v61 = vmul.f32 %v6750_v58, %v6742_v41  ;;  %6314 = vmatprep.subr.msk.mxu0 %vm684_vm0, %v2027_v60  ;;  %6268 = vmatprep.subr.mxu1 %v905_v9 }
 0x579   : > { %v2025_v62 = vpop.permute.xlu0 %2024 }
 0x57a   : > { %6227 = vmatmul.mubr.msk.f32.vlgmr.msra.gmra.mxu1 %vm803_vm1, %v1067_v61 }
 0x57b   : > { %v6752_v0 = vpop.eup %6751  ;;  %6229 = vmatprep.mubr.msk.f32.mxu1 %vm803_vm1, %v1068_v63  ;;  %6315 = vmatpush3.xpose.msk.msra.mxu0 %vm684_vm0, %v2027_v60 }
 0x57c   : > { %6316 = vmatprep.subr.msk.mxu0 %vm684_vm0, %v2025_v62  ;;  %v1069_v2 = vmul.f32 %v6752_v0, %v7430_v43  ;;  %6269 = vmatpush3.msra.mxu1 %v905_v9 }
 0x57d   : > { %v2015_v5 = vpop.permute.xlu0 %2014 }
 0x57e   : > { %6230 = vmatmul.mubr.msk.f32.gmra.mxu1 %vm803_vm1, %v1069_v2  ;;  %6320 = vmatprep.mubr.msk.f32.mxu0 %vm684_vm0, %v2015_v5 }
 0x57f   : > { %6317 = vmatpush3.xpose.msk.msra.mxu0 %vm684_vm0, %v2025_v62 }
 0x580   : > { %6318 = vmatprep.subr.msk.mxu0 %vm684_vm0, %v2023_v3 }
 0x581   : > { %v2019_v7 = vpop.permute.xlu0 %2018 }
 0x583   : > { %6319 = vmatpush3.xpose.msk.msra.mxu0 %vm684_vm0, %v2023_v3 }
 0x586   : > { %6321 = vmatmul.mubr.msk.f32.vlgmr.msra.gmra.mxu0 %vm684_vm0, %v2017_v6 }
 0x587   : > { %6323 = vmatprep.mubr.msk.f32.mxu0 %vm684_vm0, %v2019_v7 }
 0x58a   : > { %6324 = vmatmul.mubr.msk.f32.gmra.mxu0 %vm684_vm0, %v2021_v8 }
 0x612   : > { %v7484_v10 = vpop.f32.mrf.mxu0 }
 0x614   : > { %v7486_v11 = vpop.f32.mrf.mxu0 }
 0x61d   : > { %v7488_v12 = vpop.f32.mrf.mxu0 }
 0x61f   : > { %v7490_v13 = vpop.f32.mrf.mxu0 }
 0x622   : > { %v6286_v14 = vpop.f32.mrf.mxu0 }
 0x623   : > { %v1747_v15 = vadd.f32 %v6286_v14, %v7321_v56 }
 0x624   : > { %v1741_v16 = vpop.f32.mrf.mxu0 }
 0x625   : > { %v1742_v17 = vadd.f32 %v1741_v16, %v7327_v59  ;;  %v1763_v20 = vsel %vm803_vm1, %v1747_v15, -inf }
 0x626   : > { %v6289_v21 = vpop.f32.mrf.mxu0  ;;  %1764 = vmax.xlane.f32.xlu1 %v1763_v20 }
 0x627   : > { %v1760_v22 = vsel %vm803_vm1, %v1742_v17, -inf  ;;  %v1757_v27 = vadd.f32 %v6289_v21, %v7341_v4 }
 0x628   : > { %v1751_v23 = vpop.f32.mrf.mxu0  ;;  %1761 = vmax.xlane.f32.xlu0 %v1760_v22  ;;  %v907_v22 = vld [vmem:[#allocation3 + $0x10] sm:$0xff] }
 0x629   : > { %v1752_v24 = vadd.f32 %v1751_v23, %v7335_v1  ;;  %v1769_v30 = vsel %vm803_vm1, %v1757_v27, -inf }
 0x62b   : > { %v1766_v28 = vsel %vm803_vm1, %v1752_v24, -inf }
 0x62c   : > { %1767 = vmax.xlane.f32.xlu0 %v1766_v28 }
 0x630   : > { %1770 = vmax.xlane.f32.xlu0 %v1769_v30 }
 0x637   : > { %1810 = vrot.lane.b32.xlu1 %v7244_v33, %s8367_s28 }
 0x63a   : > { %v6228_v32 = vpop.f32.mrf.mxu1 }
 0x63c   : > { %v1160_v35 = vpop.f32.mrf.mxu1 }
 0x63d   : > { %6270 = vmatprep.mubr.msk.f32.mxu1 %vm684_vm0, %v1160_v35 }
 0x63e   : > { %v6231_v40 = vpop.f32.mrf.mxu1  ;;  %6271 = vmatmul.mubr.msk.f32.vlgmr.msra.gmra.mxu1 %vm684_vm0, %v6228_v32 }
 0x640   : > { %v1170_v41 = vpop.f32.mrf.mxu1 }
 0x641   : > { %6273 = vmatprep.mubr.msk.f32.mxu1 %vm684_vm0, %v1170_v41 }
 0x642   : > { %6274 = vmatmul.mubr.msk.f32.gmra.mxu1 %vm684_vm0, %v6231_v40 }
 0x646   : > { %v6322_v58 = vpop.f32.mrf.mxu0 }
 0x648   : > { %v2112_v61 = vpop.f32.mrf.mxu0 }
 0x649   : > { %v2113_v0 = vadd.f32 %v2112_v61, %v7327_v59  ;;  %v2118_v59 = vadd.f32 %v6322_v58, %v7321_v56 }
 0x64a   : > { %v6325_v63 = vpop.f32.mrf.mxu0 }
 0x64b   : > { %v2131_v5 = vsel %vm803_vm1, %v2113_v0, -inf  ;;  %v2128_v6 = vadd.f32 %v6325_v63, %v7341_v4 }
 0x64c   : > { %v2122_v2 = vpop.f32.mrf.mxu0 }
 0x64d   : > { %v7519_v3 = vadd.f32 %v2122_v2, %v7335_v1  ;;  %v2140_v8 = vsel %vm803_vm1, %v2128_v6, -inf  ;;  %v2134_v1 = vsel %vm803_vm1, %v2118_v59, -inf }
 0x64f   : > { %v2137_v7 = vsel %vm803_vm1, %v7519_v3, -inf }
 0x6af   : > { %v1765_v42 = vpop.xlane.xlu1 %1764 }
 0x6b0   : > { %v1773_v43 = vsub.f32 %v1747_v15, %v1765_v42 }
 0x6b1   : > { %v1762_v44 = vpop.xlane.xlu0 %1761 }
 0x6b2   : > { %v1778_v37 = vmul.f32 1.442695, %v1773_v43  ;;  %v1772_v38 = vsub.f32 %v1742_v17, %v1762_v44 }
 0x6b3   : > { %v1811_v45 = vpop.permute.xlu1 %1810 }
 0x6b4   : > { %6753 = vpow2.f32 %v1778_v37  ;;  %v1776_v46 = vmul.f32 1.442695, %v1772_v38  ;;  %6290 = vmatprep.subr.mxu1 %v1811_v45 }
 0x6b5   : > { %6291 = vmatpush3.msra.mxu1 %v1811_v45  ;;  %v1768_v47 = vpop.xlane.xlu0 %1767 }
 0x6b6   : > { %6755 = vpow2.f32 %v1776_v46  ;;  %v1774_v57 = vsub.f32 %v1752_v24, %v1768_v47 }
 0x6b8   : > { %v1780_v52 = vmul.f32 1.442695, %v1774_v57 }
 0x6b9   : > { %v1771_v48 = vpop.xlane.xlu0 %1770 }
 0x6ba   : > { %v1775_v49 = vsub.f32 %v1757_v27, %v1771_v48 }
 0x6bc   : > { %v1782_v34 = vmul.f32 1.442695, %v1775_v49 }
 0x6be   : > { %6757 = vpow2.f32 %v1782_v34 }
 0x6bf   : > { %6759 = vpow2.f32 %v1780_v52 }
 0x6c1   : > { %v6754_v39 = vpop.eup %6753 }
 0x6c2   : > { %v1787_v50 = vsel %vm803_vm1, %v6754_v39, 0.0 }
 0x6c3   : > { %v6756_v51 = vpop.eup %6755  ;;  %1788 = vadd.xlane.f32.xlu0 %v1787_v50 }
 0x6c4   : > { %v1784_v53 = vsel %vm803_vm1, %v6756_v51, 0.0 }
 0x6c5   : > { %1785 = vadd.xlane.f32.xlu1 %v1784_v53 }
 0x6cb   : > { %v7508_v54 = vpop.eup %6757 }
 0x6cc   : > { %v1793_v55 = vsel %vm803_vm1, %v7508_v54, 0.0  ;;  %v6760_v60 = vpop.eup %6759 }
 0x6cd   : > { %1794 = vadd.xlane.f32.xlu0 %v1793_v55  ;;  %v1790_v62 = vsel %vm803_vm1, %v6760_v60, 0.0 }
 0x6d6   : > { %1806 = vrot.lane.b32.xlu1 %v7238_v29, %s8367_s28 }
 0x6e3   : > { %1808 = vrot.lane.b32.xlu0 %v7255_v36, %s8367_s28 }
 0x6fa   : > { %1791 = vadd.xlane.f32.xlu1 %v1790_v62 }
 0x6fe   : > { %v6272_v55 = vpop.f32.mrf.mxu1 }
 0x700   : > { %v1624_v57 = vpop.f32.mrf.mxu1 }
 0x702   : > { %2132 = vmax.xlane.f32.xlu0 %v2131_v5  ;;  %v6275_v52 = vpop.f32.mrf.mxu1 }
 0x706   : > { %2138 = vmax.xlane.f32.xlu0 %v2137_v7 }
 0x70a   : > { %2141 = vmax.xlane.f32.xlu0 %v2140_v8 }
 0x70b   : > { %1804 = vrot.lane.b32.xlu1 %v7240_v31, %s8367_s28  ;;  %s5713_s28 = sshll.u32 %s8399_s24, 3 }
 0x70c   : > { %s671_s26 = scalar_lea.vmem %s8362_s20, %s5713_s28 }
 0x72f   : > { %2135 = vmax.xlane.f32.xlu1 %v2134_v1 }
 0x740   : > { %2181 = vrot.lane.b32.xlu1 %v7244_v33, %s8365_s29 }
 0x74c   : > { %v1789_v9 = vpop.xlane.xlu0 %1788 }
 0x74e   : > { %v1786_v4 = vpop.xlane.xlu1 %1785 }
 0x74f   : > { %6761 = vrcp.f32 %v1786_v4 }
 0x750   : > { %6763 = vrcp.f32 %v1789_v9 }
 0x752   : > { %v1807_v17 = vpop.permute.xlu1 %1806 }
 0x756   : > { %v1795_v14 = vpop.xlane.xlu0 %1794 }
 0x757   : > { %6765 = vrcp.f32 %v1795_v14 }
 0x75a   : > { %v1809_v15 = vpop.permute.xlu0 %1808 }
 0x75b   : > { %6292 = vmatprep.subr.mxu1 %v1809_v15 }
 0x75c   : > { %v6762_v16 = vpop.eup %6761  ;;  %6293 = vmatpush3.msra.mxu1 %v1809_v15 }
 0x75d   : > { %6294 = vmatprep.subr.mxu1 %v1807_v17  ;;  %v1800_v20 = vmul.f32 %v6762_v16, %v6756_v51  ;;  %v6764_v21 = vpop.eup %6763  ;;  %v908_v16 = vld [vmem:[#allocation3 + $0x18] sm:$0xff] }
 0x75e   : > { %6295 = vmatpush3.msra.mxu1 %v1807_v17  ;;  %v1801_v23 = vmul.f32 %v6764_v21, %v6754_v39  ;;  %v1630_v17 = vadd.f32 %v6272_v55, %v7484_v10 }
 0x75f   : > { %6298 = vmatprep.mubr.msk.f32.mxu1 %vm803_vm1, %v1800_v20 }
 0x764   : > { %v6766_v30 = vpop.eup %6765 }
 0x765   : > { %v1803_v40 = vmul.f32 %v6766_v30, %v7508_v54 }
 0x783   : > { %v1792_v56 = vpop.xlane.xlu1 %1791 }
 0x784   : > { %6767 = vrcp.f32 %v1792_v56  ;;  %v1625_v56 = vadd.f32 %v1624_v57, %v7486_v11  ;;  %v5788_v11 = vld [vmem:[%s8350_s8] ss:$0 sm:$0xff] }
 0x787   : > { %v1805_v33 = vpop.permute.xlu1 %1804 }
 0x788   : > { %6296 = vmatprep.subr.mxu1 %v1805_v33 }
 0x789   : > { %6297 = vmatpush3.msra.mxu1 %v1805_v33 }
 0x78a   : > { %6299 = vmatmul.mubr.msk.f32.vlgmr.msra.gmra.mxu1 %vm803_vm1, %v1801_v23  ;;  %6304 = vmatprep.subr.mxu1 %v907_v22  ;;  %v1640_v23 = vadd.f32 %v6275_v52, %v7488_v12 }
 0x78b   : > { %v2133_v24 = vpop.xlane.xlu0 %2132  ;;  %6305 = vmatpush3.msra.mxu1 %v907_v22 }
 0x78c   : > { %v2143_v27 = vsub.f32 %v2113_v0, %v2133_v24 }
 0x78e   : > { %v2147_v28 = vmul.f32 1.442695, %v2143_v27 }
 0x78f   : > { %v2139_v43 = vpop.xlane.xlu0 %2138 }
 0x790   : > { %6769 = vpow2.f32 %v2147_v28  ;;  %v2145_v46 = vsub.f32 %v7519_v3, %v2139_v43 }
 0x791   : > { %v6768_v32 = vpop.eup %6767 }
 0x792   : > { %v1802_v35 = vmul.f32 %v6768_v32, %v6760_v60  ;;  %v2151_v34 = vmul.f32 1.442695, %v2145_v46  ;;  %v7548_v60 = vpop.f32.mrf.mxu1 }
 0x793   : > { %v2142_v44 = vpop.xlane.xlu0 %2141  ;;  %v1635_v46 = vadd.f32 %v7548_v60, %v7490_v13 }
 0x794   : > { %6301 = vmatprep.mubr.msk.f32.mxu1 %vm803_vm1, %v1802_v35  ;;  %v2146_v37 = vsub.f32 %v2128_v6, %v2142_v44 }
 0x795   : > { %6302 = vmatmul.mubr.msk.f32.gmra.mxu1 %vm803_vm1, %v1803_v40 }
 0x796   : > { %v2153_v47 = vmul.f32 1.442695, %v2146_v37 }
 0x79d   : > { %v6770_v41 = vpop.eup %6769 }
 0x79e   : > { %v2155_v42 = vsel %vm803_vm1, %v6770_v41, 0.0 }
 0x79f   : > { %2156 = vadd.xlane.f32.xlu1 %v2155_v42 }
 0x7b0   : > { %2177 = vrot.lane.b32.xlu1 %v7238_v29, %s8365_s29 }
 0x7b8   : > { %v2136_v38 = vpop.xlane.xlu1 %2135 }
 0x7b9   : > { %v2144_v45 = vsub.f32 %v2118_v59, %v2136_v38 }
 0x7bb   : > { %v2149_v48 = vmul.f32 1.442695, %v2144_v45 }
 0x7bc   : > { %v2182_v49 = vpop.permute.xlu1 %2181 }
 0x7bd   : > { %6771 = vpow2.f32 %v2149_v48  ;;  %6326 = vmatprep.subr.mxu1 %v2182_v49 }
 0x7be   : > { %6773 = vpow2.f32 %v2153_v47 }
 0x7bf   : > { %6775 = vpow2.f32 %v2151_v34 }
 0x7ca   : > { %v6772_v39 = vpop.eup %6771 }
 0x7cb   : > { %v2158_v50 = vsel %vm803_vm1, %v6772_v39, 0.0  ;;  %v6774_v51 = vpop.eup %6773 }
 0x7cc   : > { %2159 = vadd.xlane.f32.xlu0 %v2158_v50  ;;  %v2164_v29 = vsel %vm803_vm1, %v6774_v51, 0.0  ;;  %v6776_v53 = vpop.eup %6775 }
 0x7cd   : > { %v2161_v54 = vsel %vm803_vm1, %v6776_v53, 0.0 }
 0x7d0   : > { %2165 = vadd.xlane.f32.xlu0 %v2164_v29 }
 0x7d4   : > { %2162 = vadd.xlane.f32.xlu1 %v2161_v54 }
 0x7e5   : > { %2175 = vrot.lane.b32.xlu1 %v7240_v31, %s8365_s29 }
 0x7e6   : > { %2179 = vrot.lane.b32.xlu0 %v7255_v36, %s8365_s29 }
 0x828   : > { %v2157_v58 = vpop.xlane.xlu1 %2156 }
 0x829   : > { %6777 = vrcp.f32 %v2157_v58 }
 0x82c   : > { %v2178_v3 = vpop.permute.xlu1 %2177 }
 0x836   : > { %v6778_v63 = vpop.eup %6777 }
 0x837   : > { %v2171_v36 = vmul.f32 %v6778_v63, %v6770_v41 }
 0x84a   : > { %v6300_v61 = vpop.f32.mrf.mxu1 }
 0x84c   : > { %v1894_v62 = vpop.f32.mrf.mxu1 }
 0x84d   : > { %6306 = vmatprep.mubr.msk.f32.mxu1 %vm684_vm0, %v1894_v62 }
 0x84e   : > { %6307 = vmatmul.mubr.msk.f32.vlgmr.msra.gmra.mxu1 %vm684_vm0, %v6300_v61 }
 0x84f   : > { %6327 = vmatpush3.msra.mxu1 %v2182_v49 }
 0x855   : > { %v6303_v0 = vpop.f32.mrf.mxu1  ;;  %v2160_v31 = vpop.xlane.xlu0 %2159 }
 0x856   : > { %6779 = vrcp.f32 %v2160_v31 }
 0x857   : > { %v1904_v2 = vpop.f32.mrf.mxu1 }
 0x858   : > { %6309 = vmatprep.mubr.msk.f32.mxu1 %vm684_vm0, %v1904_v2 }
 0x859   : > { %6310 = vmatmul.mubr.msk.f32.gmra.mxu1 %vm684_vm0, %v6303_v0  ;;  %v2166_v5 = vpop.xlane.xlu0 %2165 }
 0x85a   : > { %6334 = vmatprep.mubr.msk.f32.mxu1 %vm803_vm1, %v2171_v36  ;;  %6781 = vrcp.f32 %v2166_v5 }
 0x85d   : > { %v2163_v6 = vpop.xlane.xlu1 %2162  ;;  %v2180_v7 = vpop.permute.xlu0 %2179 }
 0x85e   : > { %6783 = vrcp.f32 %v2163_v6  ;;  %6328 = vmatprep.subr.mxu1 %v2180_v7 }
 0x85f   : > { %6329 = vmatpush3.msra.mxu1 %v2180_v7 }
 0x860   : > { %6330 = vmatprep.subr.mxu1 %v2178_v3 }
 0x861   : > { %v2176_v8 = vpop.permute.xlu1 %2175  ;;  %6331 = vmatpush3.msra.mxu1 %v2178_v3 }
 0x862   : > { %6332 = vmatprep.subr.mxu1 %v2176_v8 }
 0x863   : > { %v6780_v59 = vpop.eup %6779  ;;  %6333 = vmatpush3.msra.mxu1 %v2176_v8 }
 0x864   : > { %v2172_v1 = vmul.f32 %v6780_v59, %v6772_v39  ;;  %6340 = vmatprep.subr.mxu1 %v908_v16  ;;  %v2472_v59 = vld [vmem:[#allocation5 + $0x18] sm:$0xff] }
 0x865   : > { %6348 = vmatprep.subr.mxu0 %v2472_v59 }
 0x866   : > { %6335 = vmatmul.mubr.msk.f32.vlgmr.msra.gmra.mxu1 %vm803_vm1, %v2172_v1  ;;  %v2471_v1 = vld [vmem:[#allocation5 + $0x10] sm:$0xff]  ;;  %6349 = vmatpush3.msra.mxu0 %v2472_v59 }
 0x867   : > { %v6782_v4 = vpop.eup %6781  ;;  %6341 = vmatpush3.msra.mxu1 %v908_v16  ;;  %6350 = vmatprep.subr.mxu0 %v2471_v1  ;;  %v2584_v16 = vld [vmem:[%s8355_s13 + $0x28] sm:$0xff] }
 0x868   : > { %v2174_v15 = vmul.f32 %v6782_v4, %v6774_v51  ;;  %v2470_v4 = vld [vmem:[#allocation5 + $0x8] sm:$0xff]  ;;  %6351 = vmatpush3.msra.mxu0 %v2471_v1 }
 0x869   : > { %6352 = vmatprep.subr.mxu0 %v2470_v4 }
 0x86a   : > { %6353 = vmatpush3.msra.mxu0 %v2470_v4 }
 0x86b   : > { %v6784_v9 = vpop.eup %6783 }
 0x86c   : > { %v2173_v14 = vmul.f32 %v6784_v9, %v6776_v53  ;;  %v2469_v9 = vld [vmem:[#allocation5] sm:$0xff] }
 0x86d   : > { %6354 = vmatprep.subr.mxu0 %v2469_v9 }
 0x86e   : > { %6337 = vmatprep.mubr.msk.f32.mxu1 %vm803_vm1, %v2173_v14  ;;  %6355 = vmatpush3.msra.mxu0 %v2469_v9  ;;  %v2586_v14 = vld [vmem:[%s8355_s13 + $0x38] sm:$0xff] }
 0x86f   : > { %6338 = vmatmul.mubr.msk.f32.gmra.mxu1 %vm803_vm1, %v2174_v15  ;;  %v2585_v15 = vld [vmem:[%s8355_s13 + $0x30] sm:$0xff]  ;;  %6362 = vmatprep.subr.mxu1 %v2586_v14 }
 0x90e   : > { %v6308_v20 = vpop.f32.mrf.mxu1 }
 0x90f   : > { %v2011_v21 = vadd.f32 %v6308_v20, %v1630_v17  ;;  %v2583_v17 = vld [vmem:[%s8355_s13 + $0x20] sm:$0xff] }
 0x910   : > { %v1991_v33 = vpop.f32.mrf.mxu1 }
 0x911   : > { %v2010_v22 = vadd.f32 %v1991_v33, %v1625_v56 }
 0x919   : > { %v6311_v24 = vpop.f32.mrf.mxu1 }
 0x91a   : > { %v2013_v27 = vadd.f32 %v6311_v24, %v1640_v23 }
 0x91b   : > { %v2001_v28 = vpop.f32.mrf.mxu1 }
 0x91c   : > { %v2012_v49 = vadd.f32 %v2001_v28, %v1635_v46 }
 0x926   : > { %v6336_v30 = vpop.f32.mrf.mxu1 }
 0x928   : > { %v2265_v32 = vpop.f32.mrf.mxu1 }
 0x929   : > { %6342 = vmatprep.mubr.msk.f32.mxu1 %vm684_vm0, %v2265_v32 }
 0x92a   : > { %6343 = vmatmul.mubr.msk.f32.vlgmr.msra.gmra.mxu1 %vm684_vm0, %v6336_v30 }
 0x92b   : > { %6363 = vmatpush3.msra.mxu1 %v2586_v14 }
 0x92c   : > { %6364 = vmatprep.subr.mxu1 %v2585_v15 }
 0x92d   : > { %6365 = vmatpush3.msra.mxu1 %v2585_v15 }
 0x92e   : > { %6366 = vmatprep.subr.mxu1 %v2584_v16 }
 0x92f   : > { %v6339_v35 = vpop.f32.mrf.mxu1  ;;  %6367 = vmatpush3.msra.mxu1 %v2584_v16 }
 0x930   : > { %6368 = vmatprep.subr.mxu1 %v2583_v17 }
 0x931   : > { %v2275_v40 = vpop.f32.mrf.mxu1  ;;  %6369 = vmatpush3.msra.mxu1 %v2583_v17 }
 0x932   : > { %6345 = vmatprep.mubr.msk.f32.mxu1 %vm684_vm0, %v2275_v40 }
 0x933   : > { %6346 = vmatmul.mubr.msk.f32.gmra.mxu1 %vm684_vm0, %v6339_v35 }
 0x9ea   : > { %v6344_v10 = vpop.f32.mrf.mxu1 }
 0x9eb   : > { %v2382_v12 = vadd.f32 %v6344_v10, %v2011_v21 }
 0x9ec   : > { %v2362_v41 = vpop.f32.mrf.mxu1 }
 0x9ed   : > { %v2391_v42 = vadd.f32 %v5788_v11, %v2382_v12  ;;  %v2381_v43 = vadd.f32 %v2362_v41, %v2010_v22 }
 0x9ef   : > { %v2390_v44 = vadd.f32 %v5788_v11, %v2381_v43  ;;  %v2395_v37 = vadd.f32 %v2391_v42, %v7215_v19  ;;  %v5790_v43 = vld [vmem:[%s8352_s10] ss:$0 sm:$0xff] }
 0x9f1   : > { %v2403_v38 = vsel %vm803_vm1, %v2395_v37, 0.0  ;;  %v2394_v45 = vadd.f32 %v2390_v44, %v7213_v18 }
 0x9f2   : > { %2404 = vadd.xlane.f32.xlu1 %v2403_v38 }
 0x9f3   : > { %v6347_v47 = vpop.f32.mrf.mxu1  ;;  %v2400_v48 = vsel %vm803_vm1, %v2394_v45, 0.0 }
 0x9f4   : > { %v2384_v34 = vadd.f32 %v6347_v47, %v2013_v27  ;;  %2401 = vadd.xlane.f32.xlu0 %v2400_v48 }
 0x9f5   : > { %v2372_v39 = vpop.f32.mrf.mxu1 }
 0x9f6   : > { %v2383_v50 = vadd.f32 %v2372_v39, %v2012_v49  ;;  %v2393_v51 = vadd.f32 %v5788_v11, %v2384_v34 }
 0x9f8   : > { %v2392_v29 = vadd.f32 %v5788_v11, %v2383_v50  ;;  %v2397_v18 = vadd.f32 %v2393_v51, %v7229_v26  ;;  %v5789_v11 = vld [vmem:[%s8351_s9] ss:$0 sm:$0xff]  ;;  %v2582_v51 = vld [vmem:[%s8355_s13 + $0x18] sm:$0xff] }
 0x9f9   : > { %6370 = vmatprep.subr.mxu1 %v2582_v51 }
 0x9fa   : > { %v2396_v19 = vadd.f32 %v2392_v29, %v7227_v25  ;;  %v2409_v13 = vsel %vm803_vm1, %v2397_v18, 0.0  ;;  %6371 = vmatpush3.msra.mxu1 %v2582_v51  ;;  %v2581_v29 = vld [vmem:[%s8355_s13 + $0x10] sm:$0xff] }
 0x9fb   : > { %6372 = vmatprep.subr.mxu1 %v2581_v29 }
 0x9fc   : > { %v2406_v53 = vsel %vm803_vm1, %v2396_v19, 0.0  ;;  %6373 = vmatpush3.msra.mxu1 %v2581_v29 }
 0x9fd   : > { %2407 = vadd.xlane.f32.xlu0 %v2406_v53  ;;  %v2579_v53 = vld [vmem:[%s8355_s13] sm:$0xff] }
 0xa01   : > { %2410 = vadd.xlane.f32.xlu0 %v2409_v13 }
 0xa7b   : > { %v2405_v54 = vpop.xlane.xlu1 %2404 }
 0xa7c   : > { %v2414_v55 = vmul.f32 0.03125, %v2405_v54 }
 0xa7d   : > { %v2402_v57 = vpop.xlane.xlu0 %2401 }
 0xa7e   : > { %v2418_v52 = vsub.f32 %v2395_v37, %v2414_v55  ;;  %v2413_v58 = vmul.f32 0.03125, %v2402_v57 }
 0xa80   : > { %v7578_v60 = vsub.f32 %v2394_v45, %v2413_v58  ;;  %v2422_v61 = vmul.f32 %v2418_v52, %v2418_v52 }
 0xa82   : > { %v2428_v62 = vsel %vm803_vm1, %v2422_v61, 0.0  ;;  %v2421_v25 = vmul.f32 %v7578_v60, %v7578_v60 }
 0xa83   : > { %2429 = vadd.xlane.f32.xlu0 %v2428_v62 }
 0xa84   : > { %v2425_v26 = vsel %vm803_vm1, %v2421_v25, 0.0 }
 0xa85   : > { %2426 = vadd.xlane.f32.xlu1 %v2425_v26 }
 0xa86   : > { %v2408_v63 = vpop.xlane.xlu0 %2407 }
 0xa87   : > { %v2415_v0 = vmul.f32 0.03125, %v2408_v63 }
 0xa89   : > { %v7584_v31 = vsub.f32 %v2396_v19, %v2415_v0  ;;  %v2580_v19 = vld [vmem:[%s8355_s13 + $0x8] sm:$0xff]  ;;  %v5796_v0 = vld [vmem:[%s8356_s14] ss:$0 sm:$0xff] }
 0xa8a   : > { %v2411_v2 = vpop.xlane.xlu0 %2410  ;;  %6374 = vmatprep.subr.mxu1 %v2580_v19 }
 0xa8b   : > { %v2416_v36 = vmul.f32 0.03125, %v2411_v2  ;;  %v2423_v3 = vmul.f32 %v7584_v31, %v7584_v31  ;;  %6375 = vmatpush3.msra.mxu1 %v2580_v19 }
 0xa8c   : > { %6376 = vmatprep.subr.mxu1 %v2579_v53 }
 0xa8d   : > { %v7588_v5 = vsub.f32 %v2397_v18, %v2416_v36  ;;  %v2431_v6 = vsel %vm803_vm1, %v2423_v3, 0.0  ;;  %6377 = vmatpush3.msra.mxu1 %v2579_v53  ;;  %v5791_v18 = vld [vmem:[%s8354_s12] ss:$0 sm:$0xff] }
 0xa8e   : > { %2432 = vadd.xlane.f32.xlu1 %v2431_v6 }
 0xa8f   : > { %v2424_v7 = vmul.f32 %v7588_v5, %v7588_v5 }
 0xa91   : > { %v2434_v8 = vsel %vm803_vm1, %v2424_v7, 0.0 }
 0xa92   : > { %2435 = vadd.xlane.f32.xlu0 %v2434_v8 }
 0xb0c   : > { %v2430_v20 = vpop.xlane.xlu0 %2429 }
 0xb0d   : > { %v2438_v56 = vmul.f32 0.03125, %v2430_v20 }
 0xb0e   : > { %v2427_v21 = vpop.xlane.xlu1 %2426 }
 0xb0f   : > { %v2442_v33 = vadd.f32 1e-05, %v2438_v56  ;;  %v2437_v22 = vmul.f32 0.03125, %v2427_v21 }
 0xb11   : > { %6785 = vrsqrt.f32 %v2442_v33  ;;  %v2441_v23 = vadd.f32 1e-05, %v2437_v22 }
 0xb13   : > { %6787 = vrsqrt.f32 %v2441_v23 }
 0xb17   : > { %v2433_v24 = vpop.xlane.xlu1 %2432 }
 0xb18   : > { %v2439_v27 = vmul.f32 0.03125, %v2433_v24 }
 0xb1a   : > { %v2443_v28 = vadd.f32 1e-05, %v2439_v27 }
 0xb1b   : > { %v2436_v30 = vpop.xlane.xlu0 %2435 }
 0xb1c   : > { %6789 = vrsqrt.f32 %v2443_v28  ;;  %v2440_v32 = vmul.f32 0.03125, %v2436_v30 }
 0xb1e   : > { %v6786_v35 = vpop.eup %6785  ;;  %v2444_v40 = vadd.f32 1e-05, %v2440_v32 }
 0xb1f   : > { %v2450_v10 = vmul.f32 %v6786_v35, %v2418_v52 }
 0xb20   : > { %v6788_v12 = vpop.eup %6787  ;;  %6791 = vrsqrt.f32 %v2444_v40 }
 0xb21   : > { %v2449_v41 = vmul.f32 %v6788_v12, %v7578_v60  ;;  %v2458_v42 = vmul.f32 %v5789_v11, %v2450_v10 }
 0xb23   : > { %v2457_v44 = vmul.f32 %v5789_v11, %v2449_v41  ;;  %v2466_v38 = vadd.f32 %v5790_v43, %v2458_v42 }
 0xb25   : > { %v2465_v37 = vadd.f32 %v5790_v43, %v2457_v44 }
 0xb27   : > { %6356 = vmatprep.mubr.msk.f32.mxu0 %vm803_vm1, %v2465_v37 }
 0xb28   : > { %6357 = vmatmul.mubr.msk.f32.vlgmr.msra.gmra.mxu0 %vm803_vm1, %v2466_v38 }
 0xb29   : > { %v6790_v45 = vpop.eup %6789 }
 0xb2a   : > { %v2451_v46 = vmul.f32 %v6790_v45, %v7584_v31  ;;  %v5804_v45 = vld [vmem:[%s8347_s5 + $0x28] sm:$0xff] }
 0xb2c   : > { %v2459_v47 = vmul.f32 %v5789_v11, %v2451_v46  ;;  %v5803_v46 = vld [vmem:[%s8347_s5 + $0x20] sm:$0xff] }
 0xb2d   : > { %v6792_v48 = vpop.eup %6791 }
 0xb2e   : > { %v2467_v49 = vadd.f32 %v5790_v43, %v2459_v47  ;;  %v2452_v34 = vmul.f32 %v6792_v48, %v7588_v5 }
 0xb30   : > { %6359 = vmatprep.mubr.msk.f32.mxu0 %vm803_vm1, %v2467_v49  ;;  %v2460_v39 = vmul.f32 %v5789_v11, %v2452_v34 }
 0xb32   : > { %v2468_v50 = vadd.f32 %v5790_v43, %v2460_v39 }
 0xb34   : > { %6360 = vmatmul.mubr.msk.f32.gmra.mxu0 %vm803_vm1, %v2468_v50 }
 0xbe8   : > { %v6358_v13 = vpop.f32.mrf.mxu0 }
 0xbe9   : > { %v2562_v54 = vadd.f32 %v6358_v13, %v5791_v18 }
 0xbea   : > { %v2556_v55 = vpop.f32.mrf.mxu0 }
 0xbeb   : > { %v2557_v57 = vadd.f32 %v5791_v18, %v2556_v55  ;;  %v2576_v58 = vmax.f32 %v2562_v54, 0.0 }
 0xbed   : > { %v2575_v52 = vmax.f32 %v2557_v57, 0.0  ;;  %v5801_v57 = vld [vmem:[%s8357_s15] ss:$0 sm:$0xff] }
 0xbef   : > { %6378 = vmatprep.mubr.msk.f32.mxu1 %vm2592_vm2, %v2575_v52 }
 0xbf0   : > { %6379 = vmatmul.mubr.msk.f32.vlgmr.msra.gmra.mxu1 %vm2592_vm2, %v2576_v58 }
 0xbf4   : > { %v6361_v60 = vpop.f32.mrf.mxu0 }
 0xbf5   : > { %v2572_v61 = vadd.f32 %v6361_v60, %v5791_v18 }
 0xbf6   : > { %v2566_v62 = vpop.f32.mrf.mxu0 }
 0xbf7   : > { %v2567_v25 = vadd.f32 %v5791_v18, %v2566_v62  ;;  %v2578_v63 = vmax.f32 %v2572_v61, 0.0  ;;  %v5802_v61 = vld [vmem:[#allocation7] ss:$0 sm:$0xff] }
 0xbf9   : > { %v2577_v26 = vmax.f32 %v2567_v25, 0.0 }
 0xbfb   : > { %6381 = vmatprep.mubr.msk.f32.mxu1 %vm2592_vm2, %v2577_v26 }
 0xbfc   : > { %6382 = vmatmul.mubr.msk.f32.gmra.mxu1 %vm2592_vm2, %v2578_v63 }
 0xcb0   : > { %v6380_v31 = vpop.f32.mrf.mxu1 }
 0xcb1   : > { %v2677_v2 = vadd.f32 %v6380_v31, %v5796_v0 }
 0xcb2   : > { %v2671_v36 = vpop.f32.mrf.mxu1 }
 0xcb3   : > { %v2672_v3 = vadd.f32 %v5796_v0, %v2671_v36  ;;  %v2691_v5 = vadd.f32 %v2677_v2, %v2466_v38  ;;  %v5805_v38 = vld [vmem:[%s8347_s5 + $0x30] sm:$0xff] }
 0xcb5   : > { %v2699_v6 = vsel %vm803_vm1, %v2691_v5, 0.0  ;;  %v2690_v7 = vadd.f32 %v2672_v3, %v2465_v37  ;;  %v5806_v37 = vld [vmem:[%s8347_s5 + $0x38] sm:$0xff] }
 0xcb6   : > { %2700 = vadd.xlane.f32.xlu0 %v2699_v6  ;;  %6384 = vmatprep.subr.mxu0 %v5806_v37 }
 0xcb7   : > { %v2696_v8 = vsel %vm803_vm1, %v2690_v7, 0.0  ;;  %6385 = vmatpush3.msra.mxu0 %v5806_v37 }
 0xcb8   : > { %2697 = vadd.xlane.f32.xlu1 %v2696_v8  ;;  %6386 = vmatprep.subr.mxu0 %v5805_v38  ;;  %v5807_v8 = vld [vmem:[%s8348_s6 + $0x1] ss:$0 sm:$0xff] }
 0xcb9   : > { %6387 = vmatpush3.msra.mxu0 %v5805_v38 }
 0xcba   : > { %6388 = vmatprep.subr.mxu0 %v5804_v45 }
 0xcbb   : > { %6389 = vmatpush3.msra.mxu0 %v5804_v45 }
 0xcbc   : > { %v6383_v59 = vpop.f32.mrf.mxu1  ;;  %6390 = vmatprep.subr.mxu0 %v5803_v46 }
 0xcbd   : > { %v2687_v1 = vadd.f32 %v6383_v59, %v5796_v0  ;;  %6391 = vmatpush3.msra.mxu0 %v5803_v46  ;;  %v7758_v46 = vld [vmem:[%s8390_s22 + $0x10] sm:$0xff] }
 0xcbe   : > { %v2681_v4 = vpop.f32.mrf.mxu1 }
 0xcbf   : > { %v2682_v9 = vadd.f32 %v5796_v0, %v2681_v4  ;;  %v2693_v14 = vadd.f32 %v2687_v1, %v2468_v50 }
 0xcc1   : > { %v2705_v15 = vsel %vm803_vm1, %v2693_v14, 0.0  ;;  %v2692_v16 = vadd.f32 %v2682_v9, %v2467_v49 }
 0xcc2   : > { %2706 = vadd.xlane.f32.xlu0 %v2705_v15 }
 0xcc3   : > { %v2702_v17 = vsel %vm803_vm1, %v2692_v16, 0.0 }
 0xcc4   : > { %2703 = vadd.xlane.f32.xlu1 %v2702_v17 }
 0xd3f   : > { %v2701_v20 = vpop.xlane.xlu0 %2700 }
 0xd40   : > { %v2709_v56 = vmul.f32 0.03125, %v2701_v20 }
 0xd41   : > { %v2698_v21 = vpop.xlane.xlu1 %2697 }
 0xd42   : > { %v2713_v33 = vsub.f32 %v2691_v5, %v2709_v56  ;;  %v2708_v22 = vmul.f32 0.03125, %v2698_v21 }
 0xd44   : > { %v2712_v23 = vsub.f32 %v2690_v7, %v2708_v22  ;;  %v2717_v24 = vmul.f32 %v2713_v33, %v2713_v33 }
 0xd46   : > { %v2723_v27 = vsel %vm803_vm1, %v2717_v24, 0.0  ;;  %v2716_v28 = vmul.f32 %v2712_v23, %v2712_v23 }
 0xd47   : > { %2724 = vadd.xlane.f32.xlu0 %v2723_v27 }
 0xd48   : > { %v2720_v30 = vsel %vm803_vm1, %v2716_v28, 0.0 }
 0xd49   : > { %2721 = vadd.xlane.f32.xlu1 %v2720_v30 }
 0xd4b   : > { %v2707_v32 = vpop.xlane.xlu0 %2706 }
 0xd4c   : > { %v2711_v35 = vmul.f32 0.03125, %v2707_v32 }
 0xd4d   : > { %v2704_v40 = vpop.xlane.xlu1 %2703 }
 0xd4e   : > { %v2715_v10 = vsub.f32 %v2693_v14, %v2711_v35  ;;  %v2710_v11 = vmul.f32 0.03125, %v2704_v40  ;;  %v7738_v40 = vld [vmem:[%s8390_s22 + $0x8] sm:$0xff] }
 0xd50   : > { %v2714_v12 = vsub.f32 %v2692_v16, %v2710_v11  ;;  %v2719_v41 = vmul.f32 %v2715_v10, %v2715_v10 }
 0xd52   : > { %v2729_v42 = vsel %vm803_vm1, %v2719_v41, 0.0  ;;  %v2718_v43 = vmul.f32 %v2714_v12, %v2714_v12 }
 0xd53   : > { %2730 = vadd.xlane.f32.xlu0 %v2729_v42 }
 0xd54   : > { %v2726_v44 = vsel %vm803_vm1, %v2718_v43, 0.0 }
 0xd55   : > { %2727 = vadd.xlane.f32.xlu1 %v2726_v44  ;;  %v7751_v44 = vld [vmem:[%s8390_s22 + $0x18] sm:$0xff] }
 0xdd0   : > { %v2725_v47 = vpop.xlane.xlu0 %2724 }
 0xdd1   : > { %v2733_v48 = vmul.f32 0.03125, %v2725_v47 }
 0xdd2   : > { %v2722_v49 = vpop.xlane.xlu1 %2721 }
 0xdd3   : > { %v2737_v34 = vadd.f32 1e-05, %v2733_v48  ;;  %v2732_v39 = vmul.f32 0.03125, %v2722_v49 }
 0xdd5   : > { %6793 = vrsqrt.f32 %v2737_v34  ;;  %v2736_v50 = vadd.f32 1e-05, %v2732_v39 }
 0xdd7   : > { %6795 = vrsqrt.f32 %v2736_v50 }
 0xddc   : > { %v2731_v51 = vpop.xlane.xlu0 %2730 }
 0xddd   : > { %v2735_v29 = vmul.f32 0.03125, %v2731_v51 }
 0xdde   : > { %v2728_v19 = vpop.xlane.xlu1 %2727 }
 0xddf   : > { %v2739_v53 = vadd.f32 1e-05, %v2735_v29  ;;  %v2734_v18 = vmul.f32 0.03125, %v2728_v19 }
 0xde1   : > { %6797 = vrsqrt.f32 %v2739_v53  ;;  %v2738_v13 = vadd.f32 1e-05, %v2734_v18 }
 0xde2   : > { %v6794_v54 = vpop.eup %6793 }
 0xde3   : > { %v2745_v55 = vmul.f32 %v6794_v54, %v2713_v33  ;;  %6799 = vrsqrt.f32 %v2738_v13 }
 0xde4   : > { %v6796_v52 = vpop.eup %6795 }
 0xde5   : > { %v2744_v58 = vmul.f32 %v6796_v52, %v2712_v23  ;;  %v2753_v60 = vmul.f32 %v5801_v57, %v2745_v55 }
 0xde7   : > { %v2752_v62 = vmul.f32 %v5801_v57, %v2744_v58  ;;  %v7666_v26 = vadd.f32 %v5802_v61, %v2753_v60 }
 0xde9   : > { %v7664_v25 = vadd.f32 %v5802_v61, %v2752_v62 }
 0xdeb   : > { %6392 = vmatprep.mubr.msk.f32.mxu0 %vm803_vm1, %v7664_v25 }
 0xdec   : > { %6393 = vmatmul.mubr.msk.f32.vlgmr.msra.gmra.mxu0 %vm803_vm1, %v7666_v26 }
 0xdee   : > { %v6798_v63 = vpop.eup %6797 }
 0xdef   : > { %v2747_v0 = vmul.f32 %v6798_v63, %v2715_v10 }
 0xdf0   : > { %v6800_v31 = vpop.eup %6799 }
 0xdf1   : > { %v2746_v2 = vmul.f32 %v6800_v31, %v2714_v12  ;;  %v2755_v36 = vmul.f32 %v5801_v57, %v2747_v0  ;;  %v7744_v12 = vld [vmem:[%s8390_s22] sm:$0xff] }
 0xdf3   : > { %v2754_v3 = vmul.f32 %v5801_v57, %v2746_v2  ;;  %v7674_v6 = vadd.f32 %v5802_v61, %v2755_v36 }
 0xdf5   : > { %v7672_v5 = vadd.f32 %v5802_v61, %v2754_v3 }
 0xdf7   : > { %6395 = vmatprep.mubr.msk.f32.mxu0 %vm803_vm1, %v7672_v5 }
 0xdf8   : > { %6396 = vmatmul.mubr.msk.f32.gmra.mxu0 %vm803_vm1, %v7674_v6 }
 0xeac   : > { %v6394_v7 = vpop.f32.mrf.mxu0 }
 0xead   : > { %v7696_v17 = vadd.f32 %v6394_v7, %v5807_v8 }
 0xeae   : > { %v2852_v59 = vpop.f32.mrf.mxu0 }
 0xeaf   : > { %v7683_v1 = vadd.f32 %v5807_v8, %v2852_v59  ;;  %v7721_v24 = vmul.f32 0.35355338, %v7696_v17 }
 0xeb1   : > { %v7686_v4 = vmul.f32 0.35355338, %v7683_v1 }
 0xeb3   : > { %6406 = vmatprep.mubr.msk.f32.mxu0 %vm684_vm0, %v7686_v4 }
 0xeb8   : > { %v6397_v9 = vpop.f32.mrf.mxu0 }
 0xeb9   : > { %v7690_v14 = vadd.f32 %v6397_v9, %v5807_v8 }
 0xeba   : > { %v2862_v15 = vpop.f32.mrf.mxu0 }
 0xebb   : > { %v7692_v16 = vadd.f32 %v5807_v8, %v2862_v15  ;;  %2890 = vrot.lane.b32.xlu1 %v7690_v14, %s6990_s27  ;;  %v7731_v30 = vmul.f32 0.35355338, %v7690_v14 }
 0xebd   : > { %2888 = vrot.lane.b32.xlu0 %v7692_v16, %s6990_s27  ;;  %v7724_v28 = vmul.f32 0.35355338, %v7692_v16 }
 0xebf   : > { %2886 = vrot.lane.b32.xlu1 %v7696_v17, %s6990_s27 }
 0xec1   : > { %3045 = vrot.lane.b32.xlu0 %v7692_v16, %s6996_s2 }
 0xec3   : > { %2884 = vrot.lane.b32.xlu1 %v7683_v1, %s6990_s27  ;;  %s8395_s27 = smov 104  }
 0xec7   : > { %3047 = vrot.lane.b32.xlu1 %v7690_v14, %s6996_s2 }
 0xecb   : > { %3043 = vrot.lane.b32.xlu1 %v7696_v17, %s6996_s2 }
 0xecf   : > { %3041 = vrot.lane.b32.xlu1 %v7683_v1, %s6996_s2  ;;  %s8396_s2 = smov 48  }
 0xf2d   : > { %v2891_v20 = vpop.permute.xlu1 %2890 }
 0xf2e   : > { %6398 = vmatprep.subr.msk.mxu0 %vm684_vm0, %v2891_v20 }
 0xf2f   : > { %6399 = vmatpush3.xpose.msk.msra.mxu0 %vm684_vm0, %v2891_v20  ;;  %v2889_v56 = vpop.permute.xlu0 %2888 }
 0xf30   : > { %6400 = vmatprep.subr.msk.mxu0 %vm684_vm0, %v2889_v56 }
 0xf31   : > { %v2887_v21 = vpop.permute.xlu1 %2886 }
 0xf33   : > { %6401 = vmatpush3.xpose.msk.msra.mxu0 %vm684_vm0, %v2889_v56  ;;  %v3046_v23 = vpop.permute.xlu0 %3045 }
 0xf34   : > { %6402 = vmatprep.subr.msk.mxu0 %vm684_vm0, %v2887_v21 }
 0xf35   : > { %v2885_v33 = vpop.permute.xlu1 %2884 }
 0xf37   : > { %6403 = vmatpush3.xpose.msk.msra.mxu0 %vm684_vm0, %v2887_v21 }
 0xf38   : > { %6404 = vmatprep.subr.msk.mxu0 %vm684_vm0, %v2885_v33 }
 0xf39   : > { %v3048_v22 = vpop.permute.xlu1 %3047 }
 0xf3a   : > { %6412 = vmatprep.subr.mxu1 %v3048_v22 }
 0xf3b   : > { %6405 = vmatpush3.xpose.msk.msra.mxu0 %vm684_vm0, %v2885_v33  ;;  %6413 = vmatpush3.msra.mxu1 %v3048_v22 }
 0xf3c   : > { %6414 = vmatprep.subr.mxu1 %v3046_v23 }
 0xf3d   : > { %v3044_v27 = vpop.permute.xlu1 %3043  ;;  %6415 = vmatpush3.msra.mxu1 %v3046_v23 }
 0xf3e   : > { %6407 = vmatmul.mubr.msk.f32.vlgmr.msra.gmra.mxu0 %vm684_vm0, %v7721_v24  ;;  %6416 = vmatprep.subr.mxu1 %v3044_v27 }
 0xf3f   : > { %6409 = vmatprep.mubr.msk.f32.mxu0 %vm684_vm0, %v7724_v28  ;;  %6417 = vmatpush3.msra.mxu1 %v3044_v27 }
 0xf41   : > { %v3042_v32 = vpop.permute.xlu1 %3041 }
 0xf42   : > { %6410 = vmatmul.mubr.msk.f32.gmra.mxu0 %vm684_vm0, %v7731_v30  ;;  %6418 = vmatprep.subr.mxu1 %v3042_v32 }
 0xf43   : > { %6419 = vmatpush3.msra.mxu1 %v3042_v32 }
 0xffe   : > { %v6408_v35 = vpop.f32.mrf.mxu0 }
 0xfff   : > { %v2984_v10 = vadd.f32 %v7738_v40, %v6408_v35 }
0x1000   : > { %v2978_v11 = vpop.f32.mrf.mxu0 }
0x1001   : > { %v2979_v41 = vadd.f32 %v7744_v12, %v2978_v11  ;;  %v3000_v42 = vsel %vm803_vm1, %v2984_v10, -inf }
0x1002   : > { %3001 = vmax.xlane.f32.xlu1 %v3000_v42  ;;  %v6411_v43 = vpop.f32.mrf.mxu0  ;;  %v2876_v42 = vld [vmem:[#allocation3 + $0x20] sm:$0xff] }
0x1003   : > { %v2994_v37 = vadd.f32 %v7751_v44, %v6411_v43  ;;  %v2997_v38 = vsel %vm803_vm1, %v2979_v41, -inf }
0x1004   : > { %2998 = vmax.xlane.f32.xlu0 %v2997_v38  ;;  %v2988_v45 = vpop.f32.mrf.mxu0 }
0x1005   : > { %v2989_v47 = vadd.f32 %v7758_v46, %v2988_v45  ;;  %v3006_v48 = vsel %vm803_vm1, %v2994_v37, -inf }
0x1007   : > { %v3003_v49 = vsel %vm803_vm1, %v2989_v47, -inf }
0x1008   : > { %3007 = vmax.xlane.f32.xlu0 %v3006_v48 }
0x100c   : > { %3004 = vmax.xlane.f32.xlu0 %v3003_v49 }
0x1013   : > { %3162 = vrot.lane.b32.xlu1 %v7692_v16, %s6991_s4 }
0x1022   : > { %3164 = vrot.lane.b32.xlu0 %v7690_v14, %s6991_s4 }
0x108b   : > { %v3002_v34 = vpop.xlane.xlu1 %3001 }
0x108c   : > { %v3010_v39 = vsub.f32 %v2984_v10, %v3002_v34 }
0x108d   : > { %v2999_v50 = vpop.xlane.xlu0 %2998 }
0x108e   : > { %v3015_v51 = vmul.f32 1.442695, %v3010_v39  ;;  %v3009_v29 = vsub.f32 %v2979_v41, %v2999_v50 }
0x108f   : > { %v3163_v36 = vpop.permute.xlu1 %3162 }
0x1090   : > { %6801 = vpow2.f32 %v3015_v51  ;;  %v3013_v19 = vmul.f32 1.442695, %v3009_v29 }
0x1091   : > { %v3008_v53 = vpop.xlane.xlu0 %3007 }
0x1092   : > { %6803 = vpow2.f32 %v3013_v19  ;;  %v3012_v58 = vsub.f32 %v2994_v37, %v3008_v53 }
0x1094   : > { %v3019_v61 = vmul.f32 1.442695, %v3012_v58 }
0x1095   : > { %v3005_v18 = vpop.xlane.xlu0 %3004 }
0x1096   : > { %v3011_v60 = vsub.f32 %v2989_v47, %v3005_v18  ;;  %6805 = vpow2.f32 %v3019_v61 }
0x1098   : > { %v3017_v62 = vmul.f32 1.442695, %v3011_v60 }
0x1099   : > { %v3165_v13 = vpop.permute.xlu0 %3164 }
0x109a   : > { %6426 = vmatprep.subr.msk.mxu1 %vm684_vm0, %v3165_v13  ;;  %6807 = vpow2.f32 %v3017_v62 }
0x109d   : > { %v6802_v54 = vpop.eup %6801 }
0x109e   : > { %v3024_v55 = vsel %vm803_vm1, %v6802_v54, 0.0 }
0x109f   : > { %v6804_v57 = vpop.eup %6803  ;;  %3025 = vadd.xlane.f32.xlu0 %v3024_v55 }
0x10a0   : > { %v3021_v52 = vsel %vm803_vm1, %v6804_v57, 0.0 }
0x10a1   : > { %3022 = vadd.xlane.f32.xlu1 %v3021_v52 }
0x10a3   : > { %v6806_v63 = vpop.eup %6805 }
0x10a4   : > { %v3030_v31 = vsel %vm803_vm1, %v6806_v63, 0.0 }
0x10a7   : > { %v6808_v0 = vpop.eup %6807 }
0x10a8   : > { %v3027_v2 = vsel %vm803_vm1, %v6808_v0, 0.0 }
0x10b2   : > { %3158 = vrot.lane.b32.xlu1 %v7683_v1, %s6991_s4 }
0x10b5   : > { %3160 = vrot.lane.b32.xlu0 %v7696_v17, %s6991_s4  ;;  %s8391_s4 = smov 56  }
0x10d4   : > { %3031 = vadd.xlane.f32.xlu0 %v3030_v31 }
0x10d6   : > { %3028 = vadd.xlane.f32.xlu1 %v3027_v2 }
0x10e7   : > { %3152 = vrot.lane.b32.xlu1 %v7721_v24, %s6992_s30 }
0x10ea   : > { %3150 = vrot.lane.b32.xlu0 %v7686_v4, %s6992_s30 }
0x10eb   : > { %3156 = vrot.lane.b32.xlu1 %v7731_v30, %s6992_s30 }
0x10ee   : > { %3154 = vrot.lane.b32.xlu0 %v7724_v28, %s6992_s30  ;;  %s8392_s30 = smov 80  }
0x1128   : > { %v3026_v3 = vpop.xlane.xlu0 %3025 }
0x1129   : > { %6809 = vrcp.f32 %v3026_v3 }
0x112a   : > { %v3023_v7 = vpop.xlane.xlu1 %3022 }
0x112b   : > { %6811 = vrcp.f32 %v3023_v7 }
0x112c   : > { %v3161_v20 = vpop.permute.xlu0 %3160 }
0x112e   : > { %v3159_v56 = vpop.permute.xlu1 %3158 }
0x1136   : > { %v6810_v8 = vpop.eup %6809 }
0x1137   : > { %v3038_v15 = vmul.f32 %v6810_v8, %v6802_v54 }
0x1138   : > { %v6812_v59 = vpop.eup %6811 }
0x1139   : > { %v3037_v9 = vmul.f32 %v6812_v59, %v6804_v57 }
0x113b   : > { %6420 = vmatprep.mubr.msk.f32.mxu1 %vm803_vm1, %v3037_v9 }
0x113c   : > { %6421 = vmatmul.mubr.msk.f32.vlgmr.msra.gmra.mxu1 %vm803_vm1, %v3038_v15 }
0x113d   : > { %6427 = vmatpush3.xpose.msk.msra.mxu1 %vm684_vm0, %v3165_v13 }
0x113e   : > { %6428 = vmatprep.subr.msk.mxu1 %vm684_vm0, %v3163_v36 }
0x1141   : > { %6429 = vmatpush3.xpose.msk.msra.mxu1 %vm684_vm0, %v3163_v36 }
0x1142   : > { %6430 = vmatprep.subr.msk.mxu1 %vm684_vm0, %v3161_v20 }
0x1145   : > { %6431 = vmatpush3.xpose.msk.msra.mxu1 %vm684_vm0, %v3161_v20 }
0x1146   : > { %6432 = vmatprep.subr.msk.mxu1 %vm684_vm0, %v3159_v56 }
0x1149   : > { %6433 = vmatpush3.xpose.msk.msra.mxu1 %vm684_vm0, %v3159_v56 }
0x114a   : > { %6462 = vmatprep.subr.mxu1 %v2876_v42 }
0x115d   : > { %v3032_v21 = vpop.xlane.xlu0 %3031 }
0x115e   : > { %6813 = vrcp.f32 %v3032_v21 }
0x115f   : > { %v3029_v33 = vpop.xlane.xlu1 %3028 }
0x1160   : > { %6815 = vrcp.f32 %v3029_v33 }
0x1161   : > { %v3151_v32 = vpop.permute.xlu0 %3150 }
0x1163   : > { %v3153_v10 = vpop.permute.xlu1 %3152 }
0x1165   : > { %v3155_v11 = vpop.permute.xlu0 %3154 }
0x1167   : > { %v3157_v41 = vpop.permute.xlu1 %3156 }
0x116b   : > { %v6814_v22 = vpop.eup %6813 }
0x116c   : > { %v3040_v35 = vmul.f32 %v6814_v22, %v6806_v63 }
0x116d   : > { %v6816_v23 = vpop.eup %6815 }
0x116e   : > { %v3039_v27 = vmul.f32 %v6816_v23, %v6808_v0 }
0x1170   : > { %6423 = vmatprep.mubr.msk.f32.mxu1 %vm803_vm1, %v3039_v27 }
0x1171   : > { %6424 = vmatmul.mubr.msk.f32.gmra.mxu1 %vm803_vm1, %v3040_v35  ;;  %v2877_v35 = vld [vmem:[#allocation3 + $0x28] sm:$0xff] }
0x1172   : > { %6434 = vmatprep.mubr.msk.f32.mxu1 %vm684_vm0, %v3151_v32 }
0x1175   : > { %6435 = vmatmul.mubr.msk.f32.vlgmr.msra.gmra.mxu1 %vm684_vm0, %v3153_v10 }
0x1176   : > { %6437 = vmatprep.mubr.msk.f32.mxu1 %vm684_vm0, %v3155_v11  ;;  %6463 = vmatpush3.msra.mxu1 %v2876_v42 }
0x1179   : > { %6438 = vmatmul.mubr.msk.f32.gmra.mxu1 %vm684_vm0, %v3157_v41 }
0x11fc   : > { %v6422_v43 = vpop.f32.mrf.mxu1 }
0x11fe   : > { %v3131_v37 = vpop.f32.mrf.mxu1 }
0x11ff   : > { %6464 = vmatprep.mubr.msk.f32.mxu1 %vm684_vm0, %v3131_v37 }
0x1200   : > { %6465 = vmatmul.mubr.msk.f32.vlgmr.msra.gmra.mxu1 %vm684_vm0, %v6422_v43 }
0x1231   : > { %v6425_v38 = vpop.f32.mrf.mxu1 }
0x1233   : > { %v3141_v45 = vpop.f32.mrf.mxu1 }
0x1234   : > { %6467 = vmatprep.mubr.msk.f32.mxu1 %vm684_vm0, %v3141_v45 }
0x1235   : > { %v6436_v47 = vpop.f32.mrf.mxu1  ;;  %6468 = vmatmul.mubr.msk.f32.gmra.mxu1 %vm684_vm0, %v6425_v38 }
0x1236   : > { %v3254_v48 = vadd.f32 %v7738_v40, %v6436_v47 }
0x1237   : > { %v3248_v49 = vpop.f32.mrf.mxu1 }
0x1238   : > { %v3249_v34 = vadd.f32 %v7744_v12, %v3248_v49  ;;  %v3270_v39 = vsel %vm803_vm1, %v3254_v48, -inf }
0x1239   : > { %3271 = vmax.xlane.f32.xlu1 %v3270_v39  ;;  %v6439_v50 = vpop.f32.mrf.mxu1 }
0x123a   : > { %v3267_v51 = vsel %vm803_vm1, %v3249_v34, -inf  ;;  %v3264_v53 = vadd.f32 %v7751_v44, %v6439_v50 }
0x123b   : > { %3268 = vmax.xlane.f32.xlu0 %v3267_v51  ;;  %v3258_v29 = vpop.f32.mrf.mxu1 }
0x123c   : > { %v3259_v19 = vadd.f32 %v7758_v46, %v3258_v29  ;;  %v3276_v13 = vsel %vm803_vm1, %v3264_v53, -inf }
0x123e   : > { %v3273_v18 = vsel %vm803_vm1, %v3259_v19, -inf }
0x123f   : > { %3274 = vmax.xlane.f32.xlu0 %v3273_v18 }
0x1243   : > { %3277 = vmax.xlane.f32.xlu0 %v3276_v13 }
0x124a   : > { %3317 = vrot.lane.b32.xlu1 %v7690_v14, %s8391_s4 }
0x12c2   : > { %v3272_v54 = vpop.xlane.xlu1 %3271 }
0x12c3   : > { %v3280_v55 = vsub.f32 %v3254_v48, %v3272_v54 }
0x12c4   : > { %v3269_v57 = vpop.xlane.xlu0 %3268 }
0x12c5   : > { %v3285_v52 = vmul.f32 1.442695, %v3280_v55  ;;  %v3279_v58 = vsub.f32 %v3249_v34, %v3269_v57 }
0x12c6   : > { %v3318_v60 = vpop.permute.xlu1 %3317 }
0x12c7   : > { %6817 = vpow2.f32 %v3285_v52  ;;  %v3283_v61 = vmul.f32 1.442695, %v3279_v58  ;;  %6440 = vmatprep.subr.mxu0 %v3318_v60 }
0x12c8   : > { %6441 = vmatpush3.msra.mxu0 %v3318_v60  ;;  %v3275_v62 = vpop.xlane.xlu0 %3274 }
0x12c9   : > { %6819 = vpow2.f32 %v3283_v61  ;;  %v3281_v9 = vsub.f32 %v3259_v19, %v3275_v62 }
0x12cb   : > { %v3287_v15 = vmul.f32 1.442695, %v3281_v9 }
0x12cc   : > { %v3278_v63 = vpop.xlane.xlu0 %3277 }
0x12cd   : > { %v3282_v0 = vsub.f32 %v3264_v53, %v3278_v63 }
0x12cf   : > { %v3289_v31 = vmul.f32 1.442695, %v3282_v0 }
0x12d1   : > { %6821 = vpow2.f32 %v3289_v31 }
0x12d2   : > { %6823 = vpow2.f32 %v3287_v15 }
0x12d4   : > { %v6818_v2 = vpop.eup %6817 }
0x12d5   : > { %v3294_v36 = vsel %vm803_vm1, %v6818_v2, 0.0 }
0x12d6   : > { %v6820_v3 = vpop.eup %6819  ;;  %3295 = vadd.xlane.f32.xlu0 %v3294_v36 }
0x12d7   : > { %v3291_v7 = vsel %vm803_vm1, %v6820_v3, 0.0 }
0x12d8   : > { %3292 = vadd.xlane.f32.xlu1 %v3291_v7 }
0x12de   : > { %v6822_v8 = vpop.eup %6821 }
0x12df   : > { %v3300_v59 = vsel %vm803_vm1, %v6822_v8, 0.0  ;;  %v6824_v20 = vpop.eup %6823 }
0x12e0   : > { %3301 = vadd.xlane.f32.xlu0 %v3300_v59  ;;  %v3297_v56 = vsel %vm803_vm1, %v6824_v20, 0.0 }
0x12e9   : > { %3313 = vrot.lane.b32.xlu1 %v7696_v17, %s8391_s4 }
0x12f6   : > { %3315 = vrot.lane.b32.xlu0 %v7692_v16, %s8391_s4 }
0x12fa   : > { %3628 = vrot.lane.b32.xlu0 %v7690_v14, %s8392_s30 }
0x12fe   : > { %3624 = vrot.lane.b32.xlu0 %v7696_v17, %s8392_s30 }
0x1302   : > { %3614 = vrot.lane.b32.xlu0 %v7686_v4, %s8393_s21 }
0x1306   : > { %3618 = vrot.lane.b32.xlu0 %v7724_v28, %s8393_s21 }
0x130a   : > { %3999 = vrot.lane.b32.xlu0 %v7690_v14, %s8394_s3 }
0x130d   : > { %3298 = vadd.xlane.f32.xlu1 %v3297_v56 }
0x130e   : > { %3995 = vrot.lane.b32.xlu0 %v7696_v17, %s8394_s3 }
0x1312   : > { %3985 = vrot.lane.b32.xlu0 %v7686_v4, %s8395_s27 }
0x1316   : > { %3989 = vrot.lane.b32.xlu0 %v7724_v28, %s8395_s27 }
0x131e   : > { %3311 = vrot.lane.b32.xlu1 %v7683_v1, %s8391_s4 }
0x1322   : > { %3626 = vrot.lane.b32.xlu1 %v7692_v16, %s8392_s30 }
0x1326   : > { %3622 = vrot.lane.b32.xlu1 %v7683_v1, %s8392_s30 }
0x132a   : > { %3616 = vrot.lane.b32.xlu1 %v7721_v24, %s8393_s21 }
0x132e   : > { %3620 = vrot.lane.b32.xlu1 %v7731_v30, %s8393_s21 }
0x1332   : > { %3997 = vrot.lane.b32.xlu1 %v7692_v16, %s8394_s3 }
0x1336   : > { %3993 = vrot.lane.b32.xlu1 %v7683_v1, %s8394_s3 }
0x133a   : > { %3987 = vrot.lane.b32.xlu1 %v7721_v24, %s8395_s27 }
0x133e   : > { %3991 = vrot.lane.b32.xlu1 %v7731_v30, %s8395_s27 }
0x135f   : > { %v3296_v28 = vpop.xlane.xlu0 %3295 }
0x1361   : > { %v3293_v4 = vpop.xlane.xlu1 %3292 }
0x1362   : > { %6825 = vrcp.f32 %v3293_v4 }
0x1363   : > { %6827 = vrcp.f32 %v3296_v28 }
0x1365   : > { %v3314_v23 = vpop.permute.xlu1 %3313 }
0x1369   : > { %v3302_v21 = vpop.xlane.xlu0 %3301 }
0x136a   : > { %6829 = vrcp.f32 %v3302_v21 }
0x136d   : > { %v3316_v33 = vpop.permute.xlu0 %3315 }
0x136e   : > { %6442 = vmatprep.subr.mxu0 %v3316_v33 }
0x136f   : > { %v6826_v22 = vpop.eup %6825  ;;  %6443 = vmatpush3.msra.mxu0 %v3316_v33 }
0x1370   : > { %6444 = vmatprep.subr.mxu0 %v3314_v23  ;;  %v3307_v27 = vmul.f32 %v6826_v22, %v6820_v3  ;;  %v6828_v32 = vpop.eup %6827 }
0x1371   : > { %6445 = vmatpush3.msra.mxu0 %v3314_v23  ;;  %v3308_v10 = vmul.f32 %v6828_v32, %v6818_v2  ;;  %v3629_v11 = vpop.permute.xlu0 %3628 }
0x1372   : > { %6448 = vmatprep.mubr.msk.f32.mxu0 %vm803_vm1, %v3307_v27 }
0x1375   : > { %v3625_v38 = vpop.permute.xlu0 %3624 }
0x1377   : > { %v6830_v41 = vpop.eup %6829 }
0x1378   : > { %v3310_v37 = vmul.f32 %v6830_v41, %v6822_v8 }
0x1379   : > { %v3615_v47 = vpop.permute.xlu0 %3614 }
0x137d   : > { %v3619_v39 = vpop.permute.xlu0 %3618 }
0x1381   : > { %v4000_v29 = vpop.permute.xlu0 %3999 }
0x1385   : > { %v3996_v18 = vpop.permute.xlu0 %3995 }
0x1389   : > { %v3986_v54 = vpop.permute.xlu0 %3985 }
0x138d   : > { %v3990_v52 = vpop.permute.xlu0 %3989 }
0x1396   : > { %v3299_v24 = vpop.xlane.xlu1 %3298 }
0x1397   : > { %6831 = vrcp.f32 %v3299_v24 }
0x139a   : > { %v3312_v30 = vpop.permute.xlu1 %3311 }
0x139b   : > { %6446 = vmatprep.subr.mxu0 %v3312_v30 }
0x139c   : > { %6447 = vmatpush3.msra.mxu0 %v3312_v30 }
0x139d   : > { %6449 = vmatmul.mubr.msk.f32.vlgmr.msra.gmra.mxu0 %vm803_vm1, %v3308_v10  ;;  %6454 = vmatprep.subr.mxu0 %v2877_v35 }
0x139e   : > { %6455 = vmatpush3.msra.mxu0 %v2877_v35  ;;  %v3627_v45 = vpop.permute.xlu1 %3626 }
0x139f   : > { %6470 = vmatprep.subr.msk.mxu0 %vm684_vm0, %v3629_v11 }
0x13a2   : > { %v3623_v34 = vpop.permute.xlu1 %3622 }
0x13a4   : > { %v6832_v42 = vpop.eup %6831 }
0x13a5   : > { %v3309_v43 = vmul.f32 %v6832_v42, %v6824_v20 }
0x13a6   : > { %v3617_v50 = vpop.permute.xlu1 %3616 }
0x13a7   : > { %6451 = vmatprep.mubr.msk.f32.mxu0 %vm803_vm1, %v3309_v43 }
0x13a8   : > { %6452 = vmatmul.mubr.msk.f32.gmra.mxu0 %vm803_vm1, %v3310_v37 }
0x13aa   : > { %v3621_v53 = vpop.permute.xlu1 %3620 }
0x13ae   : > { %v3998_v13 = vpop.permute.xlu1 %3997 }
0x13b2   : > { %v3994_v55 = vpop.permute.xlu1 %3993 }
0x13b6   : > { %v3988_v57 = vpop.permute.xlu1 %3987 }
0x13ba   : > { %v3992_v58 = vpop.permute.xlu1 %3991 }
0x145d   : > { %v6450_v48 = vpop.f32.mrf.mxu0 }
0x145f   : > { %v3401_v49 = vpop.f32.mrf.mxu0 }
0x1460   : > { %6456 = vmatprep.mubr.msk.f32.mxu0 %vm684_vm0, %v3401_v49 }
0x1461   : > { %6457 = vmatmul.mubr.msk.f32.vlgmr.msra.gmra.mxu0 %vm684_vm0, %v6450_v48 }
0x1462   : > { %6471 = vmatpush3.xpose.msk.msra.mxu0 %vm684_vm0, %v3629_v11 }
0x1463   : > { %6472 = vmatprep.subr.msk.mxu0 %vm684_vm0, %v3627_v45 }
0x1466   : > { %6473 = vmatpush3.xpose.msk.msra.mxu0 %vm684_vm0, %v3627_v45 }
0x1467   : > { %6474 = vmatprep.subr.msk.mxu0 %vm684_vm0, %v3625_v38 }
0x1468   : > { %v6453_v51 = vpop.f32.mrf.mxu0 }
0x146a   : > { %6475 = vmatpush3.xpose.msk.msra.mxu0 %vm684_vm0, %v3625_v38  ;;  %v3411_v19 = vpop.f32.mrf.mxu0 }
0x146b   : > { %6476 = vmatprep.subr.msk.mxu0 %vm684_vm0, %v3623_v34  ;;  %6459 = vmatprep.mubr.msk.f32.mxu0 %vm684_vm0, %v3411_v19 }
0x146c   : > { %6460 = vmatmul.mubr.msk.f32.gmra.mxu0 %vm684_vm0, %v6453_v51 }
0x146d   : > { %6478 = vmatprep.mubr.msk.f32.mxu0 %vm684_vm0, %v3615_v47 }
0x146e   : > { %6477 = vmatpush3.xpose.msk.msra.mxu0 %vm684_vm0, %v3623_v34 }
0x146f   : > { %6506 = vmatprep.subr.msk.mxu0 %vm684_vm0, %v4000_v29 }
0x1471   : > { %6479 = vmatmul.mubr.msk.f32.vlgmr.msra.gmra.mxu0 %vm684_vm0, %v3617_v50 }
0x1472   : > { %6481 = vmatprep.mubr.msk.f32.mxu0 %vm684_vm0, %v3619_v39  ;;  %6507 = vmatpush3.xpose.msk.msra.mxu0 %vm684_vm0, %v4000_v29 }
0x1473   : > { %6508 = vmatprep.subr.msk.mxu0 %vm684_vm0, %v3998_v13 }
0x1475   : > { %6482 = vmatmul.mubr.msk.f32.gmra.mxu0 %vm684_vm0, %v3621_v53 }
0x1476   : > { %6509 = vmatpush3.xpose.msk.msra.mxu0 %vm684_vm0, %v3998_v13  ;;  %6514 = vmatprep.mubr.msk.f32.mxu0 %vm684_vm0, %v3986_v54 }
0x1477   : > { %6510 = vmatprep.subr.msk.mxu0 %vm684_vm0, %v3996_v18 }
0x147a   : > { %6511 = vmatpush3.xpose.msk.msra.mxu0 %vm684_vm0, %v3996_v18 }
0x147b   : > { %6512 = vmatprep.subr.msk.mxu0 %vm684_vm0, %v3994_v55 }
0x147e   : > { %6513 = vmatpush3.xpose.msk.msra.mxu0 %vm684_vm0, %v3994_v55 }
0x1481   : > { %6515 = vmatmul.mubr.msk.f32.vlgmr.msra.gmra.mxu0 %vm684_vm0, %v3988_v57 }
0x1482   : > { %6517 = vmatprep.mubr.msk.f32.mxu0 %vm684_vm0, %v3990_v52 }
0x1485   : > { %6518 = vmatmul.mubr.msk.f32.gmra.mxu0 %vm684_vm0, %v3992_v58 }
0x1521   : > { %v7887_v60 = vpop.f32.mrf.mxu0 }
0x1523   : > { %v7889_v61 = vpop.f32.mrf.mxu0 }
0x152c   : > { %v7891_v62 = vpop.f32.mrf.mxu0 }
0x152e   : > { %v7893_v63 = vpop.f32.mrf.mxu0 }
0x1531   : > { %v6480_v0 = vpop.f32.mrf.mxu0 }
0x1532   : > { %v3718_v31 = vadd.f32 %v7738_v40, %v6480_v0 }
0x1533   : > { %v3712_v2 = vpop.f32.mrf.mxu0 }
0x1534   : > { %v3713_v36 = vadd.f32 %v7744_v12, %v3712_v2  ;;  %v3734_v3 = vsel %vm803_vm1, %v3718_v31, -inf  ;;  %v2878_v2 = vld [vmem:[#allocation3 + $0x30] sm:$0xff] }
0x1535   : > { %3735 = vmax.xlane.f32.xlu1 %v3734_v3  ;;  %v6483_v7 = vpop.f32.mrf.mxu0 }
0x1536   : > { %v3731_v8 = vsel %vm803_vm1, %v3713_v36, -inf  ;;  %v3728_v15 = vadd.f32 %v7751_v44, %v6483_v7 }
0x1537   : > { %3732 = vmax.xlane.f32.xlu0 %v3731_v8  ;;  %v3722_v59 = vpop.f32.mrf.mxu0 }
0x1538   : > { %v3723_v9 = vadd.f32 %v7758_v46, %v3722_v59  ;;  %v3740_v56 = vsel %vm803_vm1, %v3728_v15, -inf }
0x153a   : > { %v3737_v20 = vsel %vm803_vm1, %v3723_v9, -inf }
0x153b   : > { %3738 = vmax.xlane.f32.xlu0 %v3737_v20 }
0x153f   : > { %3741 = vmax.xlane.f32.xlu0 %v3740_v56 }
0x1541   : > { %v6516_v47 = vpop.f32.mrf.mxu0 }
0x1543   : > { %v4083_v49 = vpop.f32.mrf.mxu0 }
0x1544   : > { %v4084_v50 = vadd.f32 %v7744_v12, %v4083_v49  ;;  %v4089_v12 = vadd.f32 %v7738_v40, %v6516_v47 }
0x1545   : > { %v6519_v39 = vpop.f32.mrf.mxu0 }
0x1546   : > { %3781 = vrot.lane.b32.xlu1 %v7690_v14, %s8396_s2  ;;  %v4102_v19 = vsel %vm803_vm1, %v4084_v50, -inf  ;;  %v4099_v53 = vadd.f32 %v7751_v44, %v6519_v39 }
0x1547   : > { %v4093_v51 = vpop.f32.mrf.mxu0 }
0x1548   : > { %v7915_v29 = vadd.f32 %v7758_v46, %v4093_v51  ;;  %v4111_v13 = vsel %vm803_vm1, %v4099_v53, -inf  ;;  %v4105_v46 = vsel %vm803_vm1, %v4089_v12, -inf }
0x154a   : > { %v4108_v18 = vsel %vm803_vm1, %v7915_v29, -inf }
0x15be   : > { %v3736_v4 = vpop.xlane.xlu1 %3735 }
0x15bf   : > { %v3744_v28 = vsub.f32 %v3718_v31, %v3736_v4 }
0x15c0   : > { %v3733_v21 = vpop.xlane.xlu0 %3732 }
0x15c1   : > { %v3749_v33 = vmul.f32 1.442695, %v3744_v28  ;;  %v3743_v22 = vsub.f32 %v3713_v36, %v3733_v21 }
0x15c2   : > { %v3782_v23 = vpop.permute.xlu1 %3781 }
0x15c3   : > { %6833 = vpow2.f32 %v3749_v33  ;;  %v3747_v27 = vmul.f32 1.442695, %v3743_v22  ;;  %6484 = vmatprep.subr.mxu1 %v3782_v23 }
0x15c4   : > { %6485 = vmatpush3.msra.mxu1 %v3782_v23  ;;  %v3739_v24 = vpop.xlane.xlu0 %3738 }
0x15c5   : > { %6835 = vpow2.f32 %v3747_v27  ;;  %v3745_v38 = vsub.f32 %v3723_v9, %v3739_v24 }
0x15c7   : > { %v3751_v45 = vmul.f32 1.442695, %v3745_v38 }
0x15c8   : > { %v3742_v32 = vpop.xlane.xlu0 %3741 }
0x15c9   : > { %v3746_v30 = vsub.f32 %v3728_v15, %v3742_v32 }
0x15cb   : > { %v3753_v35 = vmul.f32 1.442695, %v3746_v30 }
0x15cd   : > { %6837 = vpow2.f32 %v3753_v35 }
0x15ce   : > { %6839 = vpow2.f32 %v3751_v45 }
0x15d0   : > { %v6834_v10 = vpop.eup %6833 }
0x15d1   : > { %v3758_v11 = vsel %vm803_vm1, %v6834_v10, 0.0 }
0x15d2   : > { %v6836_v41 = vpop.eup %6835  ;;  %3759 = vadd.xlane.f32.xlu0 %v3758_v11 }
0x15d3   : > { %v3755_v42 = vsel %vm803_vm1, %v6836_v41, 0.0 }
0x15d4   : > { %3756 = vadd.xlane.f32.xlu1 %v3755_v42 }
0x15da   : > { %v6838_v43 = vpop.eup %6837 }
0x15db   : > { %v3764_v37 = vsel %vm803_vm1, %v6838_v43, 0.0  ;;  %v6840_v48 = vpop.eup %6839 }
0x15dc   : > { %3765 = vadd.xlane.f32.xlu0 %v3764_v37  ;;  %v3761_v34 = vsel %vm803_vm1, %v6840_v48, 0.0  ;;  %v6466_v37 = vpop.f32.mrf.mxu1 }
0x15de   : > { %v3595_v38 = vpop.f32.mrf.mxu1 }
0x15e0   : > { %v6469_v45 = vpop.f32.mrf.mxu1 }
0x15e5   : > { %3777 = vrot.lane.b32.xlu1 %v7696_v17, %s8396_s2 }
0x15f2   : > { %3779 = vrot.lane.b32.xlu0 %v7692_v16, %s8396_s2 }
0x1609   : > { %3762 = vadd.xlane.f32.xlu1 %v3761_v34 }
0x1611   : > { %4103 = vmax.xlane.f32.xlu0 %v4102_v19 }
0x1615   : > { %4109 = vmax.xlane.f32.xlu0 %v4108_v18 }
0x1619   : > { %4112 = vmax.xlane.f32.xlu0 %v4111_v13 }
0x161a   : > { %3775 = vrot.lane.b32.xlu1 %v7683_v1, %s8396_s2 }
0x163e   : > { %4106 = vmax.xlane.f32.xlu1 %v4105_v46 }
0x164f   : > { %4152 = vrot.lane.b32.xlu1 %v7690_v14, %s8397_s25 }
0x165b   : > { %v3760_v44 = vpop.xlane.xlu0 %3759 }
0x165d   : > { %v3757_v54 = vpop.xlane.xlu1 %3756 }
0x165e   : > { %6841 = vrcp.f32 %v3757_v54 }
0x165f   : > { %6843 = vrcp.f32 %v3760_v44 }
0x1661   : > { %v3778_v58 = vpop.permute.xlu1 %3777 }
0x1665   : > { %v3766_v55 = vpop.xlane.xlu0 %3765 }
0x1666   : > { %6845 = vrcp.f32 %v3766_v55 }
0x1669   : > { %v3780_v57 = vpop.permute.xlu0 %3779 }
0x166a   : > { %6486 = vmatprep.subr.mxu1 %v3780_v57 }
0x166b   : > { %v6842_v52 = vpop.eup %6841  ;;  %6487 = vmatpush3.msra.mxu1 %v3780_v57 }
0x166c   : > { %6488 = vmatprep.subr.mxu1 %v3778_v58  ;;  %v3771_v0 = vmul.f32 %v6842_v52, %v6836_v41  ;;  %v6844_v31 = vpop.eup %6843  ;;  %v2879_v52 = vld [vmem:[#allocation3 + $0x38] sm:$0xff] }
0x166d   : > { %6489 = vmatpush3.msra.mxu1 %v3778_v58  ;;  %v3772_v36 = vmul.f32 %v6844_v31, %v6834_v10  ;;  %v3601_v58 = vadd.f32 %v6466_v37, %v7887_v60 }
0x166e   : > { %6492 = vmatprep.mubr.msk.f32.mxu1 %vm803_vm1, %v3771_v0 }
0x1673   : > { %v6846_v59 = vpop.eup %6845 }
0x1674   : > { %v3774_v20 = vmul.f32 %v6846_v59, %v6838_v43 }
0x1692   : > { %v3763_v40 = vpop.xlane.xlu1 %3762 }
0x1693   : > { %6847 = vrcp.f32 %v3763_v40  ;;  %v3596_v40 = vadd.f32 %v3595_v38, %v7889_v61 }
0x1696   : > { %v3776_v14 = vpop.permute.xlu1 %3775 }
0x1697   : > { %6490 = vmatprep.subr.mxu1 %v3776_v14 }
0x1698   : > { %6491 = vmatpush3.msra.mxu1 %v3776_v14 }
0x1699   : > { %6493 = vmatmul.mubr.msk.f32.vlgmr.msra.gmra.mxu1 %vm803_vm1, %v3772_v36  ;;  %6498 = vmatprep.subr.mxu1 %v2878_v2  ;;  %v3611_v36 = vadd.f32 %v6469_v45, %v7891_v62  ;;  %v5876_v62 = vld [vmem:[%s8350_s8 + $0x1] ss:$0 sm:$0xff] }
0x169a   : > { %v4104_v3 = vpop.xlane.xlu0 %4103  ;;  %6499 = vmatpush3.msra.mxu1 %v2878_v2 }
0x169b   : > { %v4114_v7 = vsub.f32 %v4084_v50, %v4104_v3 }
0x169d   : > { %v4118_v8 = vmul.f32 1.442695, %v4114_v7 }
0x169e   : > { %v4110_v28 = vpop.xlane.xlu0 %4109 }
0x169f   : > { %6849 = vpow2.f32 %v4118_v8  ;;  %v4116_v27 = vsub.f32 %v7915_v29, %v4110_v28 }
0x16a0   : > { %v6848_v9 = vpop.eup %6847 }
0x16a1   : > { %v3773_v15 = vmul.f32 %v6848_v9, %v6840_v48  ;;  %v4122_v35 = vmul.f32 1.442695, %v4116_v27  ;;  %v3605_v48 = vpop.f32.mrf.mxu1 }
0x16a2   : > { %v4113_v21 = vpop.xlane.xlu0 %4112  ;;  %v3606_v7 = vadd.f32 %v3605_v48, %v7893_v63 }
0x16a3   : > { %6495 = vmatprep.mubr.msk.f32.mxu1 %vm803_vm1, %v3773_v15  ;;  %v4117_v33 = vsub.f32 %v4099_v53, %v4113_v21 }
0x16a4   : > { %6496 = vmatmul.mubr.msk.f32.gmra.mxu1 %vm803_vm1, %v3774_v20 }
0x16a5   : > { %v4124_v24 = vmul.f32 1.442695, %v4117_v33 }
0x16ac   : > { %v6850_v56 = vpop.eup %6849 }
0x16ad   : > { %v4126_v4 = vsel %vm803_vm1, %v6850_v56, 0.0 }
0x16ae   : > { %4127 = vadd.xlane.f32.xlu1 %v4126_v4 }
0x16bf   : > { %4148 = vrot.lane.b32.xlu1 %v7696_v17, %s8397_s25 }
0x16c7   : > { %v4107_v22 = vpop.xlane.xlu1 %4106 }
0x16c8   : > { %v4115_v23 = vsub.f32 %v4089_v12, %v4107_v22 }
0x16ca   : > { %v4120_v32 = vmul.f32 1.442695, %v4115_v23 }
0x16cb   : > { %v4153_v30 = vpop.permute.xlu1 %4152 }
0x16cc   : > { %6851 = vpow2.f32 %v4120_v32  ;;  %6520 = vmatprep.subr.mxu1 %v4153_v30 }
0x16cd   : > { %6853 = vpow2.f32 %v4124_v24 }
0x16ce   : > { %6855 = vpow2.f32 %v4122_v35 }
0x16d9   : > { %v6852_v10 = vpop.eup %6851 }
0x16da   : > { %v4129_v11 = vsel %vm803_vm1, %v6852_v10, 0.0  ;;  %v6854_v41 = vpop.eup %6853 }
0x16db   : > { %4130 = vadd.xlane.f32.xlu0 %v4129_v11  ;;  %v4135_v17 = vsel %vm803_vm1, %v6854_v41, 0.0  ;;  %v6856_v42 = vpop.eup %6855 }
0x16dc   : > { %v4132_v43 = vsel %vm803_vm1, %v6856_v42, 0.0 }
0x16df   : > { %4136 = vadd.xlane.f32.xlu0 %v4135_v17 }
0x16e3   : > { %4133 = vadd.xlane.f32.xlu1 %v4132_v43 }
0x16f4   : > { %4146 = vrot.lane.b32.xlu1 %v7683_v1, %s8397_s25 }
0x16f5   : > { %4150 = vrot.lane.b32.xlu0 %v7692_v16, %s8397_s25 }
0x1737   : > { %v4128_v47 = vpop.xlane.xlu1 %4127 }
0x1738   : > { %6857 = vrcp.f32 %v4128_v47 }
0x173b   : > { %v4149_v29 = vpop.permute.xlu1 %4148 }
0x1745   : > { %v6858_v39 = vpop.eup %6857 }
0x1746   : > { %v4142_v16 = vmul.f32 %v6858_v39, %v6850_v56 }
0x1759   : > { %v6494_v49 = vpop.f32.mrf.mxu1 }
0x175b   : > { %v3865_v34 = vpop.f32.mrf.mxu1 }
0x175c   : > { %6500 = vmatprep.mubr.msk.f32.mxu1 %vm684_vm0, %v3865_v34 }
0x175d   : > { %6501 = vmatmul.mubr.msk.f32.vlgmr.msra.gmra.mxu1 %vm684_vm0, %v6494_v49 }
0x175e   : > { %6521 = vmatpush3.msra.mxu1 %v4153_v30 }
0x1764   : > { %v6497_v50 = vpop.f32.mrf.mxu1  ;;  %v4131_v51 = vpop.xlane.xlu0 %4130 }
0x1765   : > { %6859 = vrcp.f32 %v4131_v51 }
0x1766   : > { %v3875_v1 = vpop.f32.mrf.mxu1 }
0x1767   : > { %6503 = vmatprep.mubr.msk.f32.mxu1 %vm684_vm0, %v3875_v1 }
0x1768   : > { %6504 = vmatmul.mubr.msk.f32.gmra.mxu1 %vm684_vm0, %v6497_v50  ;;  %v4137_v19 = vpop.xlane.xlu0 %4136 }
0x1769   : > { %6528 = vmatprep.mubr.msk.f32.mxu1 %vm803_vm1, %v4142_v16  ;;  %6861 = vrcp.f32 %v4137_v19 }
0x176c   : > { %v4134_v53 = vpop.xlane.xlu1 %4133  ;;  %v4151_v18 = vpop.permute.xlu0 %4150 }
0x176d   : > { %6863 = vrcp.f32 %v4134_v53  ;;  %6522 = vmatprep.subr.mxu1 %v4151_v18 }
0x176e   : > { %6523 = vmatpush3.msra.mxu1 %v4151_v18 }
0x176f   : > { %6524 = vmatprep.subr.mxu1 %v4149_v29 }
0x1770   : > { %v4147_v13 = vpop.permute.xlu1 %4146  ;;  %6525 = vmatpush3.msra.mxu1 %v4149_v29 }
0x1771   : > { %6526 = vmatprep.subr.mxu1 %v4147_v13 }
0x1772   : > { %v6860_v12 = vpop.eup %6859  ;;  %6527 = vmatpush3.msra.mxu1 %v4147_v13 }
0x1773   : > { %v4143_v46 = vmul.f32 %v6860_v12, %v6852_v10  ;;  %6534 = vmatprep.subr.mxu1 %v2879_v52  ;;  %v4443_v12 = vld [vmem:[#allocation5 + $0x38] sm:$0xff] }
0x1774   : > { %6542 = vmatprep.subr.mxu0 %v4443_v12 }
0x1775   : > { %6529 = vmatmul.mubr.msk.f32.vlgmr.msra.gmra.mxu1 %vm803_vm1, %v4143_v46  ;;  %v4442_v46 = vld [vmem:[#allocation5 + $0x30] sm:$0xff]  ;;  %6543 = vmatpush3.msra.mxu0 %v4443_v12 }
0x1776   : > { %v6862_v54 = vpop.eup %6861  ;;  %6535 = vmatpush3.msra.mxu1 %v2879_v52  ;;  %6544 = vmatprep.subr.mxu0 %v4442_v46  ;;  %v5889_v52 = vld [vmem:[%s8355_s13 + $0x68] sm:$0xff] }
0x1777   : > { %v4145_v57 = vmul.f32 %v6862_v54, %v6854_v41  ;;  %v4441_v54 = vld [vmem:[#allocation5 + $0x28] sm:$0xff]  ;;  %6545 = vmatpush3.msra.mxu0 %v4442_v46 }
0x1778   : > { %6546 = vmatprep.subr.mxu0 %v4441_v54 }
0x1779   : > { %6547 = vmatpush3.msra.mxu0 %v4441_v54 }
0x177a   : > { %v6864_v44 = vpop.eup %6863 }
0x177b   : > { %v4144_v55 = vmul.f32 %v6864_v44, %v6856_v42  ;;  %v4440_v44 = vld [vmem:[#allocation5 + $0x20] sm:$0xff] }
0x177c   : > { %6548 = vmatprep.subr.mxu0 %v4440_v44 }
0x177d   : > { %6531 = vmatprep.mubr.msk.f32.mxu1 %vm803_vm1, %v4144_v55  ;;  %6549 = vmatpush3.msra.mxu0 %v4440_v44  ;;  %v5891_v55 = vld [vmem:[%s8355_s13 + $0x78] sm:$0xff] }
0x177e   : > { %6532 = vmatmul.mubr.msk.f32.gmra.mxu1 %vm803_vm1, %v4145_v57  ;;  %v5890_v57 = vld [vmem:[%s8355_s13 + $0x70] sm:$0xff]  ;;  %6556 = vmatprep.subr.mxu1 %v5891_v55 }
0x181d   : > { %v6502_v0 = vpop.f32.mrf.mxu1 }
0x181e   : > { %v3982_v31 = vadd.f32 %v6502_v0, %v3601_v58  ;;  %v5888_v58 = vld [vmem:[%s8355_s13 + $0x60] sm:$0xff] }
0x181f   : > { %v3962_v14 = vpop.f32.mrf.mxu1 }
0x1820   : > { %v3981_v2 = vadd.f32 %v3962_v14, %v3596_v40 }
0x1828   : > { %v6505_v3 = vpop.f32.mrf.mxu1 }
0x1829   : > { %v3984_v8 = vadd.f32 %v6505_v3, %v3611_v36 }
0x182a   : > { %v3972_v59 = vpop.f32.mrf.mxu1 }
0x182b   : > { %v3983_v9 = vadd.f32 %v3972_v59, %v3606_v7 }
0x1835   : > { %v6530_v15 = vpop.f32.mrf.mxu1 }
0x1837   : > { %v4236_v20 = vpop.f32.mrf.mxu1 }
0x1838   : > { %6536 = vmatprep.mubr.msk.f32.mxu1 %vm684_vm0, %v4236_v20 }
0x1839   : > { %6537 = vmatmul.mubr.msk.f32.vlgmr.msra.gmra.mxu1 %vm684_vm0, %v6530_v15 }
0x183a   : > { %6557 = vmatpush3.msra.mxu1 %v5891_v55 }
0x183b   : > { %6558 = vmatprep.subr.mxu1 %v5890_v57 }
0x183c   : > { %6559 = vmatpush3.msra.mxu1 %v5890_v57 }
0x183d   : > { %6560 = vmatprep.subr.mxu1 %v5889_v52 }
0x183e   : > { %v6533_v60 = vpop.f32.mrf.mxu1  ;;  %6561 = vmatpush3.msra.mxu1 %v5889_v52 }
0x183f   : > { %6562 = vmatprep.subr.mxu1 %v5888_v58 }
0x1840   : > { %v4246_v56 = vpop.f32.mrf.mxu1  ;;  %6563 = vmatpush3.msra.mxu1 %v5888_v58 }
0x1841   : > { %6539 = vmatprep.mubr.msk.f32.mxu1 %vm684_vm0, %v4246_v56  ;;  %v5877_v56 = vld [vmem:[%s8351_s9 + $0x1] ss:$0 sm:$0xff] }
0x1842   : > { %6540 = vmatmul.mubr.msk.f32.gmra.mxu1 %vm684_vm0, %v6533_v60 }
0x18f9   : > { %v6538_v61 = vpop.f32.mrf.mxu1 }
0x18fa   : > { %v4353_v63 = vadd.f32 %v6538_v61, %v3982_v31 }
0x18fb   : > { %v4333_v4 = vpop.f32.mrf.mxu1 }
0x18fc   : > { %v4362_v28 = vadd.f32 %v5876_v62, %v4353_v63  ;;  %v4352_v21 = vadd.f32 %v4333_v4, %v3981_v2  ;;  %v5878_v4 = vld [vmem:[%s8352_s10 + $0x1] ss:$0 sm:$0xff] }
0x18fe   : > { %v4361_v33 = vadd.f32 %v5876_v62, %v4352_v21  ;;  %v4366_v22 = vadd.f32 %v4362_v28, %v7666_v26 }
0x1900   : > { %v4374_v23 = vsel %vm803_vm1, %v4366_v22, 0.0  ;;  %v4365_v27 = vadd.f32 %v4361_v33, %v7664_v25 }
0x1901   : > { %4375 = vadd.xlane.f32.xlu1 %v4374_v23 }
0x1902   : > { %v6541_v24 = vpop.f32.mrf.mxu1  ;;  %v4371_v32 = vsel %vm803_vm1, %v4365_v27, 0.0 }
0x1903   : > { %v4355_v30 = vadd.f32 %v6541_v24, %v3984_v8  ;;  %4372 = vadd.xlane.f32.xlu0 %v4371_v32 }
0x1904   : > { %v4343_v35 = vpop.f32.mrf.mxu1 }
0x1905   : > { %v4354_v10 = vadd.f32 %v4343_v35, %v3983_v9  ;;  %v4364_v11 = vadd.f32 %v5876_v62, %v4355_v30 }
0x1907   : > { %v4363_v41 = vadd.f32 %v5876_v62, %v4354_v10  ;;  %v4368_v26 = vadd.f32 %v4364_v11, %v7674_v6  ;;  %v5887_v11 = vld [vmem:[%s8355_s13 + $0x58] sm:$0xff] }
0x1908   : > { %6564 = vmatprep.subr.mxu1 %v5887_v11 }
0x1909   : > { %v4367_v17 = vadd.f32 %v4363_v41, %v7672_v5  ;;  %v4380_v43 = vsel %vm803_vm1, %v4368_v26, 0.0  ;;  %6565 = vmatpush3.msra.mxu1 %v5887_v11  ;;  %v5886_v41 = vld [vmem:[%s8355_s13 + $0x50] sm:$0xff]  ;;  %v4736_v11 = vld [vmem:[%s8359_s17 + $0x8] sm:$0xff] }
0x190a   : > { %6566 = vmatprep.subr.mxu1 %v5886_v41 }
0x190b   : > { %v4377_v42 = vsel %vm803_vm1, %v4367_v17, 0.0  ;;  %6567 = vmatpush3.msra.mxu1 %v5886_v41  ;;  %v4751_v41 = vld [vmem:[%s8359_s17 + $0x80] sm:$0xff] }
0x190c   : > { %4378 = vadd.xlane.f32.xlu0 %v4377_v42  ;;  %v5884_v42 = vld [vmem:[%s8355_s13 + $0x40] sm:$0xff] }
0x1910   : > { %4381 = vadd.xlane.f32.xlu0 %v4380_v43 }
0x198a   : > { %v4376_v25 = vpop.xlane.xlu1 %4375 }
0x198b   : > { %v4384_v37 = vmul.f32 0.03125, %v4376_v25 }
0x198c   : > { %v4373_v38 = vpop.xlane.xlu0 %4372 }
0x198d   : > { %v4388_v45 = vsub.f32 %v4366_v22, %v4384_v37  ;;  %v4383_v47 = vmul.f32 0.03125, %v4373_v38 }
0x198f   : > { %v7970_v48 = vsub.f32 %v4365_v27, %v4383_v47  ;;  %v4392_v49 = vmul.f32 %v4388_v45, %v4388_v45 }
0x1991   : > { %v4398_v34 = vsel %vm803_vm1, %v4392_v49, 0.0  ;;  %v4391_v5 = vmul.f32 %v7970_v48, %v7970_v48 }
0x1992   : > { %4399 = vadd.xlane.f32.xlu0 %v4398_v34 }
0x1993   : > { %v4395_v6 = vsel %vm803_vm1, %v4391_v5, 0.0 }
0x1994   : > { %4396 = vadd.xlane.f32.xlu1 %v4395_v6 }
0x1995   : > { %v4379_v39 = vpop.xlane.xlu0 %4378 }
0x1996   : > { %v4385_v50 = vmul.f32 0.03125, %v4379_v39 }
0x1998   : > { %v7976_v51 = vsub.f32 %v4367_v17, %v4385_v50  ;;  %v5885_v17 = vld [vmem:[%s8355_s13 + $0x48] sm:$0xff] }
0x1999   : > { %v4382_v1 = vpop.xlane.xlu0 %4381  ;;  %6568 = vmatprep.subr.mxu1 %v5885_v17 }
0x199a   : > { %v4386_v16 = vmul.f32 0.03125, %v4382_v1  ;;  %v4393_v29 = vmul.f32 %v7976_v51, %v7976_v51  ;;  %6569 = vmatpush3.msra.mxu1 %v5885_v17  ;;  %v4735_v17 = vld [vmem:[%s8359_s17] sm:$0xff] }
0x199b   : > { %6570 = vmatprep.subr.mxu1 %v5884_v42 }
0x199c   : > { %v7980_v19 = vsub.f32 %v4368_v26, %v4386_v16  ;;  %v4401_v53 = vsel %vm803_vm1, %v4393_v29, 0.0  ;;  %6571 = vmatpush3.msra.mxu1 %v5884_v42  ;;  %v5879_v26 = vld [vmem:[%s8354_s12 + $0x1] ss:$0 sm:$0xff]  ;;  %v4750_v42 = vld [vmem:[%s8359_s17 + $0x78] sm:$0xff] }
0x199d   : > { %4402 = vadd.xlane.f32.xlu1 %v4401_v53 }
0x199e   : > { %v4394_v18 = vmul.f32 %v7980_v19, %v7980_v19 }
0x19a0   : > { %v4404_v13 = vsel %vm803_vm1, %v4394_v18, 0.0 }
0x19a1   : > { %4405 = vadd.xlane.f32.xlu0 %v4404_v13 }
0x1a1b   : > { %v4400_v0 = vpop.xlane.xlu0 %4399 }
0x1a1c   : > { %v4408_v40 = vmul.f32 0.03125, %v4400_v0 }
0x1a1d   : > { %v4397_v31 = vpop.xlane.xlu1 %4396 }
0x1a1e   : > { %v4412_v14 = vadd.f32 1e-05, %v4408_v40  ;;  %v4407_v2 = vmul.f32 0.03125, %v4397_v31 }
0x1a20   : > { %6865 = vrsqrt.f32 %v4412_v14  ;;  %v4411_v36 = vadd.f32 1e-05, %v4407_v2 }
0x1a22   : > { %6867 = vrsqrt.f32 %v4411_v36 }
0x1a26   : > { %v4403_v3 = vpop.xlane.xlu1 %4402 }
0x1a27   : > { %v4409_v7 = vmul.f32 0.03125, %v4403_v3 }
0x1a29   : > { %v4413_v8 = vadd.f32 1e-05, %v4409_v7 }
0x1a2a   : > { %v4406_v59 = vpop.xlane.xlu0 %4405 }
0x1a2b   : > { %6869 = vrsqrt.f32 %v4413_v8  ;;  %v4410_v9 = vmul.f32 0.03125, %v4406_v59 }
0x1a2d   : > { %v6866_v15 = vpop.eup %6865  ;;  %v4414_v20 = vadd.f32 1e-05, %v4410_v9 }
0x1a2e   : > { %v4420_v60 = vmul.f32 %v6866_v15, %v4388_v45 }
0x1a2f   : > { %v6868_v61 = vpop.eup %6867  ;;  %6871 = vrsqrt.f32 %v4414_v20 }
0x1a30   : > { %v4419_v62 = vmul.f32 %v6868_v61, %v7970_v48  ;;  %v4428_v63 = vmul.f32 %v5877_v56, %v4420_v60 }
0x1a32   : > { %v4427_v28 = vmul.f32 %v5877_v56, %v4419_v62  ;;  %v4436_v33 = vadd.f32 %v5878_v4, %v4428_v63 }
0x1a34   : > { %v4435_v21 = vadd.f32 %v5878_v4, %v4427_v28 }
0x1a36   : > { %6550 = vmatprep.mubr.msk.f32.mxu0 %vm803_vm1, %v4435_v21 }
0x1a37   : > { %6551 = vmatmul.mubr.msk.f32.vlgmr.msra.gmra.mxu0 %vm803_vm1, %v4436_v33 }
0x1a38   : > { %v6870_v22 = vpop.eup %6869 }
0x1a39   : > { %v4421_v23 = vmul.f32 %v6870_v22, %v7976_v51  ;;  %v5892_v51 = vld [vmem:[%s8356_s14 + $0x1] ss:$0 sm:$0xff]  ;;  %v4742_v22 = vld [vmem:[%s8359_s17 + $0x38] sm:$0xff] }
0x1a3b   : > { %v4429_v27 = vmul.f32 %v5877_v56, %v4421_v23  ;;  %v4757_v23 = vld [vmem:[%s8359_s17 + $0xb0] sm:$0xff] }
0x1a3c   : > { %v6872_v24 = vpop.eup %6871  ;;  %4810 = vmatprep.subr.mxu0 %v4757_v23  ;;  %v4737_v23 = vld [vmem:[%s8359_s17 + $0x10] sm:$0xff] }
0x1a3d   : > { %v4437_v32 = vadd.f32 %v5878_v4, %v4429_v27  ;;  %v4422_v30 = vmul.f32 %v6872_v24, %v7980_v19  ;;  %v4741_v27 = vld [vmem:[%s8359_s17 + $0x30] sm:$0xff]  ;;  %v4756_v24 = vld [vmem:[%s8359_s17 + $0xa8] sm:$0xff] }
0x1a3e   : > { %4811 = vmatpush1.msra.mxu0 %v4756_v24  ;;  %v4771_v24 = vld [vmem:[%s8359_s17 + $0x120] sm:$0xff] }
0x1a3f   : > { %6553 = vmatprep.mubr.msk.f32.mxu0 %vm803_vm1, %v4437_v32  ;;  %v4430_v35 = vmul.f32 %v5877_v56, %v4422_v30  ;;  %v4754_v30 = vld [vmem:[%s8359_s17 + $0x98] sm:$0xff] }
0x1a40   : > { %4812 = vmatprep.subr.mxu0 %v4754_v30  ;;  %v4770_v30 = vld [vmem:[%s8359_s17 + $0x118] sm:$0xff] }
0x1a41   : > { %v4438_v10 = vadd.f32 %v5878_v4, %v4430_v35  ;;  %v4738_v35 = vld [vmem:[%s8359_s17 + $0x18] sm:$0xff] }
0x1a43   : > { %6554 = vmatmul.mubr.msk.f32.gmra.mxu0 %vm803_vm1, %v4438_v10 }
0x1af7   : > { %v6552_v43 = vpop.f32.mrf.mxu0 }
0x1af8   : > { %v4533_v25 = vadd.f32 %v6552_v43, %v5879_v26  ;;  %v4748_v43 = vld [vmem:[%s8359_s17 + $0x68] sm:$0xff] }
0x1af9   : > { %v4527_v37 = vpop.f32.mrf.mxu0 }
0x1afa   : > { %v4528_v38 = vadd.f32 %v5879_v26, %v4527_v37  ;;  %v4547_v47 = vmax.f32 %v4533_v25, 0.0  ;;  %v4747_v25 = vld [vmem:[%s8359_s17 + $0x60] sm:$0xff]  ;;  %v4769_v37 = vld [vmem:[%s8359_s17 + $0x110] sm:$0xff] }
0x1afc   : > { %v4546_v45 = vmax.f32 %v4528_v38, 0.0 }
0x1afe   : > { %6572 = vmatprep.mubr.msk.f32.mxu1 %vm2592_vm2, %v4546_v45 }
0x1aff   : > { %6573 = vmatmul.mubr.msk.f32.vlgmr.msra.gmra.mxu1 %vm2592_vm2, %v4547_v47 }
0x1b03   : > { %v6555_v48 = vpop.f32.mrf.mxu0 }
0x1b04   : > { %v4543_v49 = vadd.f32 %v6555_v48, %v5879_v26 }
0x1b05   : > { %v4537_v34 = vpop.f32.mrf.mxu0 }
0x1b06   : > { %v4538_v5 = vadd.f32 %v5879_v26, %v4537_v34  ;;  %v4549_v39 = vmax.f32 %v4543_v49, 0.0  ;;  %v7001_v26 = vmov 0.0  }
0x1b07   : > { %4850 = vmatprep.mubr.f32.mxu0 %v7001_v26 }
0x1b08   : > { %v4548_v6 = vmax.f32 %v4538_v5, 0.0 }
0x1b0a   : > { %6575 = vmatprep.mubr.msk.f32.mxu1 %vm2592_vm2, %v4548_v6 }
0x1b0b   : > { %6576 = vmatmul.mubr.msk.f32.gmra.mxu1 %vm2592_vm2, %v4549_v39 }
0x1b0c   : > { %4994 = vmatprep.mubr.f32.mxu1 %v7001_v26 }
0x1bbf   : > { %v6574_v50 = vpop.f32.mrf.mxu1 }
0x1bc0   : > { %v4648_v16 = vadd.f32 %v6574_v50, %v5892_v51 }
0x1bc1   : > { %v4642_v1 = vpop.f32.mrf.mxu1 }
0x1bc2   : > { %v4643_v29 = vadd.f32 %v5892_v51, %v4642_v1  ;;  %v4662_v53 = vadd.f32 %v4648_v16, %v4436_v33  ;;  %v4744_v33 = vld [vmem:[%s8359_s17 + $0x48] sm:$0xff]  ;;  %v8114_v16 = vld [vmem:[%s8357_s15 + $0x1] ss:$0 sm:$0xff] }
0x1bc4   : > { %v4661_v19 = vadd.f32 %v4643_v29, %v4435_v21  ;;  %v4670_v13 = vsel %vm803_vm1, %v4662_v53, 0.0  ;;  %v4745_v21 = vld [vmem:[%s8359_s17 + $0x50] sm:$0xff] }
0x1bc5   : > { %4954 = vmatprep.subr.mxu1 %v4745_v21  ;;  %v4740_v21 = vld [vmem:[%s8359_s17 + $0x28] sm:$0xff] }
0x1bc6   : > { %v4667_v18 = vsel %vm803_vm1, %v4661_v19, 0.0  ;;  %4955 = vmatpush1.msra.mxu1 %v4744_v33  ;;  %v4774_v33 = vld [vmem:[%s8359_s17 + $0x138] sm:$0xff] }
0x1bc7   : > { %4668 = vadd.xlane.f32.xlu1 %v4667_v18  ;;  %4956 = vmatprep.subr.mxu1 %v4742_v22  ;;  %v4772_v22 = vld [vmem:[%s8359_s17 + $0x128] sm:$0xff] }
0x1bc8   : > { %4957 = vmatpush1.msra.mxu1 %v4741_v27 }
0x1bcb   : > { %4671 = vadd.xlane.f32.xlu1 %v4670_v13  ;;  %v6577_v12 = vpop.f32.mrf.mxu1 }
0x1bcc   : > { %v4658_v54 = vadd.f32 %v6577_v12, %v5892_v51 }
0x1bcd   : > { %v4652_v46 = vpop.f32.mrf.mxu1 }
0x1bce   : > { %v4653_v44 = vadd.f32 %v5892_v51, %v4652_v46  ;;  %v4664_v57 = vadd.f32 %v4658_v54, %v4438_v10  ;;  %v4753_v10 = vld [vmem:[%s8359_s17 + $0x90] sm:$0xff]  ;;  %v4768_v54 = vld [vmem:[%s8359_s17 + $0x108] sm:$0xff] }
0x1bcf   : > { %4813 = vmatpush1.msra.mxu0 %v4753_v10  ;;  %v4764_v10 = vld [vmem:[%s8359_s17 + $0xe8] sm:$0xff] }
0x1bd0   : > { %v4663_v55 = vadd.f32 %v4653_v44, %v4437_v32  ;;  %v4676_v58 = vsel %vm803_vm1, %v4664_v57, 0.0  ;;  %v4739_v32 = vld [vmem:[%s8359_s17 + $0x20] sm:$0xff]  ;;  %4814 = vmatprep.subr.mxu0 %v4751_v41  ;;  %v4766_v44 = vld [vmem:[%s8359_s17 + $0xf8] sm:$0xff] }
0x1bd1   : > { %4958 = vmatprep.subr.mxu1 %v4739_v32  ;;  %4815 = vmatpush1.msra.mxu0 %v4750_v42  ;;  %v4782_v41 = vld [vmem:[%s8359_s17 + $0x178] sm:$0xff]  ;;  %v4776_v42 = vld [vmem:[%s8359_s17 + $0x148] sm:$0xff] }
0x1bd2   : > { %v4673_v52 = vsel %vm803_vm1, %v4663_v55, 0.0  ;;  %4959 = vmatpush1.msra.mxu1 %v4738_v35  ;;  %4816 = vmatprep.subr.mxu0 %v4748_v43  ;;  %v4767_v35 = vld [vmem:[%s8359_s17 + $0x100] sm:$0xff]  ;;  %v4773_v43 = vld [vmem:[%s8359_s17 + $0x130] sm:$0xff] }
0x1bd3   : > { %4674 = vadd.xlane.f32.xlu0 %v4673_v52  ;;  %4960 = vmatprep.subr.mxu1 %v4736_v11  ;;  %v4763_v52 = vld [vmem:[%s8359_s17 + $0xe0] sm:$0xff]  ;;  %v4761_v11 = vld [vmem:[%s8359_s17 + $0xd0] sm:$0xff] }
0x1bd4   : > { %4961 = vmatpush1.msra.mxu1 %v4735_v17  ;;  %4817 = vmatpush1.msra.mxu0 %v4747_v25  ;;  %v4779_v17 = vld [vmem:[%s8359_s17 + $0x160] sm:$0xff] }
0x1bd5   : > { %6578 = vmatprep.subr.mxu0 %v7001_v26  ;;  %5098 = vmatprep.subr.mxu1 %v4769_v37 }
0x1bd7   : > { %4677 = vadd.xlane.f32.xlu0 %v4676_v58 }
0x1c50   : > { %v4669_v0 = vpop.xlane.xlu1 %4668 }
0x1c51   : > { %v4679_v40 = vmul.f32 0.03125, %v4669_v0  ;;  %v4758_v0 = vld [vmem:[%s8359_s17 + $0xb8] sm:$0xff] }
0x1c53   : > { %v8037_v31 = vsub.f32 %v4661_v19, %v4679_v40  ;;  %v4762_v40 = vld [vmem:[%s8359_s17 + $0xd8] sm:$0xff] }
0x1c54   : > { %v4672_v14 = vpop.xlane.xlu1 %4671 }
0x1c55   : > { %v4680_v2 = vmul.f32 0.03125, %v4672_v14  ;;  %v4687_v36 = vmul.f32 %v8037_v31, %v8037_v31  ;;  %v4755_v14 = vld [vmem:[%s8359_s17 + $0xa0] sm:$0xff] }
0x1c57   : > { %v8041_v3 = vsub.f32 %v4662_v53, %v4680_v2  ;;  %v4691_v7 = vsel %vm803_vm1, %v4687_v36, 0.0  ;;  %v8117_v53 = vld [vmem:[#allocation7 + $0x1] ss:$0 sm:$0xff] }
0x1c58   : > { %4692 = vadd.xlane.f32.xlu1 %v4691_v7  ;;  %v4759_v36 = vld [vmem:[%s8359_s17 + $0xc0] sm:$0xff]  ;;  %v4752_v7 = vld [vmem:[%s8359_s17 + $0x88] sm:$0xff] }
0x1c59   : > { %v4688_v8 = vmul.f32 %v8041_v3, %v8041_v3 }
0x1c5b   : > { %v4694_v59 = vsel %vm803_vm1, %v4688_v8, 0.0  ;;  %v4781_v8 = vld [vmem:[%s8359_s17 + $0x170] sm:$0xff] }
0x1c5c   : > { %4695 = vadd.xlane.f32.xlu1 %v4694_v59  ;;  %v4675_v9 = vpop.xlane.xlu0 %4674  ;;  %v4749_v59 = vld [vmem:[%s8359_s17 + $0x70] sm:$0xff] }
0x1c5d   : > { %v4681_v15 = vmul.f32 0.03125, %v4675_v9 }
0x1c5f   : > { %v8047_v20 = vsub.f32 %v4663_v55, %v4681_v15 }
0x1c60   : > { %v4678_v60 = vpop.xlane.xlu0 %4677 }
0x1c61   : > { %v4682_v56 = vmul.f32 0.03125, %v4678_v60  ;;  %v4689_v61 = vmul.f32 %v8047_v20, %v8047_v20 }
0x1c63   : > { %v8051_v62 = vsub.f32 %v4664_v57, %v4682_v56  ;;  %v4697_v63 = vsel %vm803_vm1, %v4689_v61, 0.0  ;;  %v4765_v57 = vld [vmem:[%s8359_s17 + $0xf0] sm:$0xff]  ;;  %v4780_v56 = vld [vmem:[%s8359_s17 + $0x168] sm:$0xff] }
0x1c64   : > { %4698 = vadd.xlane.f32.xlu0 %v4697_v63  ;;  %v4778_v63 = vld [vmem:[%s8359_s17 + $0x158] sm:$0xff] }
0x1c65   : > { %v4690_v4 = vmul.f32 %v8051_v62, %v8051_v62 }
0x1c67   : > { %v4700_v28 = vsel %vm803_vm1, %v4690_v4, 0.0  ;;  %v4743_v4 = vld [vmem:[%s8359_s17 + $0x40] sm:$0xff] }
0x1c68   : > { %4701 = vadd.xlane.f32.xlu0 %v4700_v28  ;;  %v4777_v28 = vld [vmem:[%s8359_s17 + $0x150] sm:$0xff] }
0x1ce1   : > { %v4693_v38 = vpop.xlane.xlu1 %4692 }
0x1ce2   : > { %v4703_v45 = vmul.f32 0.03125, %v4693_v38 }
0x1ce4   : > { %v4707_v47 = vadd.f32 1e-05, %v4703_v45 }
0x1ce5   : > { %v4696_v48 = vpop.xlane.xlu1 %4695 }
0x1ce6   : > { %6873 = vrsqrt.f32 %v4707_v47  ;;  %v4704_v49 = vmul.f32 0.03125, %v4696_v48 }
0x1ce8   : > { %v4708_v34 = vadd.f32 1e-05, %v4704_v49 }
0x1cea   : > { %6875 = vrsqrt.f32 %v4708_v34 }
0x1ced   : > { %v4699_v5 = vpop.xlane.xlu0 %4698 }
0x1cee   : > { %v4705_v6 = vmul.f32 0.03125, %v4699_v5 }
0x1cf0   : > { %v4709_v39 = vadd.f32 1e-05, %v4705_v6 }
0x1cf1   : > { %v4702_v50 = vpop.xlane.xlu0 %4701 }
0x1cf2   : > { %6877 = vrsqrt.f32 %v4709_v39  ;;  %v4706_v51 = vmul.f32 0.03125, %v4702_v50 }
0x1cf3   : > { %v6874_v1 = vpop.eup %6873 }
0x1cf4   : > { %v4715_v29 = vmul.f32 %v6874_v1, %v8037_v31  ;;  %v4710_v19 = vadd.f32 1e-05, %v4706_v51  ;;  %v4760_v31 = vld [vmem:[%s8359_s17 + $0xc8] sm:$0xff] }
0x1cf6   : > { %v4723_v18 = vmul.f32 %v8114_v16, %v4715_v29  ;;  %6879 = vrsqrt.f32 %v4710_v19 }
0x1cf7   : > { %v6876_v13 = vpop.eup %6875 }
0x1cf8   : > { %v4716_v12 = vmul.f32 %v6876_v13, %v8041_v3  ;;  %v8122_v46 = vadd.f32 %v8117_v53, %v4723_v18 }
0x1cfa   : > { %v4724_v55 = vmul.f32 %v8114_v16, %v4716_v12  ;;  %5901 = vmatmul.mubr.msk.f32.vlgmr.msra.gmra.mxu1 %vm803_vm1, %v8122_v46 }
0x1cfb   : > { %5099 = vmatpush1.msra.mxu1 %v4768_v54  ;;  %5138 = vmatprep.mubr.f32.mxu1 %v7001_v26 }
0x1cfc   : > { %v4732_v58 = vadd.f32 %v8117_v53, %v4724_v55  ;;  %5100 = vmatprep.subr.mxu1 %v4766_v44 }
0x1cfd   : > { %5101 = vmatpush1.msra.mxu1 %v4765_v57 }
0x1cfe   : > { %5899 = vmatmul.mubr.msk.f32.vlgmr.msra.gmra.mxu0 %vm803_vm1, %v4732_v58  ;;  %5102 = vmatprep.subr.mxu1 %v4763_v52 }
0x1cff   : > { %v6878_v2 = vpop.eup %6877  ;;  %6579 = vmatpush3.msra.mxu0 %v4758_v0  ;;  %5103 = vmatpush1.msra.mxu1 %v4762_v40 }
0x1d00   : > { %v4717_v3 = vmul.f32 %v6878_v2, %v8047_v20  ;;  %6580 = vmatprep.subr.mxu0 %v7001_v26  ;;  %5104 = vmatprep.subr.mxu1 %v4760_v31  ;;  %v4746_v20 = vld [vmem:[%s8359_s17 + $0x58] sm:$0xff] }
0x1d01   : > { %6581 = vmatpush3.msra.mxu0 %v4755_v14  ;;  %6586 = vmatprep.mubr.msk.f32.mxu0 %vm7002_vm3, %v7001_v26 }
0x1d02   : > { %6582 = vmatprep.subr.mxu0 %v7001_v26  ;;  %5105 = vmatpush1.msra.mxu1 %v4759_v36  ;;  %v4725_v9 = vmul.f32 %v8114_v16, %v4717_v3  ;;  %v5535_v3 = vld [vmem:[%s8360_s18 + $0x78] sm:$0xff] }
0x1d03   : > { %v6880_v15 = vpop.eup %6879  ;;  %6583 = vmatpush3.msra.mxu0 %v4752_v7  ;;  %5245 = vmatprep.subr.mxu1 %v4781_v8  ;;  %v5534_v7 = vld [vmem:[%s8360_s18 + $0x70] sm:$0xff]  ;;  %v5533_v8 = vld [vmem:[%s8360_s18 + $0x68] sm:$0xff] }
0x1d04   : > { %6584 = vmatprep.subr.mxu0 %v7001_v26  ;;  %v4733_v60 = vadd.f32 %v8117_v53, %v4725_v9  ;;  %v4718_v61 = vmul.f32 %v6880_v15, %v8051_v62  ;;  %v4775_v62 = vld [vmem:[%s8359_s17 + $0x140] sm:$0xff]  ;;  %v5531_v9 = vld [vmem:[%s8360_s18 + $0x58] sm:$0xff]  ;;  %v5530_v15 = vld [vmem:[%s8360_s18 + $0x50] sm:$0xff] }
0x1d05   : > { %6585 = vmatpush3.msra.mxu0 %v4749_v59  ;;  %v5532_v59 = vld [vmem:[%s8360_s18 + $0x60] sm:$0xff] }
0x1d06   : > { %6587 = vmatmul.mubr.msk.f32.vlgmr.msra.gmra.mxu0 %vm803_vm1, %v4732_v58  ;;  %6589 = vmatprep.subr.mxu0 %v7001_v26  ;;  %v4726_v27 = vmul.f32 %v8114_v16, %v4718_v61  ;;  %v5526_v61 = vld [vmem:[%s8360_s18 + $0x30] sm:$0xff] }
0x1d07   : > { %6590 = vmatpush3.msra.mxu0 %v4746_v20  ;;  %5903 = vmatmul.mubr.msk.f32.vlgmr.msra.gmra.mxu1 %vm803_vm1, %v4733_v60  ;;  %v5529_v20 = vld [vmem:[%s8360_s18 + $0x48] sm:$0xff] }
0x1d08   : > { %5246 = vmatpush1.msra.mxu1 %v4780_v56  ;;  %6591 = vmatprep.subr.mxu0 %v7001_v26  ;;  %v4734_v32 = vadd.f32 %v8117_v53, %v4726_v27  ;;  %v5527_v56 = vld [vmem:[%s8360_s18 + $0x38] sm:$0xff]  ;;  %v5520_v27 = vld [vmem:[%s8360_s18] sm:$0xff] }
0x1d09   : > { %5247 = vmatprep.subr.mxu1 %v4778_v63  ;;  %6592 = vmatpush3.msra.mxu0 %v4743_v4  ;;  %v5525_v63 = vld [vmem:[%s8360_s18 + $0x28] sm:$0xff]  ;;  %v5524_v4 = vld [vmem:[%s8360_s18 + $0x20] sm:$0xff] }
0x1d0a   : > { %5248 = vmatpush1.msra.mxu1 %v4777_v28  ;;  %6593 = vmatprep.subr.mxu0 %v7001_v26  ;;  %v5523_v28 = vld [vmem:[%s8360_s18 + $0x18] sm:$0xff] }
0x1d0b   : > { %5249 = vmatprep.subr.mxu1 %v4775_v62  ;;  %6594 = vmatpush3.msra.mxu0 %v4740_v21  ;;  %v5522_v62 = vld [vmem:[%s8360_s18 + $0x10] sm:$0xff]  ;;  %v5521_v21 = vld [vmem:[%s8360_s18 + $0x8] sm:$0xff] }
0x1d0c   : > { %5250 = vmatpush1.msra.mxu1 %v4774_v33  ;;  %6595 = vmatprep.subr.mxu0 %v7001_v26 }
0x1d0d   : > { %5251 = vmatprep.subr.mxu1 %v4772_v22  ;;  %6596 = vmatpush3.msra.mxu0 %v4737_v23 }
0x1d0e   : > { %6597 = vmatprep.mubr.msk.f32.mxu0 %vm7002_vm3, %v7001_v26  ;;  %5252 = vmatpush1.msra.mxu1 %v4771_v24 }
0x1d0f   : > { %5285 = vmatprep.mubr.f32.mxu1 %v7001_v26  ;;  %6598 = vmatmul.mubr.msk.f32.vlgmr.msra.gmra.mxu0 %vm803_vm1, %v8122_v46 }
0x1d10   : > { %6600 = vmatprep.subr.mxu0 %v7001_v26  ;;  %5905 = vmatmul.mubr.msk.f32.vlgmr.msra.gmra.mxu1 %vm803_vm1, %v4734_v32 }
0x1d11   : > { %6601 = vmatpush3.msra.mxu0 %v4770_v30  ;;  %6608 = vmatprep.mubr.msk.f32.mxu0 %vm7002_vm3, %v7001_v26  ;;  %v5908_v30 = vld [vmem:[#allocation2] ss:$0 sm:$0xff] }
0x1d12   : > { %6602 = vmatprep.subr.mxu0 %v7001_v26  ;;  %6622 = vmatprep.subr.mxu1 %v7001_v26 }
0x1d13   : > { %6603 = vmatpush3.msra.mxu0 %v4767_v35  ;;  %6624 = vmatprep.mubr.msk.f32.mxu1 %vm7002_vm3, %v7001_v26 }
0x1d14   : > { %6604 = vmatprep.subr.mxu0 %v7001_v26 }
0x1d15   : > { %6605 = vmatpush3.msra.mxu0 %v4764_v10 }
0x1d16   : > { %6606 = vmatprep.subr.mxu0 %v7001_v26 }
0x1d17   : > { %6607 = vmatpush3.msra.mxu0 %v4761_v11 }
0x1d18   : > { %6609 = vmatmul.mubr.msk.f32.vlgmr.msra.gmra.mxu0 %vm803_vm1, %v4733_v60  ;;  %6611 = vmatprep.subr.mxu0 %v7001_v26  ;;  %v5528_v60 = vld [vmem:[%s8360_s18 + $0x40] sm:$0xff] }
0x1d19   : > { %6612 = vmatpush3.msra.mxu0 %v4782_v41  ;;  %6619 = vmatprep.mubr.msk.f32.mxu0 %vm7002_vm3, %v7001_v26 }
0x1d1a   : > { %6613 = vmatprep.subr.mxu0 %v7001_v26 }
0x1d1b   : > { %6614 = vmatpush3.msra.mxu0 %v4779_v17 }
0x1d1c   : > { %6615 = vmatprep.subr.mxu0 %v7001_v26 }
0x1d1d   : > { %6616 = vmatpush3.msra.mxu0 %v4776_v42 }
0x1d1e   : > { %6617 = vmatprep.subr.mxu0 %v7001_v26 }
0x1d1f   : > { %6618 = vmatpush3.msra.mxu0 %v4773_v43 }
0x1d20   : > { %6620 = vmatmul.mubr.msk.f32.vlgmr.msra.gmra.mxu0 %vm803_vm1, %v4734_v32  ;;  %6627 = vmatprep.subr.mxu0 %v7001_v26 }
0x1d21   : > { %6629 = vmatprep.mubr.msk.f32.mxu0 %vm7002_vm3, %v7001_v26 }
0x1dba   : > { %v4996_v37 = vpop.f32.mrf.mxu1 }
0x1dbc   : > { %v4998_v47 = vpop.f32.mrf.mxu1 }
0x1dbe   : > { %v4852_v25 = vpop.f32.mrf.mxu0 }
0x1dbf   : > { %v4997_v34 = vadd.f32 %v4996_v37, %v4852_v25 }
0x1dc0   : > { %v4854_v38 = vpop.f32.mrf.mxu0 }
0x1dc1   : > { %v4999_v6 = vadd.f32 %v4998_v47, %v4854_v38 }
0x1dc6   : > { %v4923_v45 = vpop.f32.mrf.mxu0 }
0x1dc7   : > { %v5140_v49 = vpop.f32.mrf.mxu1 }
0x1dc8   : > { %v6588_v48 = vpop.f32.mrf.mxu0  ;;  %v5215_v50 = vadd.f32 %v5140_v49, %v4997_v34 }
0x1dc9   : > { %v5142_v5 = vpop.f32.mrf.mxu1 }
0x1dca   : > { %v5216_v1 = vadd.f32 %v5142_v5, %v4999_v6 }
0x1dcf   : > { %v5067_v39 = vpop.f32.mrf.mxu0 }
0x1dd0   : > { %v5287_v51 = vpop.f32.mrf.mxu1  ;;  %v5068_v46 = vadd.f32 %v5067_v39, %v4923_v45 }
0x1dd1   : > { %v6599_v16 = vpop.f32.mrf.mxu0  ;;  %v5362_v29 = vadd.f32 %v5287_v51, %v5215_v50 }
0x1dd2   : > { %v5289_v19 = vpop.f32.mrf.mxu1 }
0x1dd3   : > { %v5363_v53 = vadd.f32 %v5289_v19, %v5216_v1  ;;  %v5365_v18 = vmul.f32 0.088388346, %v5362_v29 }
0x1dd5   : > { %6623 = vmatpush3.xpose.msra.mxu1 %v5363_v53 }
0x1dd6   : > { %6632 = vmatprep.subr.mxu1 %v7001_v26 }
0x1dd8   : > { %v5211_v13 = vpop.f32.mrf.mxu0  ;;  %6625 = vmatmul.mubr.f32.vlgmr.msra.gmra.mxu1 %v5365_v18 }
0x1dd9   : > { %6664 = vmatprep.mubr.msk.f32.mxu1 %vm7002_vm3, %v7001_v26  ;;  %v5217_v54 = vadd.f32 %v5211_v13, %v5068_v46  ;;  %6633 = vmatpush3.msra.mxu1 %v5535_v3 }
0x1dda   : > { %v6610_v12 = vpop.f32.mrf.mxu0  ;;  %6634 = vmatprep.subr.mxu1 %v7001_v26 }
0x1ddb   : > { %6635 = vmatpush3.msra.mxu1 %v5534_v7 }
0x1ddc   : > { %6636 = vmatprep.subr.mxu1 %v7001_v26 }
0x1ddd   : > { %6637 = vmatpush3.msra.mxu1 %v5533_v8 }
0x1dde   : > { %6638 = vmatprep.subr.mxu1 %v7001_v26 }
0x1ddf   : > { %6639 = vmatpush3.msra.mxu1 %v5532_v59 }
0x1de0   : > { %v5358_v44 = vpop.f32.mrf.mxu0  ;;  %6640 = vmatprep.subr.mxu1 %v7001_v26 }
0x1de1   : > { %v5364_v55 = vadd.f32 %v5358_v44, %v5217_v54  ;;  %6641 = vmatpush3.msra.mxu1 %v5531_v9 }
0x1de2   : > { %v6621_v57 = vpop.f32.mrf.mxu0  ;;  %6642 = vmatprep.subr.mxu1 %v7001_v26 }
0x1de3   : > { %6628 = vmatpush3.msra.mxu0 %v5364_v55  ;;  %6643 = vmatpush3.msra.mxu1 %v5530_v15 }
0x1de4   : > { %6644 = vmatprep.subr.mxu1 %v7001_v26 }
0x1de5   : > { %6645 = vmatpush3.msra.mxu1 %v5529_v20 }
0x1de6   : > { %6646 = vmatprep.subr.mxu1 %v7001_v26 }
0x1de7   : > { %6647 = vmatpush3.msra.mxu1 %v5528_v60 }
0x1de8   : > { %6648 = vmatprep.subr.mxu1 %v7001_v26 }
0x1de9   : > { %6649 = vmatpush3.msra.mxu1 %v5527_v56 }
0x1dea   : > { %6650 = vmatprep.subr.mxu1 %v7001_v26 }
0x1deb   : > { %6651 = vmatpush3.msra.mxu1 %v5526_v61 }
0x1dec   : > { %6652 = vmatprep.subr.mxu1 %v7001_v26 }
0x1ded   : > { %6653 = vmatpush3.msra.mxu1 %v5525_v63 }
0x1dee   : > { %6654 = vmatprep.subr.mxu1 %v7001_v26 }
0x1def   : > { %6655 = vmatpush3.msra.mxu1 %v5524_v4 }
0x1df0   : > { %6656 = vmatprep.subr.mxu1 %v7001_v26 }
0x1df1   : > { %6657 = vmatpush3.msra.mxu1 %v5523_v28 }
0x1df2   : > { %6658 = vmatprep.subr.mxu1 %v7001_v26 }
0x1df3   : > { %6659 = vmatpush3.msra.mxu1 %v5522_v62 }
0x1df4   : > { %6660 = vmatprep.subr.mxu1 %v7001_v26 }
0x1df5   : > { %6661 = vmatpush3.msra.mxu1 %v5521_v21 }
0x1df6   : > { %6662 = vmatprep.subr.mxu1 %v7001_v26 }
0x1df7   : > { %6663 = vmatpush3.msra.mxu1 %v5520_v27 }
0x1e98   : > { %v5432_v52 = vpop.f32.mrf.mxu1 }
0x1e99   : > { %v5436_v58 = vsel %vm684_vm0, %v5432_v52, -inf }
0x1e9a   : > { %5437 = vmax.xlane.f32.xlu1 %v5436_v58  ;;  %v6626_v0 = vpop.f32.mrf.mxu1 }
0x1f23   : > { %v5438_v40 = vpop.xlane.xlu1 %5437 }
0x1f24   : > { %v5439_v31 = vsub.f32 %v5432_v52, %v5438_v40 }
0x1f26   : > { %v5440_v14 = vmul.f32 1.442695, %v5439_v31 }
0x1f28   : > { %6881 = vpow2.f32 %v5440_v14 }
0x1f35   : > { %v6882_v2 = vpop.eup %6881 }
0x1f36   : > { %v5442_v36 = vsel %vm684_vm0, %v6882_v2, 0.0 }
0x1f37   : > { %5443 = vadd.xlane.f32.xlu0 %v5442_v36 }
0x1fc0   : > { %v5444_v33 = vpop.xlane.xlu0 %5443 }
0x1fc1   : > { %6883 = vrcp.f32 %v5444_v33 }
0x1fce   : > { %v6884_v22 = vpop.eup %6883 }
0x1fcf   : > { %v5446_v23 = vmul.f32 %v6884_v22, %v6882_v2 }
0x1fd1   : > { %6630 = vmatmul.mubr.msk.f32.vlgmr.msra.gmra.mxu0 %vm684_vm0, %v5446_v23 }
0x2091   : > { %v5516_v24 = vpop.f32.mrf.mxu0 }
0x2092   : > { %6665 = vmatmul.mubr.f32.vlgmr.msra.gmra.mxu1 %v5516_v24 }
0x2093   : > { %v6631_v32 = vpop.f32.mrf.mxu0 }
0x2152   : > { %v5609_v35 = vpop.f32.mrf.mxu1 }
0x2153   : > { %v5610_v10 = vadd.f32 %v5908_v30, %v5609_v35 }
0x2154   : > { %v6666_v11 = vpop.f32.mrf.mxu1 }
0x2155   : > { %6885 = vtanh.f32 %v5610_v10 }
0x2162   : > { %v6886_v26 = vpop.eup %6885 }
0x2163   : > { %5615 = vst.msk [vmem:[%s671_s26] sm:$0xff] %vm5614_vm4, %v6886_v26 }
0x2164 PF: > { %s34_s23 = sadd.s32 1, %s6983_s23  }
0x2165   : > { %p31_p2 = scmp.ge.s32.totalorder %s34_s23, 4  }
0x2167   :  { %33 = sbr.rel (!%p31_p2) target bundleno = 8 (0x8), region = 147 }
0x216c   :  { %5635 = vsyncpa [#allocation4], 1 }
0x216d   :  { %5637 = vsyncpa [#allocation4 + $0x1], 1 }
0x216e   :  { %5638 = vsyncpa [#allocation6], 1 }

</bundles_post_ra>
